<compile_context>
chip_gen: v5e
topology: v5e:2x2
jax: 0.10.0
libtpu: 0.0.40
codegen_flags: <defaults>
</compile_context>

<pallas_src>
import functools

import jax
import jax.numpy as jnp
from jax.experimental import pallas as pl
from jax.experimental.pallas import tpu as pltpu

# ----------------------------- model constants ------------------------------
NUM_FEATURES = 1408          # efficientnet_b2 num_features
NUM_CLASSES = 4              # ordinal classes per chamber head
STEM_CH = 32                 # efficientnet_b2 stem channels
IN_CH = 3
STEM_K, STEM_STRIDE, STEM_PAD = 3, 2, 1
K_RAW = STEM_K * STEM_K * IN_CH          # 27
K_PAD = 32                               # 27 -> 32 sublane-aligned contraction
N_HEAD_OUT = 1 + 4 * NUM_CLASSES         # 17 real head columns
HEAD_PAD = 128                           # padded to a full lane tile
BN_EPS = 1e-5


# ------------------------------ Pallas kernel -------------------------------
def _fused_backbone_heads_kernel(
    x_ref,                 # (1, tm, K_PAD)  bf16  im2col patch tile
    stem_w_ref,            # (K_PAD, 32)     bf16  BN scale pre-folded
    stem_shift_ref,        # (1, 32)         f32   folded BN shift
    chead_w_ref,           # (32, 1408)      bf16  BN scale pre-folded
    chead_shift_ref,       # (1, 1408)       f32   folded BN shift
    fc_w_ref,              # (1408, 128)     f32   5 heads fused, zero-padded
    fc_bias_ref,           # (1, 128)        f32   zero-padded
    heads_ref,             # (1, 1, 128)     f32   output block (per batch)
    pool_acc_ref,          # (1, 1408)       f32   VMEM scratch accumulator
    *, true_s, tile_m, pad_rows, use_bf16_silu):
  s_idx = pl.program_id(1)

  @pl.when(s_idx == 0)
  def _():
    pool_acc_ref[...] = jnp.zeros_like(pool_acc_ref)

  # conv_stem (im2col matmul, BN scale folded into the weights) + shift + SiLU.
  x = x_ref[0]                                             # (tm, K_PAD) bf16
  h = jnp.dot(x, stem_w_ref[...], preferred_element_type=jnp.float32)
  h = h + stem_shift_ref[...]
  h = h * jax.nn.sigmoid(h)                                # SiLU (small tensor)

  # conv_head 1x1 (-> 1408) + folded-BN shift + SiLU.
  y = jnp.dot(h.astype(jnp.bfloat16), chead_w_ref[...],
              preferred_element_type=jnp.float32)
  y = y + chead_shift_ref[...]
  if use_bf16_silu:
    # EUP bf16 transcendental (v6e/v7x): ~2x sigmoid throughput on the
    # dominant (tm, 1408) tensor; pool accumulation stays f32.
    sig = jax.nn.sigmoid(y.astype(jnp.bfloat16))
    y = y * sig.astype(jnp.float32)
  else:
    y = y * jax.nn.sigmoid(y)                              # v5e / unknown: f32

  # Global average pool: accumulate RAW sums (normalized once at finalize).
  if pad_rows == 0:
    pool_acc_ref[...] += jnp.sum(y, axis=0, keepdims=True)
  else:
    # Padded (all-zero) patch rows still yield nonzero activations because of
    # the BN shift + SiLU, so mask them — but only in the tile that actually
    # contains padding (the last one), to keep the common path mask-free.
    in_padded_tile = (s_idx + 1) * tile_m > true_s

    @pl.when(in_padded_tile)
    def _():
      row = s_idx * tile_m + jax.lax.broadcasted_iota(
          jnp.int32, (tile_m, 1), 0)
      valid = row < true_s
      pool_acc_ref[...] += jnp.sum(jnp.where(valid, y, 0.0),
                                   axis=0, keepdims=True)

    @pl.when(jnp.logical_not(in_padded_tile))
    def _():
      pool_acc_ref[...] += jnp.sum(y, axis=0, keepdims=True)

  # Finalize: normalize pool, then fused classifier + LA/RA/LV/RV heads.
  @pl.when(s_idx == pl.num_programs(1) - 1)
  def _():
    feat = pool_acc_ref[...] * (1.0 / true_s)              # (1, 1408) f32
    heads = jnp.dot(feat, fc_w_ref[...],
                    preferred_element_type=jnp.float32) + fc_bias_ref[...]
    heads_ref[0] = heads                                   # lane-dense store


# ------------------------- tuning / tiling helpers ---------------------------
def _round_up(x, m):
  return ((x + m - 1) // m) * m


def _tpu_tuning():
  """Generation-aware tuning: (use_bf16_silu, spatial tile target, phys VMEM)."""
  try:
    kind = jax.devices()[0].device_kind.lower()
  except Exception:  # pragma: no cover
    kind = ""
  if "v7" in kind:
    return True, 1024, 64 << 20          # v7x: bf16 EUP, 64 MiB VMEM
  if "v6" in kind:
    return True, 2048, 128 << 20         # v6e: bf16 EUP, 128 MiB VMEM
  if "v5" in kind or "v4" in kind or "v3" in kind or "v2" in kind:
    return False, 2048, 128 << 20        # v5e and older: no bf16 VPU/EUP
  return False, 1024, 64 << 20           # unknown: conservative


def _pick_spatial_tile(s, target):
  """8-aligned tile; the wrapper pads S up to a multiple of it (masked in-kernel)."""
  tm = min(_round_up(s, 8), _round_up(target, 8))
  return max(tm, 8)


def _vmem_limit_bytes(tm, vmem_phys):
  est = 0
  est += 2 * tm * K_PAD * 2                    # x tile, bf16, double-buffered
  est += 2 * K_PAD * STEM_CH * 2               # stem_w
  est += 2 * STEM_CH * NUM_FEATURES * 2        # chead_w
  est += 2 * NUM_FEATURES * HEAD_PAD * 4       # fc_w (f32)
  est += 3 * tm * NUM_FEATURES * 4             # f32 conv_head activation temps
  est += tm * NUM_FEATURES * 2                 # bf16 sigmoid temp
  est += 6 * tm * STEM_CH * 4                  # stem activation temps
  est += NUM_FEATURES * 4                      # pool accumulator scratch
  est += 1 << 20                               # shifts/bias/output slack
  # 2x headroom, clamped to 75% of this generation's physical VMEM.
  return int(min(max(2 * est, 16 << 20), int(0.75 * vmem_phys)))


def fused_backbone_heads(patches, params, *, use_bf16_silu, tile_target,
                         vmem_phys):
  """patches: (B, S, K_PAD) bf16 -> (B, HEAD_PAD) f32 fused head outputs."""
  B, S, _ = patches.shape
  tm = _pick_spatial_tile(S, tile_target)
  s_pad = pl.cdiv(S, tm) * tm
  if s_pad != S:
    patches = jnp.pad(patches, ((0, 0), (0, s_pad - S), (0, 0)))
  grid = (B, s_pad // tm)

  kernel = functools.partial(
      _fused_backbone_heads_kernel,
      true_s=S, tile_m=tm, pad_rows=s_pad - S, use_bf16_silu=use_bf16_silu)

  out = pl.pallas_call(
      kernel,
      out_shape=jax.ShapeDtypeStruct((B, 1, HEAD_PAD), jnp.float32),
      grid_spec=pltpu.PrefetchScalarGridSpec(
          num_scalar_prefetch=0,
          grid=grid,
          in_specs=[
              pl.BlockSpec((1, tm, K_PAD), lambda b, s: (b, s, 0)),
              pl.BlockSpec((K_PAD, STEM_CH), lambda b, s: (0, 0)),
              pl.BlockSpec((1, STEM_CH), lambda b, s: (0, 0)),
              pl.BlockSpec((STEM_CH, NUM_FEATURES), lambda b, s: (0, 0)),
              pl.BlockSpec((1, NUM_FEATURES), lambda b, s: (0, 0)),
              pl.BlockSpec((NUM_FEATURES, HEAD_PAD), lambda b, s: (0, 0)),
              pl.BlockSpec((1, HEAD_PAD), lambda b, s: (0, 0)),
          ],
          out_specs=pl.BlockSpec((1, 1, HEAD_PAD), lambda b, s: (b, 0, 0)),
          scratch_shapes=[pltpu.VMEM((1, NUM_FEATURES), jnp.float32)],
      ),
      compiler_params=pltpu.CompilerParams(
          dimension_semantics=("parallel", "arbitrary"),
          vmem_limit_bytes=_vmem_limit_bytes(tm, vmem_phys)),
  )(patches,
    params["stem_w"], params["stem_shift"],
    params["chead_w"], params["chead_shift"],
    params["fc_w"], params["fc_bias"])
  return out[:, 0, :]


# --------------------------------- JAX glue ---------------------------------
def im2col_bf16(x_nhwc, kh, kw, stride, pad, k_pad):
  """Conv patches, built in bf16 with the K-pad fused into the concat."""
  B, H, W, C = x_nhwc.shape
  xp = jnp.pad(x_nhwc.astype(jnp.bfloat16),
               ((0, 0), (pad, pad), (pad, pad), (0, 0)))
  Ho = (H + 2 * pad - kh) // stride + 1
  Wo = (W + 2 * pad - kw) // stride + 1
  cols = []
  for i in range(kh):
    for j in range(kw):
      cols.append(xp[:, i:i + Ho * stride:stride,
                     j:j + Wo * stride:stride, :])
  k_raw = kh * kw * C
  if k_pad > k_raw:
    cols.append(jnp.zeros((B, Ho, Wo, k_pad - k_raw), jnp.bfloat16))
  patches = jnp.concatenate(cols, axis=-1)           # (B, Ho, Wo, k_pad)
  return patches.reshape(B, Ho * Wo, k_pad), Ho, Wo


def fold_bn(gamma, beta, mean, var, eps=BN_EPS):
  scale = gamma / jnp.sqrt(var + eps)
  shift = beta - mean * scale
  return scale[None, :], shift[None, :]


def init_params(key):
  ks = jax.random.split(key, 12)
  p = {}
  # conv_stem: torch weight (32, 3, 3, 3) stored as (kh*kw*Cin, Cout).  The BN
  # scale is folded into the weight columns; contraction zero-padded 27 -> 32.
  stem_w = 0.1 * jax.random.normal(ks[0], (K_RAW, STEM_CH), jnp.float32)
  stem_scale, stem_shift = fold_bn(
      1.0 + 0.05 * jax.random.normal(ks[1], (STEM_CH,), jnp.float32),
      0.05 * jax.random.normal(ks[2], (STEM_CH,), jnp.float32),
      0.05 * jax.random.normal(ks[3], (STEM_CH,), jnp.float32),
      0.5 + jnp.abs(jax.random.normal(ks[4], (STEM_CH,), jnp.float32)))
  p["stem_w"] = jnp.pad(stem_w * stem_scale,
                        ((0, K_PAD - K_RAW), (0, 0))).astype(jnp.bfloat16)
  p["stem_shift"] = stem_shift
  # conv_head: 1x1 conv -> 1408 features, stored as (Cin, Cout) bf16 with the
  # BN scale folded into the weight columns.
  chead_w = 0.1 * jax.random.normal(ks[5], (STEM_CH, NUM_FEATURES), jnp.float32)
  chead_scale, chead_shift = fold_bn(
      1.0 + 0.05 * jax.random.normal(ks[6], (NUM_FEATURES,), jnp.float32),
      0.05 * jax.random.normal(ks[7], (NUM_FEATURES,), jnp.float32),
      0.05 * jax.random.normal(ks[8], (NUM_FEATURES,), jnp.float32),
      0.5 + jnp.abs(jax.random.normal(ks[9], (NUM_FEATURES,), jnp.float32)))
  p["chead_w"] = (chead_w * chead_scale).astype(jnp.bfloat16)
  p["chead_shift"] = chead_shift
  # classifier (1408->1) + LA/RA/LV/RV ordinal heads (1408->4 each), fused
  # column-wise, zero-padded 17 -> 128 for a lane-dense store.  Padded columns
  # (zero weight + zero bias, no nonlinearity) stay exactly zero and are
  # sliced off in the wrapper.
  fc_w = 0.05 * jax.random.normal(ks[10], (NUM_FEATURES, N_HEAD_OUT), jnp.float32)
  fc_b = 0.05 * jax.random.normal(ks[11], (1, N_HEAD_OUT), jnp.float32)
  p["fc_w"] = jnp.pad(fc_w, ((0, 0), (0, HEAD_PAD - N_HEAD_OUT)))
  p["fc_bias"] = jnp.pad(fc_b, ((0, 0), (0, HEAD_PAD - N_HEAD_OUT)))
  return p


def ordinal_effnet_forward(params, x_nchw):
  """Mirrors OrdinalEffNet.forward: returns (enl, la, ra, lv, rv). Dropout is
  inference-mode identity."""
  use_bf16_silu, tile_target, vmem_phys = _tpu_tuning()   # trace-time constants

  x = jnp.transpose(x_nchw, (0, 2, 3, 1))                  # NCHW -> NHWC
  patches, _, _ = im2col_bf16(x, STEM_K, STEM_K, STEM_STRIDE, STEM_PAD, K_PAD)

  # Single fused kernel: stem -> conv_head -> global avg pool -> 5 heads.
  out = fused_backbone_heads(patches, params,
                             use_bf16_silu=use_bf16_silu,
                             tile_target=tile_target,
                             vmem_phys=vmem_phys)           # (B, 128)

  K = NUM_CLASSES
  enl = out[:, 0:1]
  la = out[:, 1:1 + K]
  ra = out[:, 1 + K:1 + 2 * K]
  lv = out[:, 1 + 2 * K:1 + 3 * K]
  rv = out[:, 1 + 3 * K:1 + 4 * K]
  return enl, la, ra, lv, rv


if __name__ == "__main__":
  key = jax.random.PRNGKey(0)
  pkey, xkey = jax.random.split(key)
  params = init_params(pkey)
  x = jax.random.normal(xkey, (2, 3, 16, 16), jnp.float32)   # NCHW input

  fwd = jax.jit(ordinal_effnet_forward)
  outs = fwd(params, x)
  outs = jax.block_until_ready(outs)

  enl, la, ra, lv, rv = outs
  assert enl.shape == (2, 1)
  assert la.shape == ra.shape == lv.shape == rv.shape == (2, NUM_CLASSES)
  assert all(bool(jnp.all(jnp.isfinite(o))) for o in outs)
  print("KERNEL_OK")
</pallas_src>

<mosaic_0001>
module attributes {stable_mosaic.version = 11 : i64} {
  func.func @_fused_backbone_heads_kernel(%arg0: i32, %arg1: i32, %arg2: memref<1x64x32xbf16, #tpu.memory_space<vmem>>, %arg3: memref<32x32xbf16, #tpu.memory_space<vmem>>, %arg4: memref<1x32xf32, #tpu.memory_space<vmem>>, %arg5: memref<32x1408xbf16, #tpu.memory_space<vmem>>, %arg6: memref<1x1408xf32, #tpu.memory_space<vmem>>, %arg7: memref<1408x128xf32, #tpu.memory_space<vmem>>, %arg8: memref<1x128xf32, #tpu.memory_space<vmem>>, %arg9: memref<1x1x128xf32, #tpu.memory_space<vmem>>, %arg10: memref<1x1408xf32, #tpu.memory_space<vmem>>) attributes {dimension_semantics = [#tpu.dimension_semantics<parallel>, #tpu.dimension_semantics<arbitrary>], iteration_bounds = array<i64: 2, 1>, scalar_prefetch = 0 : i64, scratch_operands = 1 : i64, tpu.core_type = #tpu.core_type<tc>, window_params = [{transform_indices = @transform_0, window_bounds = array<i64: 1, 64, 32>}, {pipeline_mode = #tpu.pipeline_mode<synchronous>, transform_indices = @transform_1, window_bounds = array<i64: 32, 32>}, {pipeline_mode = #tpu.pipeline_mode<synchronous>, transform_indices = @transform_2, window_bounds = array<i64: 1, 32>}, {pipeline_mode = #tpu.pipeline_mode<synchronous>, transform_indices = @transform_3, window_bounds = array<i64: 32, 1408>}, {pipeline_mode = #tpu.pipeline_mode<synchronous>, transform_indices = @transform_4, window_bounds = array<i64: 1, 1408>}, {pipeline_mode = #tpu.pipeline_mode<synchronous>, transform_indices = @transform_5, window_bounds = array<i64: 1408, 128>}, {pipeline_mode = #tpu.pipeline_mode<synchronous>, transform_indices = @transform_6, window_bounds = array<i64: 1, 128>}, {transform_indices = @transform_7, window_bounds = array<i64: 1, 1, 128>}]} {
    %c0_i32 = arith.constant 0 : i32
    %0 = arith.cmpi eq, %arg1, %c0_i32 : i32
    %1 = arith.extui %0 : i1 to i32
    %c0_i32_0 = arith.constant 0 : i32
    %2 = arith.cmpi ne, %1, %c0_i32_0 : i32
    scf.if %2 {
      %cst_21 = arith.constant 0.000000e+00 : f32
      %36 = vector.broadcast %cst_21 : f32 to vector<1x1408xf32>
      %c0_22 = arith.constant 0 : index
      %c0_23 = arith.constant 0 : index
      %37 = vector.load %arg10[%c0_22, %c0_23] : memref<1x1408xf32, #tpu.memory_space<vmem>>, vector<1x1408xf32>
      tpu.vector_store %arg10[%c0_22, %c0_23], %36 {strides = array<i32>} : memref<1x1408xf32, #tpu.memory_space<vmem>>, vector<1x1408xf32>,
    } else {
    }
    %c0 = arith.constant 0 : index
    %c0_1 = arith.constant 0 : index
    %c0_2 = arith.constant 0 : index
    %3 = vector.load %arg2[%c0, %c0_1, %c0_2] : memref<1x64x32xbf16, #tpu.memory_space<vmem>>, vector<1x64x32xbf16>
    %4 = vector.shape_cast %3 : vector<1x64x32xbf16> to vector<64x32xbf16>
    %c0_3 = arith.constant 0 : index
    %c0_4 = arith.constant 0 : index
    %5 = vector.load %arg3[%c0_3, %c0_4] : memref<32x32xbf16, #tpu.memory_space<vmem>>, vector<32x32xbf16>
    %cst = arith.constant dense<0.000000e+00> : vector<64x32xf32>
    %6 = tpu.matmul %4, %5, %cst {dimension_numbers = #tpu.dot_dimension_numbers<[1], [0], [0], [1], [0, 0, 1, 1], [], []>} : vector<64x32xbf16>, vector<32x32xbf16>, vector<64x32xf32> -> vector<64x32xf32>
    %c0_5 = arith.constant 0 : index
    %c0_6 = arith.constant 0 : index
    %7 = vector.load %arg4[%c0_5, %c0_6] : memref<1x32xf32, #tpu.memory_space<vmem>>, vector<1x32xf32>
    %8 = vector.broadcast %7 : vector<1x32xf32> to vector<64x32xf32>
    %9 = arith.addf %6, %8 : vector<64x32xf32>
    %10 = arith.negf %9 : vector<64x32xf32>
    %11 = math.exp %10 : vector<64x32xf32>
    %cst_7 = arith.constant 1.000000e+00 : f32
    %12 = vector.broadcast %cst_7 : f32 to vector<64x32xf32>
    %13 = arith.addf %12, %11 : vector<64x32xf32>
    %14 = arith.divf %12, %13 : vector<64x32xf32>
    %15 = arith.mulf %9, %14 : vector<64x32xf32>
    %16 = arith.truncf %15 : vector<64x32xf32> to vector<64x32xbf16>
    %c0_8 = arith.constant 0 : index
    %c0_9 = arith.constant 0 : index
    %17 = vector.load %arg5[%c0_8, %c0_9] : memref<32x1408xbf16, #tpu.memory_space<vmem>>, vector<32x1408xbf16>
    %cst_10 = arith.constant dense<0.000000e+00> : vector<64x1408xf32>
    %18 = tpu.matmul %16, %17, %cst_10 {dimension_numbers = #tpu.dot_dimension_numbers<[1], [0], [0], [1], [0, 0, 1, 1], [], []>} : vector<64x32xbf16>, vector<32x1408xbf16>, vector<64x1408xf32> -> vector<64x1408xf32>
    %c0_11 = arith.constant 0 : index
    %c0_12 = arith.constant 0 : index
    %19 = vector.load %arg6[%c0_11, %c0_12] : memref<1x1408xf32, #tpu.memory_space<vmem>>, vector<1x1408xf32>
    %20 = vector.broadcast %19 : vector<1x1408xf32> to vector<64x1408xf32>
    %21 = arith.addf %18, %20 : vector<64x1408xf32>
    %22 = arith.negf %21 : vector<64x1408xf32>
    %23 = math.exp %22 : vector<64x1408xf32>
    %cst_13 = arith.constant 1.000000e+00 : f32
    %24 = vector.broadcast %cst_13 : f32 to vector<64x1408xf32>
    %25 = arith.addf %24, %23 : vector<64x1408xf32>
    %26 = arith.divf %24, %25 : vector<64x1408xf32>
    %27 = arith.mulf %21, %26 : vector<64x1408xf32>
    %c0_14 = arith.constant 0 : index
    %c0_15 = arith.constant 0 : index
    %28 = vector.load %arg10[%c0_14, %c0_15] : memref<1x1408xf32, #tpu.memory_space<vmem>>, vector<1x1408xf32>
    %cst_16 = arith.constant dense<0.000000e+00> : vector<1408xf32>
    %29 = vector.multi_reduction <add>, %27, %cst_16 [0] : vector<64x1408xf32> to vector<1408xf32>
    %30 = vector.shape_cast %29 : vector<1408xf32> to vector<1x1408xf32>
    %31 = arith.addf %28, %30 : vector<1x1408xf32>
    %c0_17 = arith.constant 0 : index
    %c0_18 = arith.constant 0 : index
    %32 = vector.load %arg10[%c0_17, %c0_18] : memref<1x1408xf32, #tpu.memory_space<vmem>>, vector<1x1408xf32>
    tpu.vector_store %arg10[%c0_17, %c0_18], %31 {strides = array<i32>} : memref<1x1408xf32, #tpu.memory_space<vmem>>, vector<1x1408xf32>,
    %c0_i32_19 = arith.constant 0 : i32
    %33 = arith.cmpi eq, %arg1, %c0_i32_19 : i32
    %34 = arith.extui %33 : i1 to i32
    %c0_i32_20 = arith.constant 0 : i32
    %35 = arith.cmpi ne, %34, %c0_i32_20 : i32
    scf.if %35 {
      %c0_21 = arith.constant 0 : index
      %c0_22 = arith.constant 0 : index
      %36 = vector.load %arg10[%c0_21, %c0_22] : memref<1x1408xf32, #tpu.memory_space<vmem>>, vector<1x1408xf32>
      %cst_23 = arith.constant 1.562500e-02 : f32
      %37 = vector.broadcast %cst_23 : f32 to vector<1x1408xf32>
      %38 = arith.mulf %36, %37 : vector<1x1408xf32>
      %c0_24 = arith.constant 0 : index
      %c0_25 = arith.constant 0 : index
      %39 = vector.load %arg7[%c0_24, %c0_25] : memref<1408x128xf32, #tpu.memory_space<vmem>>, vector<1408x128xf32>
      %cst_26 = arith.constant dense<0.000000e+00> : vector<1x128xf32>
      %40 = tpu.matmul %38, %39, %cst_26 {dimension_numbers = #tpu.dot_dimension_numbers<[1], [0], [0], [1], [0, 0, 1, 1], [], []>} : vector<1x1408xf32>, vector<1408x128xf32>, vector<1x128xf32> -> vector<1x128xf32>
      %c0_27 = arith.constant 0 : index
      %c0_28 = arith.constant 0 : index
      %41 = vector.load %arg8[%c0_27, %c0_28] : memref<1x128xf32, #tpu.memory_space<vmem>>, vector<1x128xf32>
      %42 = arith.addf %40, %41 : vector<1x128xf32>
      %c0_29 = arith.constant 0 : index
      %c0_30 = arith.constant 0 : index
      %c0_31 = arith.constant 0 : index
      %43 = vector.load %arg9[%c0_29, %c0_30, %c0_31] : memref<1x1x128xf32, #tpu.memory_space<vmem>>, vector<1x1x128xf32>
      %44 = vector.shape_cast %43 : vector<1x1x128xf32> to vector<1x128xf32>
      %45 = vector.shape_cast %42 : vector<1x128xf32> to vector<1x1x128xf32>
      tpu.vector_store %arg9[%c0_29, %c0_30, %c0_31], %45 {strides = array<i32>} : memref<1x1x128xf32, #tpu.memory_space<vmem>>, vector<1x1x128xf32>,
    } else {
    }
    return
  }
  func.func @transform_0(%arg0: i32, %arg1: i32) -> (i32, i32, i32) {
    %c0_i32 = arith.constant 0 : i32
    %c0_i32_0 = arith.constant 0 : i32
    return %arg0, %arg1, %c0_i32 : i32, i32, i32
  }
  func.func @transform_1(%arg0: i32, %arg1: i32) -> (i32, i32) {
    %c0_i32 = arith.constant 0 : i32
    %c0_i32_0 = arith.constant 0 : i32
    %c0_i32_1 = arith.constant 0 : i32
    return %c0_i32, %c0_i32_0 : i32, i32
  }
  func.func @transform_2(%arg0: i32, %arg1: i32) -> (i32, i32) {
    %c0_i32 = arith.constant 0 : i32
    %c0_i32_0 = arith.constant 0 : i32
    %c0_i32_1 = arith.constant 0 : i32
    return %c0_i32, %c0_i32_0 : i32, i32
  }
  func.func @transform_3(%arg0: i32, %arg1: i32) -> (i32, i32) {
    %c0_i32 = arith.constant 0 : i32
    %c0_i32_0 = arith.constant 0 : i32
    %c0_i32_1 = arith.constant 0 : i32
    return %c0_i32, %c0_i32_0 : i32, i32
  }
  func.func @transform_4(%arg0: i32, %arg1: i32) -> (i32, i32) {
    %c0_i32 = arith.constant 0 : i32
    %c0_i32_0 = arith.constant 0 : i32
    %c0_i32_1 = arith.constant 0 : i32
    return %c0_i32, %c0_i32_0 : i32, i32
  }
  func.func @transform_5(%arg0: i32, %arg1: i32) -> (i32, i32) {
    %c0_i32 = arith.constant 0 : i32
    %c0_i32_0 = arith.constant 0 : i32
    %c0_i32_1 = arith.constant 0 : i32
    return %c0_i32, %c0_i32_0 : i32, i32
  }
  func.func @transform_6(%arg0: i32, %arg1: i32) -> (i32, i32) {
    %c0_i32 = arith.constant 0 : i32
    %c0_i32_0 = arith.constant 0 : i32
    %c0_i32_1 = arith.constant 0 : i32
    return %c0_i32, %c0_i32_0 : i32, i32
  }
  func.func @transform_7(%arg0: i32, %arg1: i32) -> (i32, i32, i32) {
    %c0_i32 = arith.constant 0 : i32
    %c0_i32_0 = arith.constant 0 : i32
    %c0_i32_1 = arith.constant 0 : i32
    return %arg0, %c0_i32, %c0_i32_0 : i32, i32, i32
  }
}

</mosaic_0001>

<bundles_post_ra>
// kernel: ordinal_effnet_forward.1
= control target key start
LH: loop header
LB: loop body
LE: loop exit
PB: predicated region body
PF: predicated region fallthrough
CT: control target
= control target key end

     0   :  { %s4272_s24 = smov 0   ;;  %s4274_s25 = smov 0   ;;  %s8055_s0 = inlined_call_operand.vmem [shape: bf16[2,64,32], index: 0, kind: input, shape index: {}]   ;;  %s8056_s1 = inlined_call_operand.vmem [shape: bf16[32,32], index: 1, kind: input, shape index: {}]   ;;  %s8057_s2 = inlined_call_operand.vmem [shape: f32[1,32], index: 2, kind: input, shape index: {}]   ;;  %s8058_s3 = inlined_call_operand.vmem [shape: bf16[32,1408], index: 3, kind: input, shape index: {}]   ;;  %s8059_s4 = inlined_call_operand.vmem [shape: f32[1,1408], index: 4, kind: input, shape index: {}]   ;;  %s8060_s5 = inlined_call_operand.vmem [shape: f32[1408,128], index: 5, kind: input, shape index: {}]   ;;  %s8061_s6 = inlined_call_operand.vmem [shape: f32[1,128], index: 6, kind: input, shape index: {}]   ;;  %s8062_s7 = inlined_call_operand.vmem [shape: f32[2,1,128], index: 7, kind: output, shape index: {}]  }
   0x1   :  { %s4276_s26 = smov 0  }
   0x2 LB: > { %s29_s27 = sadd.s32 1, %s4225_s25  ;;  %p3506_p0 = scmp.ge.s32.totalorder %s4229_s26, 1  ;;  %s4229_s26 = sphi %s4276_s26, %s17_s26   ;;  %s4225_s25 = sphi %s4274_s25, %s8332_s25   ;;  %s4221_s24 = sphi %s4272_s24, %s8331_s24  }
   0x3   : > { %p31_p1 = scmp.ge.s32.totalorder %s29_s27, 2  ;;  %p256_p2 = scmp.lt.s32.totalorder %s4229_s26, 3 }
   0x5   : > { %s8334_s27 = smov (%p31_p1, %s29_s27), 0  ;;  %p257_p3 = pnand %p3506_p0, %p256_p2 }
   0x6   : > { %p291_p4 = scmp.lt.s32.totalorder (!%p257_p3), %s4221_s24, 1 }
   0x7   : > { %260 = sbr.rel (%p257_p3) target bundleno = 931 (0x3a3), region = 48 }
   0xc   : > { %v3773_v0 = vld [vmem:[%s8056_s1 + $0x8] sm:$0xff]  ;;  %v3772_v1 = vld [vmem:[%s8056_s1] sm:$0xff]  ;;  %s8336_s24 = smov (!%p291_p4, %s4221_s24), 1  ;;  %vm362_vm0 = vcmask 261120   ;;  %v3601_v10 = vld [vmem:[%s8058_s3 + $0x8c] sm:$0xf0] }
   0xd   : > { %381 = vmatpush.bf16.msra.mxu0 %v3773_v0  ;;  %s3767_s9 = sshll.u32 %s8336_s24, 5  ;;  %v4309_v6 = vld [vmem:[%s8057_s2] ss:$0 sm:$0xff]  ;;  %v3786_v9 = vld [vmem:[%s8058_s3 + $0x64] sm:$0xf] }
   0xe   : > { %s298_s12 = scalar_lea.vmem %s8055_s0, %s3767_s9  ;;  %v3591_v11 = vld [vmem:[%s8058_s3 + $0x58] sm:$0xf]  ;;  %v3604_v13 = vor.u32 %v3786_v9, %v3601_v10  ;;  %v3790_v14 = vld [vmem:[%s8058_s3 + $0x80] sm:$0xf0]  ;;  %v3785_v15 = vld [vmem:[%s8058_s3 + $0x5c] sm:$0xf]  ;;  %s302_s9 = scalar_lea.vmem %s8062_s7, %s8336_s24 }
   0xf   : > { %v3768_v2 = vld [vmem:[%s298_s12] sm:$0xff]  ;;  %v3769_v3 = vld [vmem:[%s298_s12 + $0x8] sm:$0xff]  ;;  %v3770_v4 = vld [vmem:[%s298_s12 + $0x10] sm:$0xff]  ;;  %v3592_v16 = vor.u32 %v3790_v14, %v3591_v11 }
  0x10   : > { %v3771_v5 = vld [vmem:[%s298_s12 + $0x18] sm:$0xff]  ;;  %v3593_v17 = vld [vmem:[%s8058_s3 + $0x84] sm:$0xf0]  ;;  %v3599_v18 = vld [vmem:[%s8058_s3 + $0x60] sm:$0xf] }
  0x11   : > { %382 = vmatpush.bf16.msra.mxu0 %v3772_v1  ;;  %v3791_v19 = vld [vmem:[%s8058_s3 + $0x88] sm:$0xf0]  ;;  %v3596_v20 = vor.u32 %v3785_v15, %v3593_v17  ;;  %748 = vmatpush.bf16.msra.mxu1 %v3592_v16  ;;  %v3547_v22 = vld [vmem:[%s8058_s3] sm:$0xf]  ;;  %v3774_v24 = vld [vmem:[%s8058_s3 + $0x4] sm:$0xf] }
  0x12   : > { %v3600_v21 = vor.u32 %v3791_v19, %v3599_v18  ;;  %v3779_v23 = vld [vmem:[%s8058_s3 + $0x28] sm:$0xf0]  ;;  %v3549_v26 = vld [vmem:[%s8058_s3 + $0x2c] sm:$0xf0]  ;;  %v3555_v27 = vld [vmem:[%s8058_s3 + $0x8] sm:$0xf] }
  0x13   : > { %777 = vmatpush.bf16.msra.mxu2 %v3596_v20  ;;  %v3548_v25 = vor.u32 %v3779_v23, %v3547_v22  ;;  %v3780_v28 = vld [vmem:[%s8058_s3 + $0x30] sm:$0xf0]  ;;  %v3552_v30 = vor.u32 %v3774_v24, %v3549_v26  ;;  %v3775_v32 = vld [vmem:[%s8058_s3 + $0xc] sm:$0xf]  ;;  %v3557_v33 = vld [vmem:[%s8058_s3 + $0x34] sm:$0xf0] }
  0x14   : > { %3533 = vmatmul.msk.bf16.vlgmr.msra.gmra.mxu0 %vm362_vm0, %v3768_v2  ;;  %806 = vmatpush.bf16.msra.mxu3 %v3600_v21  ;;  %v3556_v31 = vor.u32 %v3780_v28, %v3555_v27  ;;  %v3560_v35 = vor.u32 %v3775_v32, %v3557_v33  ;;  %v3787_v22 = vld [vmem:[%s8058_s3 + $0x6c] sm:$0xf]  ;;  %v3609_v23 = vld [vmem:[%s8058_s3 + $0x94] sm:$0xf0]  ;;  %v3615_v24 = vld [vmem:[%s8058_s3 + $0x70] sm:$0xf] }
  0x15   : > { %835 = vmatpush.bf16.msrb.mxu0 %v3604_v13  ;;  %749 = vmatpush.bf16.msra.mxu1 %v3548_v25  ;;  %v3793_v25 = vld [vmem:[%s8058_s3 + $0x98] sm:$0xf0] }
  0x16   : > { %v3616_v28 = vor.u32 %v3793_v25, %v3615_v24 }
  0x17   : > { %778 = vmatpush.bf16.msra.mxu2 %v3552_v30 }
  0x18   : > { %807 = vmatpush.bf16.msra.mxu3 %v3556_v31 }
  0x19   : > { %836 = vmatpush.bf16.msrb.mxu0 %v3560_v35 }
  0x1c   : > { %922 = vmatpush.bf16.msrb.mxu3 %v3616_v28 }
  0x24   : > { %3534 = vmatmul.msk.bf16.gmra.mxu0 %vm362_vm0, %v3769_v3 }
  0x34   : > { %3535 = vmatmul.msk.bf16.gmra.mxu0 %vm362_vm0, %v3770_v4 }
  0x44   : > { %3536 = vmatmul.msk.bf16.gmra.mxu0 %vm362_vm0, %v3771_v5 }
  0x91   : > { %v384_v7 = vpop.f32.mrf.mxu0 }
  0x92   : > { %v4312_v8 = vadd.f32 %v4309_v6, %v384_v7 }
  0x94   : > { %v3537_v12 = vmul.f32 -1.442695, %v4312_v8 }
  0x96   : > { %3822 = vpow2.f32 %v3537_v12 }
  0x99   : > { %v386_v29 = vpop.f32.mrf.mxu0 }
  0x9a   : > { %v4364_v34 = vadd.f32 %v4309_v6, %v386_v29 }
  0x9c   : > { %v3823_v36 = vpop.eup %3822  ;;  %v3538_v37 = vmul.f32 -1.442695, %v4364_v34 }
  0x9d   : > { %v428_v38 = vadd.f32 1.0, %v3823_v36  ;;  %v3607_v36 = vld [vmem:[%s8058_s3 + $0x68] sm:$0xf] }
  0x9e   : > { %3824 = vpow2.f32 %v3538_v37  ;;  %v3792_v37 = vld [vmem:[%s8058_s3 + $0x90] sm:$0xf0] }
  0x9f   : > { %3826 = vrcp.f32 %v428_v38  ;;  %v447_v56 = vand.u32 2147483648, %v428_v38  ;;  %vm441_vm2 = vweird.f32 %v428_v38  ;;  %v445_v57 = vand.u32 2147483647, %v428_v38 }
  0xa1   : > { %v389_v39 = vpop.f32.mrf.mxu0  ;;  %v448_v2 = vor.u32 1.1754944e-38, %v447_v56  ;;  %vm446_vm5 = vcmp.eq.f32.partialorder %v445_v57, 8.507059e+37 }
  0xa2   : > { %v4368_v40 = vadd.f32 %v4309_v6, %v389_v39 }
  0xa4   : > { %v3825_v41 = vpop.eup %3824  ;;  %v3539_v42 = vmul.f32 -1.442695, %v4368_v40 }
  0xa5   : > { %v3827_v43 = vpop.eup %3826  ;;  %v429_v44 = vadd.f32 1.0, %v3825_v41 }
  0xa6   : > { %v437_v45 = vmul.f32 %v3827_v43, %v428_v38  ;;  %3828 = vpow2.f32 %v3539_v42  ;;  %vm442_vm1 = vweird.f32 %v3827_v43 }
  0xa7   : > { %3830 = vrcp.f32 %v429_v44  ;;  %vm4378_vm3 = vmor %vm441_vm2, %vm442_vm1  ;;  %v460_v60 = vand.u32 2147483647, %v429_v44  ;;  %v462_v61 = vand.u32 2147483648, %v429_v44  ;;  %vm456_vm6 = vweird.f32 %v429_v44 }
  0xa8   : > { %v438_v46 = vsub.f32 1.0, %v437_v45 }
  0xa9   : > { %v391_v47 = vpop.f32.mrf.mxu0  ;;  %v463_v10 = vor.u32 1.1754944e-38, %v462_v61  ;;  %vm461_vm8 = vcmp.eq.f32.partialorder %v460_v60, 8.507059e+37 }
  0xaa   : > { %v439_v48 = vmul.f32 %v3827_v43, %v438_v46  ;;  %v4372_v49 = vadd.f32 %v4309_v6, %v391_v47 }
  0xac   : > { %v3829_v50 = vpop.eup %3828  ;;  %v3540_v51 = vmul.f32 -1.442695, %v4372_v49  ;;  %v440_v54 = vadd.f32 %v3827_v43, %v439_v48 }
  0xad   : > { %v3831_v52 = vpop.eup %3830  ;;  %v4375_v53 = vadd.f32 1.0, %v3829_v50 }
  0xae   : > { %v452_v55 = vmul.f32 %v3831_v52, %v429_v44  ;;  %3832 = vpow2.f32 %v3540_v51  ;;  %v444_v63 = vsel %vm4378_vm3, %v3827_v43, %v440_v54  ;;  %vm457_vm4 = vweird.f32 %v3831_v52 }
  0xaf   : > { %3834 = vrcp.f32 %v4375_v53  ;;  %v449_v9 = vsel %vm446_vm5, %v448_v2, %v444_v63  ;;  %vm458_vm7 = vmor %vm456_vm6, %vm457_vm4  ;;  %v475_v33 = vand.u32 2147483647, %v4375_v53  ;;  %vm471_vm10 = vweird.f32 %v4375_v53 }
  0xb0   : > { %v453_v58 = vsub.f32 1.0, %v452_v55  ;;  %v556_v15 = vmul.f32 %v449_v9, %v4312_v8  ;;  %v3612_v8 = vor.u32 %v3787_v22, %v3609_v23  ;;  %v3608_v43 = vor.u32 %v3792_v37, %v3607_v36  ;;  %v3573_v22 = vld [vmem:[%s8058_s3 + $0x44] sm:$0xf0] }
  0xb1   : > { %v394_v62 = vpop.f32.mrf.mxu0  ;;  %vm476_vm13 = vcmp.eq.f32.partialorder %v475_v33, 8.507059e+37 }
  0xb2   : > { %v454_v0 = vmul.f32 %v3831_v52, %v453_v58  ;;  %v4385_v1 = vadd.f32 %v4309_v6, %v394_v62  ;;  %893 = vmatpush.bf16.msrb.mxu2 %v3612_v8  ;;  %864 = vmatpush.bf16.msrb.mxu1 %v3608_v43 }
  0xb4   : > { %v3833_v3 = vpop.eup %3832  ;;  %v455_v4 = vadd.f32 %v3831_v52, %v454_v0  ;;  %v3541_v5 = vmul.f32 -1.442695, %v4385_v1 }
  0xb5   : > { %v4388_v7 = vpop.eup %3834  ;;  %v4390_v11 = vadd.f32 1.0, %v3833_v3  ;;  %v3776_v3 = vld [vmem:[%s8058_s3 + $0x14] sm:$0xf] }
  0xb6   : > { %v459_v12 = vsel %vm458_vm7, %v3831_v52, %v455_v4  ;;  %v467_v13 = vmul.f32 %v4388_v7, %v4375_v53  ;;  %3836 = vpow2.f32 %v3541_v5  ;;  %vm472_vm9 = vweird.f32 %v4388_v7  ;;  %v3565_v4 = vld [vmem:[%s8058_s3 + $0x3c] sm:$0xf0]  ;;  %v3782_v5 = vld [vmem:[%s8058_s3 + $0x40] sm:$0xf0] }
  0xb7   : > { %v464_v14 = vsel %vm461_vm8, %v463_v10, %v459_v12  ;;  %3838 = vrcp.f32 %v4390_v11  ;;  %vm4439_vm11 = vmor %vm471_vm10, %vm472_vm9  ;;  %v490_v39 = vand.u32 2147483647, %v4390_v11  ;;  %v492_v41 = vand.u32 2147483648, %v4390_v11 }
  0xb8   : > { %v557_v16 = vmul.f32 %v464_v14, %v4364_v34  ;;  %v468_v17 = vsub.f32 1.0, %v467_v13  ;;  %v477_v34 = vand.u32 2147483648, %v4375_v53  ;;  %vm486_vm14 = vweird.f32 %v4390_v11 }
  0xb9   : > { %v396_v18 = vpop.f32.mrf.mxu0  ;;  %v493_v54 = vor.u32 1.1754944e-38, %v492_v41  ;;  %vm491_vm1 = vcmp.eq.f32.partialorder %v490_v39, 8.507059e+37 }
  0xba   : > { %v4397_v19 = vpack.c.bf16 %v557_v16, %v556_v15  ;;  %v469_v20 = vmul.f32 %v4388_v7, %v468_v17  ;;  %v4401_v21 = vadd.f32 %v4309_v6, %v396_v18  ;;  %v478_v47 = vor.u32 1.1754944e-38, %v477_v34  ;;  %v3563_v15 = vld [vmem:[%s8058_s3 + $0x10] sm:$0xf]  ;;  %v3781_v16 = vld [vmem:[%s8058_s3 + $0x38] sm:$0xf0] }
  0xbb   : > { %v3564_v25 = vor.u32 %v3781_v16, %v3563_v15  ;;  %v3784_v16 = vld [vmem:[%s8058_s3 + $0x50] sm:$0xf0] }
  0xbc   : > { %v3837_v26 = vpop.eup %3836  ;;  %v3542_v27 = vmul.f32 -1.442695, %v4401_v21  ;;  %3633 = vmatmul.msk.bf16.vlgmr.msra.gmra.mxu1 %vm362_vm0, %v4397_v19  ;;  %3637 = vmatmul.msk.bf16.vlgmr.msra.gmra.mxu2 %vm362_vm0, %v4397_v19  ;;  %v470_v31 = vadd.f32 %v4388_v7, %v469_v20  ;;  %v3777_v20 = vld [vmem:[%s8058_s3 + $0x1c] sm:$0xf] }
  0xbd   : > { %v3839_v29 = vpop.eup %3838  ;;  %v4420_v30 = vadd.f32 1.0, %v3837_v26  ;;  %3641 = vmatmul.msk.bf16.vlgmr.msra.gmra.mxu3 %vm362_vm0, %v4397_v19  ;;  %3645 = vmatmul.msk.bf16.vlgmr.msrb.gmra.mxu0 %vm362_vm0, %v4397_v19  ;;  %v3576_v28 = vor.u32 %v3777_v20, %v3573_v22 }
  0xbe   : > { %v482_v32 = vmul.f32 %v3839_v29, %v4390_v11  ;;  %3840 = vpow2.f32 %v3542_v27  ;;  %v474_v44 = vsel %vm4439_vm11, %v4388_v7, %v470_v31  ;;  %vm487_vm12 = vweird.f32 %v3839_v29  ;;  %v3617_v11 = vld [vmem:[%s8058_s3 + $0x9c] sm:$0xf0]  ;;  %865 = vmatpush.bf16.msrb.mxu1 %v3564_v25 }
  0xbf   : > { %3842 = vrcp.f32 %v4420_v30  ;;  %v479_v53 = vsel %vm476_vm13, %v478_v47, %v474_v44  ;;  %vm488_vm15 = vmor %vm486_vm14, %vm487_vm12  ;;  %v507_v23 = vand.u32 2147483648, %v4420_v30  ;;  %vm501_vm3 = vweird.f32 %v4420_v30 }
  0xc0   : > { %v483_v35 = vsub.f32 1.0, %v482_v32  ;;  %v558_v59 = vmul.f32 %v479_v53, %v4368_v40  ;;  %v3568_v40 = vor.u32 %v3776_v3, %v3565_v4  ;;  %v505_v8 = vand.u32 2147483647, %v4420_v30 }
  0xc1   : > { %v399_v42 = vpop.f32.mrf.mxu0  ;;  %v508_v33 = vor.u32 1.1754944e-38, %v507_v23  ;;  %v592_v23 = vld [vmem:[%s8059_s4] sm:$0xff] }
  0xc2   : > { %v484_v45 = vmul.f32 %v3839_v29, %v483_v35  ;;  %v4449_v46 = vadd.f32 %v4309_v6, %v399_v42  ;;  %894 = vmatpush.bf16.msrb.mxu2 %v3568_v40  ;;  %vm506_vm6 = vcmp.eq.f32.partialorder %v505_v8, 8.507059e+37  ;;  %v4625_v8 = vperm.slane %v592_v23, 0 }
  0xc4   : > { %v3841_v48 = vpop.eup %3840  ;;  %v485_v50 = vadd.f32 %v3839_v29, %v484_v45  ;;  %v3543_v51 = vmul.f32 -1.442695, %v4449_v46 }
  0xc5   : > { %v4453_v52 = vpop.eup %3842  ;;  %v4455_v55 = vadd.f32 1.0, %v3841_v48 }
  0xc6   : > { %v489_v56 = vsel %vm488_vm15, %v3839_v29, %v485_v50  ;;  %v497_v57 = vmul.f32 %v4453_v52, %v4420_v30  ;;  %3844 = vpow2.f32 %v3543_v51  ;;  %vm502_vm2 = vweird.f32 %v4453_v52  ;;  %v3631_v51 = vld [vmem:[%s8058_s3 + $0x80] sm:$0xf] }
  0xc7   : > { %v494_v58 = vsel %vm491_vm1, %v493_v54, %v489_v56  ;;  %3846 = vrcp.f32 %v4455_v55  ;;  %vm4516_vm4 = vmor %vm501_vm3, %vm502_vm2  ;;  %v522_v27 = vand.u32 2147483648, %v4455_v55  ;;  %v520_v32 = vand.u32 2147483647, %v4455_v55  ;;  %v3623_v56 = vld [vmem:[%s8058_s3 + $0x78] sm:$0xf] }
  0xc8   : > { %v559_v60 = vmul.f32 %v494_v58, %v4372_v49  ;;  %v498_v61 = vsub.f32 1.0, %v497_v57  ;;  %v3571_v49 = vld [vmem:[%s8058_s3 + $0x18] sm:$0xf]  ;;  %vm516_vm7 = vweird.f32 %v4455_v55  ;;  %v3794_v57 = vld [vmem:[%s8058_s3 + $0xa0] sm:$0xf0] }
  0xc9   : > { %v401_v62 = vpop.f32.mrf.mxu0  ;;  %v3572_v10 = vor.u32 %v3782_v5, %v3571_v49  ;;  %v523_v37 = vor.u32 1.1754944e-38, %v522_v27  ;;  %vm521_vm9 = vcmp.eq.f32.partialorder %v520_v32, 8.507059e+37 }
  0xca   : > { %v4462_v63 = vpack.c.bf16 %v559_v60, %v558_v59  ;;  %v499_v0 = vmul.f32 %v4453_v52, %v498_v61  ;;  %v4466_v2 = vadd.f32 %v4309_v6, %v401_v62  ;;  %v3788_v6 = vld [vmem:[%s8058_s3 + $0x74] sm:$0xf]  ;;  %v3624_v60 = vor.u32 %v3794_v57, %v3623_v56 }
  0xcb   : > { %v3620_v14 = vor.u32 %v3788_v6, %v3617_v11  ;;  %923 = vmatpush.bf16.msrb.mxu3 %v3572_v10 }
  0xcc   : > { %v3845_v7 = vpop.eup %3844  ;;  %v3544_v9 = vmul.f32 -1.442695, %v4466_v2  ;;  %3634 = vmatmul.msk.bf16.gmra.mxu1 %vm362_vm0, %v4462_v63  ;;  %3638 = vmatmul.msk.bf16.gmra.mxu2 %vm362_vm0, %v4462_v63  ;;  %v500_v17 = vadd.f32 %v4453_v52, %v499_v0 }
  0xcd   : > { %v3847_v12 = vpop.eup %3846  ;;  %v4491_v13 = vadd.f32 1.0, %v3845_v7  ;;  %3642 = vmatmul.msk.bf16.gmra.mxu3 %vm362_vm0, %v4462_v63  ;;  %3646 = vmatmul.msk.bf16.gmra.mxu0 %vm362_vm0, %v4462_v63 }
  0xce   : > { %v512_v18 = vmul.f32 %v3847_v12, %v4455_v55  ;;  %3848 = vpow2.f32 %v3544_v9  ;;  %951 = vmatpush.bf16.msra.mxu0 %v3620_v14  ;;  %v504_v29 = vsel %vm4516_vm4, %v4453_v52, %v500_v17  ;;  %vm517_vm5 = vweird.f32 %v3847_v12  ;;  %v3795_v55 = vld [vmem:[%s8058_s3 + $0xa8] sm:$0xf0]  ;;  %980 = vmatpush.bf16.msra.mxu1 %v3624_v60  ;;  %v3587_v14 = vld [vmem:[%s8058_s3 + $0x28] sm:$0xf]  ;;  %v3579_v17 = vld [vmem:[%s8058_s3 + $0x20] sm:$0xf] }
  0xcf   : > { %3850 = vrcp.f32 %v4491_v13  ;;  %v509_v36 = vsel %vm506_vm6, %v508_v33, %v504_v29  ;;  %vm518_vm8 = vmor %vm516_vm7, %vm517_vm5  ;;  %v537_v58 = vand.u32 2147483648, %v4491_v13  ;;  %v3632_v59 = vor.u32 %v3795_v55, %v3631_v51 }
  0xd0   : > { %v513_v24 = vsub.f32 1.0, %v512_v18  ;;  %v560_v43 = vmul.f32 %v509_v36, %v4385_v1  ;;  %v3789_v1 = vld [vmem:[%s8058_s3 + $0x7c] sm:$0xf]  ;;  %vm531_vm11 = vweird.f32 %v4491_v13  ;;  %v535_v61 = vand.u32 2147483647, %v4491_v13 }
  0xd1   : > { %1038 = vmatpush.bf16.msra.mxu3 %v3632_v59  ;;  %v538_v49 = vor.u32 1.1754944e-38, %v537_v58  ;;  %v3783_v18 = vld [vmem:[%s8058_s3 + $0x48] sm:$0xf0]  ;;  %v3588_v20 = vor.u32 %v3784_v16, %v3587_v14  ;;  %v4645_v33 = vperm.slane %v592_v23, 2 }
  0xd2   : > { %v514_v31 = vmul.f32 %v3847_v12, %v513_v24  ;;  %952 = vmatpush.bf16.msra.mxu0 %v3576_v28  ;;  %vm536_vm14 = vcmp.eq.f32.partialorder %v535_v61, 8.507059e+37  ;;  %v3580_v22 = vor.u32 %v3783_v18, %v3579_v17  ;;  %v4627_v24 = vperm.slane %v592_v23, 3 }
  0xd4   : > { %v3849_v30 = vpop.eup %3848  ;;  %v515_v34 = vadd.f32 %v3847_v12, %v514_v31  ;;  %981 = vmatpush.bf16.msra.mxu1 %v3580_v22  ;;  %v4640_v31 = vperm.slane %v592_v23, 1 }
  0xd5   : > { %v3851_v35 = vpop.eup %3850  ;;  %v435_v38 = vadd.f32 1.0, %v3849_v30  ;;  %1039 = vmatpush.bf16.msra.mxu3 %v3588_v20 }
  0xd6   : > { %v519_v39 = vsel %vm518_vm8, %v3847_v12, %v515_v34  ;;  %v527_v41 = vmul.f32 %v3851_v35, %v4491_v13  ;;  %vm532_vm10 = vweird.f32 %v3851_v35 }
  0xd7   : > { %v524_v42 = vsel %vm521_vm9, %v523_v37, %v519_v39  ;;  %3852 = vrcp.f32 %v435_v38  ;;  %vm533_vm12 = vmor %vm531_vm11, %vm532_vm10  ;;  %v552_v0 = vand.u32 2147483648, %v435_v38  ;;  %v550_v40 = vand.u32 2147483647, %v435_v38 }
  0xd8   : > { %v561_v44 = vmul.f32 %v524_v42, %v4401_v21  ;;  %v528_v45 = vsub.f32 1.0, %v527_v41  ;;  %v3625_v21 = vld [vmem:[%s8058_s3 + $0xa4] sm:$0xf0]  ;;  %vm546_vm15 = vweird.f32 %v435_v38 }
  0xd9   : > { %v3628_v54 = vor.u32 %v3789_v1, %v3625_v21  ;;  %v553_v7 = vor.u32 1.1754944e-38, %v552_v0  ;;  %vm551_vm2 = vcmp.eq.f32.partialorder %v550_v40, 8.507059e+37 }
  0xda   : > { %v4529_v47 = vpack.c.bf16 %v561_v44, %v560_v43  ;;  %v529_v48 = vmul.f32 %v3851_v35, %v528_v45 }
  0xdb   : > { %1009 = vmatpush.bf16.msra.mxu2 %v3628_v54 }
  0xdc   : > { %3635 = vmatmul.msk.bf16.gmra.mxu1 %vm362_vm0, %v4529_v47  ;;  %3639 = vmatmul.msk.bf16.gmra.mxu2 %vm362_vm0, %v4529_v47  ;;  %v530_v52 = vadd.f32 %v3851_v35, %v529_v48 }
  0xdd   : > { %v3853_v50 = vpop.eup %3852  ;;  %3643 = vmatmul.msk.bf16.gmra.mxu3 %vm362_vm0, %v4529_v47  ;;  %3647 = vmatmul.msk.bf16.gmra.mxu0 %vm362_vm0, %v4529_v47 }
  0xde   : > { %v542_v53 = vmul.f32 %v3853_v50, %v435_v38  ;;  %v534_v3 = vsel %vm533_vm12, %v3851_v35, %v530_v52  ;;  %vm547_vm13 = vweird.f32 %v3853_v50 }
  0xdf   : > { %v539_v6 = vsel %vm536_vm14, %v538_v49, %v534_v3  ;;  %vm548_vm1 = vmor %vm546_vm15, %vm547_vm13 }
  0xe0   : > { %v543_v62 = vsub.f32 1.0, %v542_v53  ;;  %v562_v11 = vmul.f32 %v539_v6, %v4449_v46  ;;  %v3778_v46 = vld [vmem:[%s8058_s3 + $0x24] sm:$0xf] }
  0xe2   : > { %v544_v4 = vmul.f32 %v3853_v50, %v543_v62 }
  0xe4   : > { %v545_v5 = vadd.f32 %v3853_v50, %v544_v4 }
  0xe6   : > { %v549_v9 = vsel %vm548_vm1, %v3853_v50, %v545_v5 }
  0xe7   : > { %v554_v10 = vsel %vm551_vm2, %v553_v7, %v549_v9 }
  0xe8   : > { %v563_v12 = vmul.f32 %v554_v10, %v4466_v2  ;;  %v3581_v2 = vld [vmem:[%s8058_s3 + $0x4c] sm:$0xf0] }
  0xe9   : > { %v3584_v15 = vor.u32 %v3778_v46, %v3581_v2 }
  0xea   : > { %v4562_v13 = vpack.c.bf16 %v563_v12, %v562_v11 }
  0xeb   : > { %1010 = vmatpush.bf16.msra.mxu2 %v3584_v15 }
  0xec   : > { %3636 = vmatmul.msk.bf16.gmra.mxu1 %vm362_vm0, %v4562_v13  ;;  %3640 = vmatmul.msk.bf16.gmra.mxu2 %vm362_vm0, %v4562_v13 }
  0xed   : > { %3644 = vmatmul.msk.bf16.gmra.mxu3 %vm362_vm0, %v4562_v13  ;;  %3648 = vmatmul.msk.bf16.gmra.mxu0 %vm362_vm0, %v4562_v13 }
  0xfc   : > { %3649 = vmatmul.msk.bf16.vlgmr.msrb.gmra.mxu1 %vm362_vm0, %v4397_v19  ;;  %3653 = vmatmul.msk.bf16.vlgmr.msrb.gmra.mxu2 %vm362_vm0, %v4397_v19 }
  0xfd   : > { %3657 = vmatmul.msk.bf16.vlgmr.msrb.gmra.mxu3 %vm362_vm0, %v4397_v19  ;;  %3661 = vmatmul.msk.bf16.vlgmr.msra.gmra.mxu0 %vm362_vm0, %v4397_v19 }
 0x10c   : > { %3650 = vmatmul.msk.bf16.gmra.mxu1 %vm362_vm0, %v4462_v63  ;;  %3654 = vmatmul.msk.bf16.gmra.mxu2 %vm362_vm0, %v4462_v63 }
 0x10d   : > { %3658 = vmatmul.msk.bf16.gmra.mxu3 %vm362_vm0, %v4462_v63  ;;  %3662 = vmatmul.msk.bf16.gmra.mxu0 %vm362_vm0, %v4462_v63 }
 0x11c   : > { %3651 = vmatmul.msk.bf16.gmra.mxu1 %vm362_vm0, %v4529_v47  ;;  %3655 = vmatmul.msk.bf16.gmra.mxu2 %vm362_vm0, %v4529_v47 }
 0x11d   : > { %3659 = vmatmul.msk.bf16.gmra.mxu3 %vm362_vm0, %v4529_v47  ;;  %3663 = vmatmul.msk.bf16.gmra.mxu0 %vm362_vm0, %v4529_v47 }
 0x12c   : > { %3652 = vmatmul.msk.bf16.gmra.mxu1 %vm362_vm0, %v4562_v13  ;;  %3656 = vmatmul.msk.bf16.gmra.mxu2 %vm362_vm0, %v4562_v13 }
 0x12d   : > { %3660 = vmatmul.msk.bf16.gmra.mxu3 %vm362_vm0, %v4562_v13  ;;  %3664 = vmatmul.msk.bf16.gmra.mxu0 %vm362_vm0, %v4562_v13 }
 0x139   : > { %v751_v25 = vpop.f32.mrf.mxu1 }
 0x13a   : > { %v4630_v26 = vadd.f32 %v751_v25, %v4625_v8  ;;  %v838_v27 = vpop.f32.mrf.mxu0 }
 0x13b   : > { %v4633_v28 = vadd.f32 %v838_v27, %v4627_v24 }
 0x13c   : > { %v3677_v29 = vmul.f32 -1.442695, %v4630_v26  ;;  %3665 = vmatmul.msk.bf16.vlgmr.msra.gmra.mxu1 %vm362_vm0, %v4397_v19  ;;  %3669 = vmatmul.msk.bf16.vlgmr.msra.gmra.mxu2 %vm362_vm0, %v4397_v19 }
 0x13d   : > { %v3680_v32 = vmul.f32 -1.442695, %v4633_v28  ;;  %3673 = vmatmul.msk.bf16.vlgmr.msra.gmra.mxu3 %vm362_vm0, %v4397_v19 }
 0x13e   : > { %3854 = vpow2.f32 %v3677_v29 }
 0x13f   : > { %3856 = vpow2.f32 %v3680_v32  ;;  %v780_v30 = vpop.f32.mrf.mxu2 }
 0x140   : > { %v4648_v34 = vadd.f32 %v780_v30, %v4640_v31  ;;  %v809_v35 = vpop.f32.mrf.mxu3 }
 0x141   : > { %v4651_v36 = vadd.f32 %v809_v35, %v4645_v33  ;;  %v753_v37 = vpop.f32.mrf.mxu1 }
 0x142   : > { %v3678_v38 = vmul.f32 -1.442695, %v4648_v34  ;;  %v4655_v39 = vadd.f32 %v753_v37, %v4625_v8  ;;  %v840_v41 = vpop.f32.mrf.mxu0 }
 0x143   : > { %v3679_v19 = vmul.f32 -1.442695, %v4651_v36  ;;  %v4659_v42 = vadd.f32 %v840_v41, %v4627_v24 }
 0x144   : > { %v3855_v43 = vpop.eup %3854  ;;  %3858 = vpow2.f32 %v3678_v38  ;;  %v3688_v44 = vmul.f32 -1.442695, %v4655_v39 }
 0x145   : > { %v3857_v45 = vpop.eup %3856  ;;  %v4662_v48 = vadd.f32 1.0, %v3855_v43  ;;  %3860 = vpow2.f32 %v3679_v19  ;;  %v3691_v50 = vmul.f32 -1.442695, %v4659_v42 }
 0x146   : > { %v1328_v1 = vadd.f32 1.0, %v3857_v45  ;;  %3862 = vpow2.f32 %v3688_v44 }
 0x147   : > { %3864 = vrcp.f32 %v4662_v48  ;;  %v782_v21 = vpop.f32.mrf.mxu2  ;;  %v1424_v61 = vand.u32 2147483648, %v4662_v48  ;;  %vm1418_vm3 = vweird.f32 %v4662_v48  ;;  %v1422_v40 = vand.u32 2147483647, %v4662_v48 }
 0x148   : > { %3866 = vrcp.f32 %v1328_v1  ;;  %v4667_v51 = vadd.f32 %v782_v21, %v4640_v31  ;;  %v1467_v3 = vand.u32 2147483647, %v1328_v1  ;;  %vm1463_vm4 = vweird.f32 %v1328_v1 }
 0x149   : > { %3868 = vpow2.f32 %v3691_v50  ;;  %v756_v5 = vpop.f32.mrf.mxu1  ;;  %v1425_v10 = vor.u32 1.1754944e-38, %v1424_v61  ;;  %v1469_v11 = vand.u32 2147483648, %v1328_v1  ;;  %vm4713_vm6 = vcmp.eq.f32.partialorder %v1422_v40, 8.507059e+37 }
 0x14a   : > { %v3859_v52 = vpop.eup %3858  ;;  %v3689_v58 = vmul.f32 -1.442695, %v4667_v51  ;;  %v843_v12 = vpop.f32.mrf.mxu0  ;;  %vm4701_vm5 = vcmp.eq.f32.partialorder %v1467_v3, 8.507059e+37  ;;  %v4709_v16 = vadd.f32 %v756_v5, %v4625_v8 }
 0x14b   : > { %v3861_v53 = vpop.eup %3860  ;;  %v4669_v54 = vadd.f32 1.0, %v3859_v52  ;;  %v4727_v29 = vadd.f32 %v843_v12, %v4627_v24  ;;  %v1470_v30 = vor.u32 1.1754944e-38, %v1469_v11 }
 0x14c   : > { %v3863_v55 = vpop.eup %3862  ;;  %v4671_v56 = vadd.f32 1.0, %v3861_v53  ;;  %3666 = vmatmul.msk.bf16.gmra.mxu1 %vm362_vm0, %v4462_v63  ;;  %3670 = vmatmul.msk.bf16.gmra.mxu2 %vm362_vm0, %v4462_v63  ;;  %v3699_v43 = vmul.f32 -1.442695, %v4709_v16 }
 0x14d   : > { %v4677_v57 = vpop.eup %3864  ;;  %3870 = vrcp.f32 %v4669_v54  ;;  %3674 = vmatmul.msk.bf16.gmra.mxu3 %vm362_vm0, %v4462_v63  ;;  %v4692_v49 = vadd.f32 1.0, %v3863_v55  ;;  %v811_v63 = vpop.f32.mrf.mxu3  ;;  %v1439_v22 = vand.u32 2147483648, %v4669_v54  ;;  %vm1433_vm10 = vweird.f32 %v4669_v54 }
 0x14e   : > { %v4683_v59 = vpop.eup %3866  ;;  %v1414_v60 = vmul.f32 %v4677_v57, %v4662_v48  ;;  %3872 = vrcp.f32 %v4671_v56  ;;  %v4706_v15 = vadd.f32 %v811_v63, %v4645_v33  ;;  %v1454_v27 = vand.u32 2147483648, %v4671_v56 }
 0x14f   : > { %v3869_v62 = vpop.eup %3868  ;;  %v1459_v0 = vmul.f32 %v4683_v59, %v1328_v1  ;;  %3874 = vpow2.f32 %v3689_v58  ;;  %vm1464_vm7 = vweird.f32 %v4683_v59  ;;  %vm1419_vm8 = vweird.f32 %v4677_v57  ;;  %v785_v12 = vpop.f32.mrf.mxu2 }
 0x150   : > { %v1415_v4 = vsub.f32 1.0, %v1414_v60  ;;  %v4694_v7 = vadd.f32 1.0, %v3869_v62  ;;  %3876 = vrcp.f32 %v4692_v49  ;;  %vm4732_vm9 = vmor %vm1463_vm4, %vm1464_vm7  ;;  %v1437_v41 = vand.u32 2147483647, %v4669_v54 }
 0x151   : > { %v1460_v6 = vsub.f32 1.0, %v1459_v0  ;;  %v3690_v19 = vmul.f32 -1.442695, %v4706_v15  ;;  %v4745_v50 = vor.u32 1.1754944e-38, %v1439_v22  ;;  %v1452_v21 = vand.u32 2147483647, %v4671_v56  ;;  %vm4750_vm11 = vmor %vm1418_vm3, %vm1419_vm8  ;;  %v758_v18 = vpop.f32.mrf.mxu1 }
 0x152   : > { %v1416_v9 = vmul.f32 %v4677_v57, %v1415_v4  ;;  %3878 = vrcp.f32 %v4694_v7  ;;  %v4755_v55 = vor.u32 1.1754944e-38, %v1454_v27  ;;  %v1587_v48 = vand.u32 2147483647, %v4692_v49 }
 0x153   : > { %v4698_v46 = vpop.eup %3870  ;;  %v1461_v2 = vmul.f32 %v4683_v59, %v1460_v6  ;;  %v1589_v62 = vand.u32 2147483648, %v4692_v49  ;;  %vm4769_vm12 = vcmp.eq.f32.partialorder %v1437_v41, 8.507059e+37  ;;  %vm1448_vm13 = vweird.f32 %v4671_v56 }
 0x154   : > { %v4711_v17 = vpop.eup %3872  ;;  %v1429_v20 = vmul.f32 %v4698_v46, %v4669_v54  ;;  %v1417_v32 = vadd.f32 %v4677_v57, %v1416_v9  ;;  %vm1434_vm14 = vweird.f32 %v4698_v46  ;;  %vm1583_vm1 = vweird.f32 %v4692_v49 }
 0x155   : > { %v1462_v23 = vadd.f32 %v4683_v59, %v1461_v2  ;;  %v1444_v25 = vmul.f32 %v4711_v17, %v4671_v56  ;;  %v3875_v37 = vpop.eup %3874  ;;  %vm1449_vm15 = vweird.f32 %v4711_v17  ;;  %vm1628_vm2 = vweird.f32 %v4694_v7  ;;  %v814_v2 = vpop.f32.mrf.mxu3 }
 0x156   : > { %v1430_v35 = vsub.f32 1.0, %v1429_v20  ;;  %v4740_v44 = vpop.eup %3876  ;;  %v1421_v61 = vsel %vm4750_vm11, %v4677_v57, %v1417_v32  ;;  %v4765_v0 = vadd.f32 1.0, %v3875_v37  ;;  %v1634_v57 = vand.u32 2147483648, %v4694_v7 }
 0x157   : > { %v1466_v45 = vsel %vm4732_vm9, %v4683_v59, %v1462_v23  ;;  %v1445_v1 = vsub.f32 1.0, %v1444_v25  ;;  %v1579_v58 = vmul.f32 %v4740_v44, %v4692_v49  ;;  %v3702_v59 = vmul.f32 -1.442695, %v4727_v29  ;;  %v845_v25 = vpop.f32.mrf.mxu0 }
 0x158   : > { %v1431_v53 = vmul.f32 %v4698_v46, %v1430_v35  ;;  %v3879_v60 = vpop.eup %3878  ;;  %v1471_v3 = vsel %vm4701_vm5, %v1470_v30, %v1466_v45  ;;  %3880 = vrcp.f32 %v4765_v0  ;;  %v1426_v6 = vsel %vm4713_vm6, %v1425_v10, %v1421_v61  ;;  %vm4799_vm5 = vmor %vm1433_vm10, %vm1434_vm14 }
 0x159   : > { %v1580_v40 = vsub.f32 1.0, %v1579_v58  ;;  %v1624_v63 = vmul.f32 %v3879_v60, %v4694_v7  ;;  %v1446_v5 = vmul.f32 %v4711_v17, %v1445_v1  ;;  %v2736_v14 = vmul.f32 %v1471_v3, %v4633_v28  ;;  %vm4845_vm10 = vmor %vm1448_vm13, %vm1449_vm15 }
 0x15a   : > { %v1432_v9 = vadd.f32 %v4698_v46, %v1431_v53  ;;  %vm1584_vm3 = vweird.f32 %v4740_v44  ;;  %v1632_v22 = vand.u32 2147483647, %v4694_v7  ;;  %vm1629_vm4 = vweird.f32 %v3879_v60 }
 0x15b   : > { %v1625_v11 = vsub.f32 1.0, %v1624_v63  ;;  %v1581_v20 = vmul.f32 %v4740_v44, %v1580_v40  ;;  %v1635_v23 = vor.u32 1.1754944e-38, %v1634_v57  ;;  %3882 = vpow2.f32 %v3690_v19  ;;  %vm1630_vm8 = vmor %vm1628_vm2, %vm1629_vm4 }
 0x15c   : > { %3667 = vmatmul.msk.bf16.gmra.mxu1 %vm362_vm0, %v4529_v47  ;;  %3671 = vmatmul.msk.bf16.gmra.mxu2 %vm362_vm0, %v4529_v47  ;;  %v1447_v28 = vadd.f32 %v4711_v17, %v1446_v5  ;;  %3884 = vpow2.f32 %v3699_v43  ;;  %v4805_v27 = vadd.f32 %v785_v12, %v4640_v31  ;;  %v4808_v32 = vadd.f32 %v814_v2, %v4645_v33  ;;  %vm4857_vm11 = vmor %vm1583_vm1, %vm1584_vm3 }
 0x15d   : > { %3675 = vmatmul.msk.bf16.gmra.mxu3 %vm362_vm0, %v4529_v47  ;;  %v1626_v10 = vmul.f32 %v3879_v60, %v1625_v11  ;;  %v1436_v30 = vsel %vm4799_vm5, %v4698_v46, %v1432_v9  ;;  %vm4813_vm6 = vcmp.eq.f32.partialorder %v1452_v21, 8.507059e+37  ;;  %vm4817_vm7 = vcmp.eq.f32.partialorder %v1587_v48, 8.507059e+37 }
 0x15e   : > { %3886 = vpow2.f32 %v3702_v59  ;;  %v4822_v38 = vadd.f32 %v758_v18, %v4625_v8  ;;  %v4824_v41 = vpop.eup %3880  ;;  %v1582_v19 = vadd.f32 %v4740_v44, %v1581_v20  ;;  %v3700_v46 = vmul.f32 -1.442695, %v4805_v27 }
 0x15f   : > { %v1627_v37 = vadd.f32 %v3879_v60, %v1626_v10  ;;  %v3701_v43 = vmul.f32 -1.442695, %v4808_v32  ;;  %v4833_v45 = vadd.f32 %v845_v25, %v4627_v24  ;;  %vm1633_vm9 = vcmp.eq.f32.partialorder %v1632_v22, 8.507059e+37  ;;  %v816_v10 = vpop.f32.mrf.mxu3 }
 0x160   : > { %v1594_v21 = vmul.f32 %v4824_v41, %v4765_v0  ;;  %v1602_v52 = vand.u32 2147483647, %v4765_v0  ;;  %v1441_v53 = vsel %vm4769_vm12, %v4745_v50, %v1436_v30  ;;  %3888 = vpow2.f32 %v3700_v46 }
 0x161   : > { %v1631_v1 = vsel %vm1630_vm8, %v3879_v60, %v1627_v37  ;;  %v3710_v59 = vmul.f32 -1.442695, %v4822_v38  ;;  %v3883_v60 = vpop.eup %3882  ;;  %v1451_v61 = vsel %vm4845_vm10, %v4711_v17, %v1447_v28  ;;  %3890 = vpow2.f32 %v3701_v43 }
 0x162   : > { %v1636_v58 = vsel %vm1633_vm9, %v1635_v23, %v1631_v1  ;;  %v1595_v48 = vsub.f32 1.0, %v1594_v21  ;;  %v3885_v3 = vpop.eup %3884  ;;  %v1586_v4 = vsel %vm4857_vm11, %v4740_v44, %v1582_v19  ;;  %vm1599_vm12 = vweird.f32 %v4824_v41 }
 0x163   : > { %v2747_v56 = vmul.f32 %v1636_v58, %v4659_v42  ;;  %v4866_v17 = vadd.f32 1.0, %v3883_v60  ;;  %v3713_v40 = vmul.f32 -1.442695, %v4833_v45  ;;  %v4872_v9 = vadd.f32 1.0, %v3885_v3  ;;  %v848_v60 = vpop.f32.mrf.mxu0 }
 0x164   : > { %v3887_v63 = vpop.eup %3886  ;;  %v1596_v5 = vmul.f32 %v4824_v41, %v1595_v48  ;;  %3892 = vpow2.f32 %v3710_v59  ;;  %v4875_v42 = vmul.f32 %v1426_v6, %v4630_v26  ;;  %v1590_v44 = vor.u32 1.1754944e-38, %v1589_v62 }
 0x165   : > { %v4869_v57 = vadd.f32 %v2747_v56, %v2736_v14  ;;  %v1604_v11 = vand.u32 2147483648, %v4765_v0  ;;  %3894 = vrcp.f32 %v4866_v17  ;;  %v4882_v12 = vmul.f32 %v1441_v53, %v4648_v34  ;;  %v787_v14 = vpop.f32.mrf.mxu2 }
 0x166   : > { %v1597_v2 = vadd.f32 %v4824_v41, %v1596_v5  ;;  %vm1598_vm13 = vweird.f32 %v4765_v0  ;;  %3896 = vrcp.f32 %v4872_v9  ;;  %v3889_v20 = vpop.eup %3888  ;;  %v1456_v26 = vsel %vm4813_vm6, %v4755_v55, %v1451_v61 }
 0x167   : > { %v1591_v49 = vsel %vm4817_vm7, %v1590_v44, %v1586_v4  ;;  %vm4894_vm14 = vmor %vm1598_vm13, %vm1599_vm12  ;;  %v4898_v62 = vadd.f32 1.0, %v3887_v63  ;;  %3898 = vpow2.f32 %v3713_v40  ;;  %v3891_v0 = vpop.eup %3890  ;;  %vm4903_vm15 = vcmp.eq.f32.partialorder %v1602_v52, 8.507059e+37 }
 0x168   : > { %v1601_v6 = vsel %vm4894_vm14, %v4824_v41, %v1597_v2  ;;  %v1619_v55 = vand.u32 2147483648, %v4866_v17  ;;  %v4908_v18 = vadd.f32 1.0, %v3889_v20  ;;  %v1605_v23 = vor.u32 1.1754944e-38, %v1604_v11 }
 0x169   : > { %v1754_v25 = vand.u32 2147483648, %v4872_v9  ;;  %3900 = vrcp.f32 %v4898_v62  ;;  %v4913_v47 = vadd.f32 %v787_v14, %v4640_v31  ;;  %v4920_v30 = vmul.f32 %v1456_v26, %v4651_v36 }
 0x16a   : > { %v3893_v28 = vpop.eup %3892  ;;  %v4923_v35 = vmul.f32 %v1591_v49, %v4655_v39  ;;  %v1617_v54 = vand.u32 2147483647, %v4866_v17  ;;  %3902 = vrcp.f32 %v4908_v18  ;;  %v1606_v41 = vsel %vm4903_vm15, %v1605_v23, %v1601_v6 }
 0x16b   : > { %v4929_v37 = vpop.eup %3894  ;;  %v1752_v19 = vand.u32 2147483647, %v4872_v9  ;;  %v4934_v46 = vadd.f32 1.0, %v3891_v0  ;;  %v4937_v36 = vadd.f32 %v816_v10, %v4645_v33  ;;  %vm1613_vm1 = vweird.f32 %v4866_v17 }
 0x16c   : > { %3668 = vmatmul.msk.bf16.gmra.mxu1 %vm362_vm0, %v4562_v13  ;;  %3672 = vmatmul.msk.bf16.gmra.mxu2 %vm362_vm0, %v4562_v13  ;;  %v4939_v39 = vpop.eup %3896  ;;  %v1609_v43 = vmul.f32 %v4929_v37, %v4866_v17  ;;  %v1755_v52 = vor.u32 1.1754944e-38, %v1754_v25  ;;  %v1797_v53 = vand.u32 2147483647, %v4898_v62  ;;  %v4949_v7 = vmul.f32 -1.442695, %v4913_v47 }
 0x16d   : > { %3676 = vmatmul.msk.bf16.gmra.mxu3 %vm362_vm0, %v4562_v13  ;;  %v1620_v13 = vor.u32 1.1754944e-38, %v1619_v55  ;;  %vm1748_vm0 = vweird.f32 %v4872_v9  ;;  %v3899_v1 = vpop.eup %3898  ;;  %v1744_v21 = vmul.f32 %v4939_v39, %v4872_v9  ;;  %v4952_v58 = vmul.f32 %v1606_v41, %v4667_v51 }
 0x16e   : > { %v1610_v59 = vsub.f32 1.0, %v1609_v43  ;;  %vm4954_vm2 = vcmp.eq.f32.partialorder %v1617_v54, 8.507059e+37  ;;  %vm1793_vm3 = vweird.f32 %v4898_v62  ;;  %v1799_v61 = vand.u32 2147483648, %v4898_v62 }
 0x16f   : > { %3904 = vrcp.f32 %v4934_v46  ;;  %v3901_v50 = vpop.eup %3900  ;;  %v1745_v56 = vsub.f32 1.0, %v1744_v21  ;;  %vm4961_vm4 = vcmp.eq.f32.partialorder %v1752_v19, 8.507059e+37  ;;  %vm1763_vm5 = vweird.f32 %v4908_v18 }
 0x170   : > { %v1767_v51 = vand.u32 2147483647, %v4908_v18  ;;  %v1769_v3 = vand.u32 2147483648, %v4908_v18  ;;  %v4968_v4 = vadd.f32 1.0, %v3893_v28  ;;  %v3903_v40 = vpop.eup %3902  ;;  %v1611_v63 = vmul.f32 %v4929_v37, %v1610_v59 }
 0x171   : > { %vm1614_vm6 = vweird.f32 %v4929_v37  ;;  %v1789_v5 = vmul.f32 %v3901_v50, %v4898_v62  ;;  %v4973_v44 = vadd.f32 1.0, %v3899_v1  ;;  %v1746_v11 = vmul.f32 %v4939_v39, %v1745_v56 }
 0x172   : > { %vm1749_vm7 = vweird.f32 %v4939_v39  ;;  %vm4977_vm8 = vcmp.eq.f32.partialorder %v1797_v53, 8.507059e+37  ;;  %v1759_v14 = vmul.f32 %v3903_v40, %v4908_v18  ;;  %v1612_v20 = vadd.f32 %v4929_v37, %v1611_v63  ;;  %vm4986_vm9 = vmor %vm1613_vm1, %vm1614_vm6 }
 0x173   : > { %v1790_v26 = vsub.f32 1.0, %v1789_v5  ;;  %v1800_v49 = vor.u32 1.1754944e-38, %v1799_v61  ;;  %3906 = vrcp.f32 %v4968_v4  ;;  %v1747_v0 = vadd.f32 %v4939_v39, %v1746_v11  ;;  %vm5000_vm10 = vmor %vm1748_vm0, %vm1749_vm7 }
 0x174   : > { %v1760_v6 = vsub.f32 1.0, %v1759_v14  ;;  %v1782_v22 = vand.u32 2147483647, %v4934_v46  ;;  %v1784_v55 = vand.u32 2147483648, %v4934_v46  ;;  %v1616_v23 = vsel %vm4986_vm9, %v4929_v37, %v1612_v20  ;;  %v761_v37 = vpop.f32.mrf.mxu1 }
 0x175   : > { %v4993_v10 = vpop.eup %3904  ;;  %v1791_v25 = vmul.f32 %v3901_v50, %v1790_v26  ;;  %vm1794_vm11 = vweird.f32 %v3901_v50  ;;  %3908 = vrcp.f32 %v4973_v44  ;;  %v1751_v28 = vsel %vm5000_vm10, %v4939_v39, %v1747_v0 }
 0x176   : > { %v1761_v54 = vmul.f32 %v3903_v40, %v1760_v6  ;;  %vm1764_vm12 = vweird.f32 %v3903_v40  ;;  %v1774_v41 = vmul.f32 %v4993_v10, %v4934_v46  ;;  %vm5010_vm13 = vcmp.eq.f32.partialorder %v1767_v51, 8.507059e+37  ;;  %vm1795_vm15 = vmor %vm1793_vm3, %vm1794_vm11 }
 0x177   : > { %v1792_v19 = vadd.f32 %v3901_v50, %v1791_v25  ;;  %v1770_v43 = vor.u32 1.1754944e-38, %v1769_v3  ;;  %vm1778_vm14 = vweird.f32 %v4934_v46  ;;  %v1621_v1 = vsel %vm4954_vm2, %v1620_v13, %v1616_v23  ;;  %vm1765_vm0 = vmor %vm1763_vm5, %vm1764_vm12  ;;  %v790_v46 = vpop.f32.mrf.mxu2 }
 0x178   : > { %v1762_v39 = vadd.f32 %v3903_v40, %v1761_v54  ;;  %v1775_v21 = vsub.f32 1.0, %v1774_v41  ;;  %vm5019_vm1 = vcmp.eq.f32.partialorder %v1782_v22, 8.507059e+37  ;;  %v1785_v59 = vor.u32 1.1754944e-38, %v1784_v55  ;;  %v819_v55 = vpop.f32.mrf.mxu3 }
 0x179   : > { %v5023_v61 = vpop.eup %3906  ;;  %v1756_v56 = vsel %vm4961_vm4, %v1755_v52, %v1751_v28  ;;  %v1796_v51 = vsel %vm1795_vm15, %v3901_v50, %v1792_v19  ;;  %v1917_v62 = vand.u32 2147483647, %v4968_v4  ;;  %v1919_v13 = vand.u32 2147483648, %v4968_v4 }
 0x17a   : > { %v1801_v3 = vsel %vm4977_vm8, %v1800_v49, %v1796_v51  ;;  %v1766_v63 = vsel %vm1765_vm0, %v3903_v40, %v1762_v39  ;;  %v1776_v5 = vmul.f32 %v4993_v10, %v1775_v21  ;;  %vm1779_vm2 = vweird.f32 %v4993_v10  ;;  %v850_v39 = vpop.f32.mrf.mxu0 }
 0x17b   : > { %v3909_v48 = vpop.eup %3908  ;;  %v2746_v52 = vmul.f32 %v1621_v1, %v4706_v15  ;;  %v2758_v50 = vmul.f32 %v1801_v3, %v4727_v29  ;;  %v1909_v18 = vmul.f32 %v5023_v61, %v4968_v4  ;;  %vm1913_vm3 = vweird.f32 %v4968_v4  ;;  %vm5049_vm4 = vmor %vm1778_vm14, %vm1779_vm2 }
 0x17c   : > { %v2755_v11 = vmul.f32 %v1756_v56, %v4709_v16  ;;  %v1771_v2 = vsel %vm5010_vm13, %v1770_v43, %v1766_v63  ;;  %v1777_v40 = vadd.f32 %v4993_v10, %v1776_v5  ;;  %v1954_v14 = vmul.f32 %v3909_v48, %v4973_v44  ;;  %v763_v25 = vpop.f32.mrf.mxu1 }
 0x17d   : > { %v2863_v20 = vadd.f32 %v4869_v57, %v2758_v50  ;;  %v1910_v29 = vsub.f32 1.0, %v1909_v18  ;;  %v1920_v26 = vor.u32 1.1754944e-38, %v1919_v13  ;;  %vm1958_vm5 = vweird.f32 %v4973_v44 }
 0x17e   : > { %v1781_v16 = vsel %vm5049_vm4, %v4993_v10, %v1777_v40  ;;  %vm1914_vm6 = vweird.f32 %v5023_v61  ;;  %vm5058_vm7 = vcmp.eq.f32.partialorder %v1917_v62, 8.507059e+37  ;;  %v1955_v57 = vsub.f32 1.0, %v1954_v14 }
 0x17f   : > { %3910 = vpow2.f32 %v4949_v7  ;;  %v2756_v34 = vmul.f32 %v1771_v2, %v4805_v27  ;;  %v1911_v0 = vmul.f32 %v5023_v61, %v1910_v29  ;;  %v1962_v6 = vand.u32 2147483647, %v4973_v44  ;;  %vm5084_vm9 = vmor %vm1913_vm3, %vm1914_vm6  ;;  %v792_v18 = vpop.f32.mrf.mxu2 }
 0x180   : > { %v1964_v22 = vand.u32 2147483648, %v4973_v44  ;;  %v1956_v10 = vmul.f32 %v3909_v48, %v1955_v57  ;;  %vm1959_vm8 = vweird.f32 %v3909_v48  ;;  %v3712_v23 = vmul.f32 -1.442695, %v4937_v36 }
 0x181   : > { %v5069_v17 = vadd.f32 %v761_v37, %v4625_v8  ;;  %v1786_v7 = vsel %vm5019_vm1, %v1785_v59, %v1781_v16  ;;  %v1912_v27 = vadd.f32 %v5023_v61, %v1911_v0  ;;  %v5075_v28 = vadd.f32 %v848_v60, %v4627_v24  ;;  %vm1960_vm10 = vmor %vm1958_vm5, %vm1959_vm8 }
 0x182   : > { %v5078_v54 = vadd.f32 %v790_v46, %v4640_v31  ;;  %v1957_v37 = vadd.f32 %v3909_v48, %v1956_v10  ;;  %3912 = vpow2.f32 %v3712_v23  ;;  %v5090_v9 = vadd.f32 %v819_v55, %v4645_v33 }
 0x183   : > { %v3721_v19 = vmul.f32 -1.442695, %v5069_v17  ;;  %vm1963_vm11 = vcmp.eq.f32.partialorder %v1962_v6, 8.507059e+37  ;;  %v1965_v43 = vor.u32 1.1754944e-38, %v1964_v22  ;;  %v3724_v1 = vmul.f32 -1.442695, %v5075_v28 }
 0x184   : > { %v3722_v4 = vmul.f32 -1.442695, %v5078_v54  ;;  %v1916_v53 = vsel %vm5084_vm9, %v5023_v61, %v1912_v27  ;;  %v1961_v59 = vsel %vm1960_vm10, %v3909_v48, %v1957_v37  ;;  %v5100_v56 = vadd.f32 %v763_v25, %v4625_v8 }
 0x185   : > { %v3911_v21 = vpop.eup %3910  ;;  %3914 = vpow2.f32 %v3721_v19  ;;  %v2757_v44 = vmul.f32 %v1786_v7, %v4808_v32  ;;  %v1966_v51 = vsel %vm1963_vm11, %v1965_v43, %v1961_v59  ;;  %v3723_v60 = vmul.f32 -1.442695, %v5090_v9 }
 0x186   : > { %v5103_v62 = vadd.f32 1.0, %v3911_v21  ;;  %3916 = vpow2.f32 %v3724_v1  ;;  %v2769_v13 = vmul.f32 %v1966_v51, %v4833_v45  ;;  %v5108_v3 = vadd.f32 %v850_v39, %v4627_v24 }
 0x187   : > { %3918 = vpow2.f32 %v3722_v4  ;;  %v2823_v61 = vadd.f32 %v4923_v35, %v4875_v42  ;;  %v1921_v63 = vsel %vm5058_vm7, %v1920_v26, %v1916_v53  ;;  %v2836_v5 = vadd.f32 %v4952_v58, %v4882_v12  ;;  %v821_v35 = vpop.f32.mrf.mxu3 }
 0x188   : > { %3920 = vrcp.f32 %v5103_v62  ;;  %v3913_v32 = vpop.eup %3912  ;;  %v2849_v45 = vadd.f32 %v2746_v52, %v4920_v30  ;;  %v5118_v48 = vadd.f32 %v2863_v20, %v2769_v13  ;;  %v3732_v50 = vmul.f32 -1.442695, %v5100_v56  ;;  %v766_v30 = vpop.f32.mrf.mxu1 }
 0x189   : > { %v2824_v2 = vadd.f32 %v2823_v61, %v2755_v11  ;;  %v5121_v40 = vadd.f32 1.0, %v3913_v32  ;;  %v3735_v42 = vmul.f32 -1.442695, %v5108_v3  ;;  %v5124_v15 = vadd.f32 %v2836_v5, %v2756_v34 }
 0x18a   : > { %v5126_v29 = vadd.f32 %v2849_v45, %v2757_v44  ;;  %v2766_v12 = vmul.f32 %v1921_v63, %v4822_v38  ;;  %3922 = vpow2.f32 %v3723_v60  ;;  %v1932_v52 = vand.u32 2147483647, %v5103_v62 }
 0x18b   : > { %v3915_v14 = vpop.eup %3914  ;;  %v1934_v20 = vand.u32 2147483648, %v5103_v62  ;;  %3924 = vrcp.f32 %v5121_v40  ;;  %v5133_v11 = vadd.f32 %v792_v18, %v4640_v31  ;;  %v5140_v38 = vadd.f32 %v821_v35, %v4645_v33 }
 0x18c   : > { %v3917_v58 = vpop.eup %3916  ;;  %v5135_v16 = vadd.f32 1.0, %v3915_v14  ;;  %3926 = vpow2.f32 %v3732_v50  ;;  %v1949_v46 = vand.u32 2147483648, %v5121_v40  ;;  %v5148_v0 = vadd.f32 %v766_v30, %v4625_v8 }
 0x18d   : > { %v3919_v26 = vpop.eup %3918  ;;  %v5137_v49 = vadd.f32 1.0, %v3917_v58  ;;  %3928 = vpow2.f32 %v3735_v42  ;;  %v5150_v6 = vadd.f32 %v2824_v2, %v2766_v12  ;;  %v1947_v55 = vand.u32 2147483647, %v5121_v40  ;;  %v795_v58 = vpop.f32.mrf.mxu2 }
 0x18e   : > { %v5142_v57 = vpop.eup %3920  ;;  %v5145_v34 = vadd.f32 1.0, %v3919_v26  ;;  %3930 = vrcp.f32 %v5135_v16  ;;  %vm1928_vm12 = vweird.f32 %v5103_v62  ;;  %v1935_v10 = vor.u32 1.1754944e-38, %v1934_v20 }
 0x18f   : > { %v1924_v22 = vmul.f32 %v5142_v57, %v5103_v62  ;;  %3932 = vrcp.f32 %v5137_v49  ;;  %v5159_v23 = vmul.f32 -1.442695, %v5133_v11  ;;  %vm5161_vm13 = vcmp.eq.f32.partialorder %v1932_v52, 8.507059e+37 }
 0x190   : > { %v3923_v25 = vpop.eup %3922  ;;  %v2084_v41 = vand.u32 2147483648, %v5135_v16  ;;  %3934 = vrcp.f32 %v5145_v34  ;;  %v5168_v37 = vmul.f32 -1.442695, %v5140_v38  ;;  %vm1943_vm14 = vweird.f32 %v5121_v40 }
 0x191   : > { %v1925_v7 = vsub.f32 1.0, %v1924_v22  ;;  %v3925_v19 = vpop.eup %3924  ;;  %v1950_v43 = vor.u32 1.1754944e-38, %v1949_v46  ;;  %v2082_v1 = vand.u32 2147483647, %v5135_v16  ;;  %v5173_v4 = vmul.f32 -1.442695, %v5148_v0 }
 0x192   : > { %v3927_v39 = vpop.eup %3926  ;;  %vm1929_vm15 = vweird.f32 %v5142_v57  ;;  %v1939_v53 = vmul.f32 %v3925_v19, %v5121_v40  ;;  %vm5178_vm1 = vcmp.eq.f32.partialorder %v1947_v55, 8.507059e+37  ;;  %v2127_v44 = vand.u32 2147483647, %v5137_v49 }
 0x193   : > { %v1926_v21 = vmul.f32 %v5142_v57, %v1925_v7  ;;  %v3929_v51 = vpop.eup %3928  ;;  %vm2078_vm0 = vweird.f32 %v5135_v16  ;;  %v2129_v13 = vand.u32 2147483648, %v5137_v49  ;;  %v2097_v60 = vand.u32 2147483647, %v5145_v34  ;;  %vm5194_vm3 = vmor %vm1928_vm12, %vm1929_vm15 }
 0x194   : > { %v5186_v61 = vadd.f32 1.0, %v3923_v25  ;;  %v3931_v63 = vpop.eup %3930  ;;  %v1940_v5 = vsub.f32 1.0, %v1939_v53  ;;  %v2085_v45 = vor.u32 1.1754944e-38, %v2084_v41  ;;  %vm2123_vm2 = vweird.f32 %v5137_v49 }
 0x195   : > { %v1927_v32 = vadd.f32 %v5142_v57, %v1926_v21  ;;  %v3933_v50 = vpop.eup %3932  ;;  %vm1944_vm4 = vweird.f32 %v3925_v19  ;;  %v2074_v2 = vmul.f32 %v3931_v63, %v5135_v16  ;;  %vm5199_vm5 = vcmp.eq.f32.partialorder %v2082_v1, 8.507059e+37 }
 0x196   : > { %vm2093_vm6 = vweird.f32 %v5145_v34  ;;  %v2099_v35 = vand.u32 2147483648, %v5145_v34  ;;  %3936 = vrcp.f32 %v5186_v61  ;;  %v3935_v14 = vpop.eup %3934  ;;  %v1941_v12 = vmul.f32 %v3925_v19, %v1940_v5  ;;  %vm1945_vm10 = vmor %vm1943_vm14, %vm1944_vm4 }
 0x197   : > { %v1931_v62 = vsel %vm5194_vm3, %v5142_v57, %v1927_v32  ;;  %v2119_v30 = vmul.f32 %v3933_v50, %v5137_v49  ;;  %vm5210_vm7 = vcmp.eq.f32.partialorder %v2127_v44, 8.507059e+37  ;;  %v5214_v52 = vadd.f32 1.0, %v3927_v39 }
 0x198   : > { %v2075_v20 = vsub.f32 1.0, %v2074_v2  ;;  %v2130_v26 = vor.u32 1.1754944e-38, %v2129_v13  ;;  %v2089_v46 = vmul.f32 %v3935_v14, %v5145_v34  ;;  %vm5217_vm8 = vcmp.eq.f32.partialorder %v2097_v60, 8.507059e+37 }
 0x199   : > { %v1942_v55 = vadd.f32 %v3925_v19, %v1941_v12  ;;  %vm2079_vm9 = vweird.f32 %v3931_v63  ;;  %v2120_v57 = vsub.f32 1.0, %v2119_v30  ;;  %v5221_v25 = vadd.f32 1.0, %v3929_v51  ;;  %v853_v12 = vpop.f32.mrf.mxu0 }
 0x19a   : > { %v1936_v7 = vsel %vm5161_vm13, %v1935_v10, %v1931_v62  ;;  %v2076_v41 = vmul.f32 %v3931_v63, %v2075_v20  ;;  %v2090_v1 = vsub.f32 1.0, %v2089_v46  ;;  %v2100_v39 = vor.u32 1.1754944e-38, %v2099_v35  ;;  %vm2080_vm13 = vmor %vm2078_vm0, %vm2079_vm9 }
 0x19b   : > { %v1946_v21 = vsel %vm1945_vm10, %v3925_v19, %v1942_v55  ;;  %v2121_v53 = vmul.f32 %v3933_v50, %v2120_v57  ;;  %vm2124_vm11 = vweird.f32 %v3933_v50  ;;  %3938 = vrcp.f32 %v5214_v52 }
 0x19c   : > { %v3937_v44 = vpop.eup %3936  ;;  %v1951_v51 = vsel %vm5178_vm1, %v1950_v43, %v1946_v21  ;;  %v2077_v13 = vadd.f32 %v3931_v63, %v2076_v41  ;;  %v2091_v60 = vmul.f32 %v3935_v14, %v2090_v1  ;;  %vm2094_vm12 = vweird.f32 %v3935_v14  ;;  %vm2125_vm14 = vmor %vm2123_vm2, %vm2124_vm11 }
 0x19d   : > { %v2767_v10 = vmul.f32 %v1936_v7, %v4913_v47  ;;  %v2768_v40 = vmul.f32 %v1951_v51, %v4937_v36  ;;  %v2122_v27 = vadd.f32 %v3933_v50, %v2121_v53  ;;  %v2104_v19 = vmul.f32 %v3937_v44, %v5186_v61  ;;  %vm2095_vm15 = vmor %vm2093_vm6, %vm2094_vm12 }
 0x19e   : > { %v2081_v32 = vsel %vm2080_vm13, %v3931_v63, %v2077_v13  ;;  %v2092_v59 = vadd.f32 %v3935_v14, %v2091_v60  ;;  %v2112_v43 = vand.u32 2147483647, %v5186_v61  ;;  %v2114_v5 = vand.u32 2147483648, %v5186_v61 }
 0x19f   : > { %v2851_v47 = vadd.f32 %v5126_v29, %v2768_v40  ;;  %v2086_v36 = vsel %vm5199_vm5, %v2085_v45, %v2081_v32  ;;  %v2126_v18 = vsel %vm2125_vm14, %v3933_v50, %v2122_v27  ;;  %v2105_v16 = vsub.f32 1.0, %v2104_v19 }
 0x1a0   : > { %v2777_v63 = vmul.f32 %v2086_v36, %v5069_v17  ;;  %v2131_v49 = vsel %vm5210_vm7, %v2130_v26, %v2126_v18  ;;  %v2096_v2 = vsel %vm2095_vm15, %v3935_v14, %v2092_v59  ;;  %vm2108_vm1 = vweird.f32 %v5186_v61 }
 0x1a1   : > { %v3939_v35 = vpop.eup %3938  ;;  %v2780_v62 = vmul.f32 %v2131_v49, %v5075_v28  ;;  %v2101_v29 = vsel %vm5217_vm8, %v2100_v39, %v2096_v2  ;;  %v2106_v45 = vmul.f32 %v3937_v44, %v2105_v16  ;;  %vm2109_vm0 = vweird.f32 %v3937_v44  ;;  %v855_v27 = vpop.f32.mrf.mxu0 }
 0x1a2   : > { %v2838_v34 = vadd.f32 %v5124_v15, %v2767_v10  ;;  %v2826_v50 = vadd.f32 %v5150_v6, %v2777_v63  ;;  %v2778_v17 = vmul.f32 %v2101_v29, %v5078_v54  ;;  %v2239_v42 = vmul.f32 %v3939_v35, %v5214_v52  ;;  %vm2110_vm3 = vmor %vm2108_vm1, %vm2109_vm0 }
 0x1a3   : > { %v5258_v14 = vadd.f32 %v5118_v48, %v2780_v62  ;;  %v2107_v30 = vadd.f32 %v3937_v44, %v2106_v45  ;;  %vm2113_vm2 = vcmp.eq.f32.partialorder %v2112_v43, 8.507059e+37  ;;  %v2115_v28 = vor.u32 1.1754944e-38, %v2114_v5  ;;  %v824_v48 = vpop.f32.mrf.mxu3  ;;  %v797_v43 = vpop.f32.mrf.mxu2 }
 0x1a4   : > { %v5260_v20 = vadd.f32 %v2838_v34, %v2778_v17  ;;  %v2240_v15 = vsub.f32 1.0, %v2239_v42  ;;  %v2247_v6 = vand.u32 2147483647, %v5214_v52  ;;  %3940 = vrcp.f32 %v5221_v25 }
 0x1a5   : > { %v2111_v54 = vsel %vm2110_vm3, %v3937_v44, %v2107_v30  ;;  %vm2244_vm4 = vweird.f32 %v3939_v35  ;;  %v2249_v26 = vand.u32 2147483648, %v5214_v52  ;;  %3942 = vpow2.f32 %v5159_v23 }
 0x1a6   : > { %v2116_v46 = vsel %vm2113_vm2, %v2115_v28, %v2111_v54  ;;  %v2241_v22 = vmul.f32 %v3939_v35, %v2240_v15  ;;  %3944 = vpow2.f32 %v5168_v37  ;;  %v5270_v55 = vadd.f32 %v853_v12, %v4627_v24 }
 0x1a7   : > { %v2779_v61 = vmul.f32 %v2116_v46, %v5090_v9  ;;  %vm2243_vm5 = vweird.f32 %v5214_v52  ;;  %3946 = vpow2.f32 %v5173_v4  ;;  %v5277_v41 = vadd.f32 %v795_v58, %v4640_v31  ;;  %v768_v9 = vpop.f32.mrf.mxu1 }
 0x1a8   : > { %v2242_v57 = vadd.f32 %v3939_v35, %v2241_v22  ;;  %v3746_v7 = vmul.f32 -1.442695, %v5270_v55  ;;  %v5280_v23 = vadd.f32 %v824_v48, %v4645_v33  ;;  %vm2245_vm6 = vmor %vm2243_vm5, %vm2244_vm4  ;;  %vm2248_vm7 = vcmp.eq.f32.partialorder %v2247_v6, 8.507059e+37 }
 0x1a9   : > { %v5282_v1 = vadd.f32 %v2851_v47, %v2779_v61  ;;  %v2250_v37 = vor.u32 1.1754944e-38, %v2249_v26  ;;  %v3744_v4 = vmul.f32 -1.442695, %v5277_v41  ;;  %v5292_v40 = vadd.f32 %v768_v9, %v4625_v8 }
 0x1aa   : > { %v3941_v39 = vpop.eup %3940  ;;  %v2246_v52 = vsel %vm2245_vm6, %v3939_v35, %v2242_v57  ;;  %3948 = vpow2.f32 %v3746_v7  ;;  %v3745_v21 = vmul.f32 -1.442695, %v5280_v23  ;;  %v2292_v47 = vand.u32 2147483647, %v5221_v25 }
 0x1ab   : > { %v3943_v53 = vpop.eup %3942  ;;  %v2251_v44 = vsel %vm2248_vm7, %v2250_v37, %v2246_v52  ;;  %v2284_v51 = vmul.f32 %v3941_v39, %v5221_v25  ;;  %3950 = vpow2.f32 %v3744_v4  ;;  %v2294_v36 = vand.u32 2147483648, %v5221_v25 }
 0x1ac   : > { %v3945_v13 = vpop.eup %3944  ;;  %v2788_v60 = vmul.f32 %v2251_v44, %v5100_v56  ;;  %v5289_v10 = vadd.f32 1.0, %v3943_v53  ;;  %3952 = vpow2.f32 %v3745_v21  ;;  %vm2289_vm8 = vweird.f32 %v3941_v39 }
 0x1ad   : > { %v3947_v19 = vpop.eup %3946  ;;  %v2285_v32 = vsub.f32 1.0, %v2284_v51  ;;  %v5294_v59 = vadd.f32 1.0, %v3945_v13  ;;  %v5303_v8 = vadd.f32 %v855_v27, %v4627_v24  ;;  %vm2288_vm9 = vweird.f32 %v5221_v25 }
 0x1ae   : > { %v5296_v5 = vadd.f32 %v2826_v50, %v2788_v60  ;;  %3954 = vrcp.f32 %v5289_v10  ;;  %v5306_v16 = vadd.f32 1.0, %v3947_v19  ;;  %v3754_v63 = vmul.f32 -1.442695, %v5292_v40  ;;  %vm2290_vm10 = vmor %vm2288_vm9, %vm2289_vm8 }
 0x1af   : > { %v2286_v56 = vmul.f32 %v3941_v39, %v2285_v32  ;;  %3956 = vrcp.f32 %v5294_v59  ;;  %v5310_v49 = vadd.f32 %v797_v43, %v4640_v31  ;;  %v2262_v35 = vand.u32 2147483647, %v5289_v10 }
 0x1b0   : > { %v3949_v18 = vpop.eup %3948  ;;  %v2264_v62 = vand.u32 2147483648, %v5289_v10  ;;  %v2295_v24 = vor.u32 1.1754944e-38, %v2294_v36  ;;  %v2277_v34 = vand.u32 2147483647, %v5294_v59  ;;  %v2279_v25 = vand.u32 2147483648, %v5294_v59 }
 0x1b1   : > { %v2287_v2 = vadd.f32 %v3941_v39, %v2286_v56  ;;  %v5314_v29 = vadd.f32 1.0, %v3949_v18  ;;  %v3951_v45 = vpop.eup %3950  ;;  %3958 = vrcp.f32 %v5306_v16  ;;  %vm2293_vm11 = vcmp.eq.f32.partialorder %v2292_v47, 8.507059e+37 }
 0x1b2   : > { %v3953_v50 = vpop.eup %3952  ;;  %v3757_v31 = vmul.f32 -1.442695, %v5303_v8  ;;  %vm2258_vm12 = vweird.f32 %v5289_v10  ;;  %vm2273_vm13 = vweird.f32 %v5294_v59  ;;  %v5324_v30 = vmul.f32 -1.442695, %v5310_v49 }
 0x1b3   : > { %v2291_v17 = vsel %vm2290_vm10, %v3941_v39, %v2287_v2  ;;  %3960 = vrcp.f32 %v5314_v29  ;;  %vm5328_vm14 = vcmp.eq.f32.partialorder %v2262_v35, 8.507059e+37  ;;  %v2265_v54 = vor.u32 1.1754944e-38, %v2264_v62 }
 0x1b4   : > { %v3955_v42 = vpop.eup %3954  ;;  %v2296_v12 = vsel %vm2293_vm11, %v2295_v24, %v2291_v17  ;;  %3962 = vpow2.f32 %v3754_v63  ;;  %vm5333_vm15 = vcmp.eq.f32.partialorder %v2277_v34, 8.507059e+37  ;;  %v2280_v46 = vor.u32 1.1754944e-38, %v2279_v25 }
 0x1b5   : > { %v3957_v28 = vpop.eup %3956  ;;  %v2791_v58 = vmul.f32 %v2296_v12, %v5108_v3  ;;  %v2254_v15 = vmul.f32 %v3955_v42, %v5289_v10  ;;  %v2412_v22 = vand.u32 2147483647, %v5306_v16  ;;  %vm2408_vm1 = vweird.f32 %v5306_v16 }
 0x1b6   : > { %v2269_v26 = vmul.f32 %v3957_v28, %v5294_v59  ;;  %v2414_v57 = vand.u32 2147483648, %v5306_v16  ;;  %v5343_v7 = vadd.f32 1.0, %v3951_v45  ;;  %vm2453_vm0 = vweird.f32 %v5314_v29 }
 0x1b7   : > { %v5339_v61 = vadd.f32 %v5258_v14, %v2791_v58  ;;  %v2255_v3 = vsub.f32 1.0, %v2254_v15  ;;  %v3959_v37 = vpop.eup %3958  ;;  %v2457_v39 = vand.u32 2147483647, %v5314_v29  ;;  %v5347_v52 = vadd.f32 1.0, %v3953_v50 }
 0x1b8   : > { %v2270_v9 = vsub.f32 1.0, %v2269_v26  ;;  %vm2259_vm2 = vweird.f32 %v3955_v42  ;;  %v2404_v14 = vmul.f32 %v3959_v37, %v5306_v16  ;;  %3964 = vrcp.f32 %v5343_v7 }
 0x1b9   : > { %v3961_v4 = vpop.eup %3960  ;;  %v2256_v21 = vmul.f32 %v3955_v42, %v2255_v3  ;;  %vm2274_vm3 = vweird.f32 %v3957_v28  ;;  %v2459_v51 = vand.u32 2147483648, %v5314_v29  ;;  %vm5353_vm4 = vcmp.eq.f32.partialorder %v2412_v22, 8.507059e+37  ;;  %vm2260_vm5 = vmor %vm2258_vm12, %vm2259_vm2 }
 0x1ba   : > { %v2271_v53 = vmul.f32 %v3957_v28, %v2270_v9  ;;  %v2449_v44 = vmul.f32 %v3961_v4, %v5314_v29  ;;  %v3963_v13 = vpop.eup %3962  ;;  %v2405_v27 = vsub.f32 1.0, %v2404_v14  ;;  %v2415_v32 = vor.u32 1.1754944e-38, %v2414_v57  ;;  %vm2275_vm7 = vmor %vm2273_vm13, %vm2274_vm3 }
 0x1bb   : > { %v2257_v60 = vadd.f32 %v3955_v42, %v2256_v21  ;;  %vm5359_vm6 = vcmp.eq.f32.partialorder %v2457_v39, 8.507059e+37  ;;  %3966 = vrcp.f32 %v5347_v52  ;;  %vm2409_vm8 = vweird.f32 %v3959_v37 }
 0x1bc   : > { %v2272_v43 = vadd.f32 %v3957_v28, %v2271_v53  ;;  %v2450_v47 = vsub.f32 1.0, %v2449_v44  ;;  %v2406_v18 = vmul.f32 %v3959_v37, %v2405_v27  ;;  %3968 = vpow2.f32 %v3757_v31  ;;  %vm2410_vm10 = vmor %vm2408_vm1, %vm2409_vm8 }
 0x1bd   : > { %v2261_v56 = vsel %vm2260_vm5, %v3955_v42, %v2257_v60  ;;  %vm2454_vm9 = vweird.f32 %v3961_v4  ;;  %v2460_v34 = vor.u32 1.1754944e-38, %v2459_v51  ;;  %v5375_v17 = vadd.f32 1.0, %v3963_v13 }
 0x1be   : > { %v2266_v63 = vsel %vm5328_vm14, %v2265_v54, %v2261_v56  ;;  %v2276_v10 = vsel %vm2275_vm7, %v3957_v28, %v2272_v43  ;;  %v2451_v2 = vmul.f32 %v3961_v4, %v2450_v47  ;;  %v3965_v35 = vpop.eup %3964  ;;  %v2407_v24 = vadd.f32 %v3959_v37, %v2406_v18  ;;  %vm2455_vm11 = vmor %vm2453_vm0, %vm2454_vm9  ;;  %v4206_v47 = vld [vmem:[%s8059_s4] sm:$0xff] }
 0x1bf   : > { %v2789_v62 = vmul.f32 %v2266_v63, %v5133_v11  ;;  %v2281_v45 = vsel %vm5333_vm15, %v2280_v46, %v2276_v10  ;;  %v2419_v50 = vmul.f32 %v3965_v35, %v5343_v7  ;;  %vm2423_vm12 = vweird.f32 %v5343_v7 }
 0x1c0   : > { %v2790_v59 = vmul.f32 %v2281_v45, %v5140_v38  ;;  %v2452_v25 = vadd.f32 %v3961_v4, %v2451_v2  ;;  %v2411_v42 = vsel %vm2410_vm10, %v3959_v37, %v2407_v24  ;;  %v2429_v11 = vand.u32 2147483648, %v5343_v7 }
 0x1c1   : > { %v2840_v31 = vadd.f32 %v5260_v20, %v2789_v62  ;;  %v3967_v12 = vpop.eup %3966  ;;  %v2416_v16 = vsel %vm5353_vm4, %v2415_v32, %v2411_v42  ;;  %v2420_v58 = vsub.f32 1.0, %v2419_v50  ;;  %v2427_v29 = vand.u32 2147483647, %v5343_v7 }
 0x1c2   : > { %v2853_v38 = vadd.f32 %v5282_v1, %v2790_v59  ;;  %v2456_v28 = vsel %vm2455_vm11, %v3961_v4, %v2452_v25  ;;  %v3969_v15 = vpop.eup %3968  ;;  %v2799_v6 = vmul.f32 %v2416_v16, %v5148_v0  ;;  %v2434_v54 = vmul.f32 %v3967_v12, %v5347_v52  ;;  %v826_v1 = vpop.f32.mrf.mxu3 }
 0x1c3   : > { %v2461_v20 = vsel %vm5359_vm6, %v2460_v34, %v2456_v28  ;;  %v2421_v48 = vmul.f32 %v3965_v35, %v2420_v58  ;;  %vm2424_vm13 = vweird.f32 %v3965_v35  ;;  %3970 = vrcp.f32 %v5375_v17  ;;  %v896_v16 = vpop.f32.mrf.mxu2 }
 0x1c4   : > { %v2802_v26 = vmul.f32 %v2461_v20, %v5270_v55  ;;  %v5393_v46 = vadd.f32 %v5296_v5, %v2799_v6  ;;  %v2430_v22 = vor.u32 1.1754944e-38, %v2429_v11  ;;  %v2435_v3 = vsub.f32 1.0, %v2434_v54  ;;  %vm2425_vm14 = vmor %vm2423_vm12, %vm2424_vm13 }
 0x1c5   : > { %v2444_v0 = vand.u32 2147483648, %v5347_v52  ;;  %v2422_v37 = vadd.f32 %v3965_v35, %v2421_v48  ;;  %v5399_v9 = vadd.f32 1.0, %v3969_v15  ;;  %3972 = vpow2.f32 %v5324_v30 }
 0x1c6   : > { %v5397_v57 = vadd.f32 %v5339_v61, %v2802_v26  ;;  %v2436_v55 = vmul.f32 %v3967_v12, %v2435_v3  ;;  %vm2439_vm15 = vweird.f32 %v3967_v12  ;;  %v2442_v5 = vand.u32 2147483647, %v5347_v52 }
 0x1c7   : > { %v5406_v39 = vadd.f32 %v826_v1, %v4645_v33  ;;  %v2426_v4 = vsel %vm2425_vm14, %v3965_v35, %v2422_v37  ;;  %vm2428_vm1 = vcmp.eq.f32.partialorder %v2427_v29, 8.507059e+37  ;;  %3974 = vrcp.f32 %v5399_v9  ;;  %v954_v35 = vpop.f32.mrf.mxu0 }
 0x1c8   : > { %v2431_v61 = vsel %vm2428_vm1, %v2430_v22, %v2426_v4  ;;  %v2437_v21 = vadd.f32 %v3967_v12, %v2436_v55  ;;  %vm2438_vm0 = vweird.f32 %v5347_v52  ;;  %v2445_v53 = vor.u32 1.1754944e-38, %v2444_v0  ;;  %v867_v52 = vpop.f32.mrf.mxu1 }
 0x1c9   : > { %v3756_v30 = vmul.f32 -1.442695, %v5406_v39  ;;  %v3971_v14 = vpop.eup %3970  ;;  %v2800_v7 = vmul.f32 %v2431_v61, %v5277_v41  ;;  %vm2440_vm2 = vmor %vm2438_vm0, %vm2439_vm15  ;;  %vm2443_vm3 = vcmp.eq.f32.partialorder %v2442_v5, 8.507059e+37  ;;  %v2577_v51 = vand.u32 2147483647, %v5375_v17 }
 0x1ca   : > { %v2441_v44 = vsel %vm2440_vm2, %v3967_v12, %v2437_v21  ;;  %v2569_v33 = vmul.f32 %v3971_v14, %v5375_v17  ;;  %v2579_v19 = vand.u32 2147483648, %v5375_v17  ;;  %v5423_v36 = vperm.slane %v4206_v47, 4 }
 0x1cb   : > { %v3973_v13 = vpop.eup %3972  ;;  %v5414_v60 = vadd.f32 %v2840_v31, %v2800_v7  ;;  %v2446_v27 = vsel %vm2443_vm3, %v2445_v53, %v2441_v44  ;;  %3976 = vpow2.f32 %v3756_v30  ;;  %v5425_v18 = vperm.slane %v4206_v47, 7 }
 0x1cc   : > { %v2801_v32 = vmul.f32 %v2446_v27, %v5280_v23  ;;  %v2570_v43 = vsub.f32 1.0, %v2569_v33  ;;  %v5418_v41 = vadd.f32 1.0, %v3973_v13  ;;  %vm2574_vm4 = vweird.f32 %v3971_v14 }
 0x1cd   : > { %v3975_v56 = vpop.eup %3974  ;;  %vm2573_vm5 = vweird.f32 %v5375_v17  ;;  %vm5431_vm6 = vcmp.eq.f32.partialorder %v2577_v51, 8.507059e+37  ;;  %v2580_v45 = vor.u32 1.1754944e-38, %v2579_v19  ;;  %v5437_v34 = vadd.f32 %v867_v52, %v5423_v36 }
 0x1ce   : > { %v5427_v63 = vadd.f32 %v2853_v38, %v2801_v32  ;;  %v2571_v10 = vmul.f32 %v3971_v14, %v2570_v43  ;;  %v2614_v2 = vmul.f32 %v3975_v56, %v5399_v9  ;;  %3978 = vrcp.f32 %v5418_v41  ;;  %vm2575_vm7 = vmor %vm2573_vm5, %vm2574_vm4 }
 0x1cf   : > { %v2622_v25 = vand.u32 2147483647, %v5399_v9  ;;  %v2624_v50 = vand.u32 2147483648, %v5399_v9  ;;  %v5442_v17 = vadd.f32 %v954_v35, %v5425_v18  ;;  %v5444_v31 = vperm.slane %v4206_v47, 5 }
 0x1d0   : > { %v2572_v62 = vadd.f32 %v3971_v14, %v2571_v10  ;;  %v2615_v24 = vsub.f32 1.0, %v2614_v2  ;;  %vm2619_vm8 = vweird.f32 %v3975_v56  ;;  %vm2618_vm9 = vweird.f32 %v5399_v9  ;;  %v869_v54 = vpop.f32.mrf.mxu1 }
 0x1d1   : > { %v3977_v59 = vpop.eup %3976  ;;  %v3681_v15 = vmul.f32 -1.442695, %v5437_v34  ;;  %vm2620_vm10 = vmor %vm2618_vm9, %vm2619_vm8  ;;  %vm2623_vm11 = vcmp.eq.f32.partialorder %v2622_v25, 8.507059e+37  ;;  %v2625_v20 = vor.u32 1.1754944e-38, %v2624_v50  ;;  %v3684_v29 = vmul.f32 -1.442695, %v5442_v17 }
 0x1d2   : > { %v2576_v42 = vsel %vm2575_vm7, %v3971_v14, %v2572_v62  ;;  %v2616_v11 = vmul.f32 %v3975_v56, %v2615_v24  ;;  %v5446_v12 = vadd.f32 1.0, %v3977_v59  ;;  %v5458_v22 = vadd.f32 %v896_v16, %v5444_v31 }
 0x1d3   : > { %v2581_v38 = vsel %vm5431_vm6, %v2580_v45, %v2576_v42  ;;  %v5462_v37 = vadd.f32 %v869_v54, %v5423_v36  ;;  %v2592_v9 = vand.u32 2147483647, %v5418_v41  ;;  %v2594_v55 = vand.u32 2147483648, %v5418_v41  ;;  %v956_v45 = vpop.f32.mrf.mxu0 }
 0x1d4   : > { %v2810_v28 = vmul.f32 %v2581_v38, %v5292_v40  ;;  %v2617_v58 = vadd.f32 %v3975_v56, %v2616_v11  ;;  %3980 = vrcp.f32 %v5446_v12  ;;  %v3979_v6 = vpop.eup %3978  ;;  %v3682_v61 = vmul.f32 -1.442695, %v5458_v22 }
 0x1d5   : > { %v2584_v1 = vmul.f32 %v3979_v6, %v5418_v41  ;;  %3982 = vpow2.f32 %v3681_v15  ;;  %vm2589_vm12 = vweird.f32 %v3979_v6  ;;  %vm2588_vm13 = vweird.f32 %v5418_v41 }
 0x1d6   : > { %v2829_v26 = vadd.f32 %v5393_v46, %v2810_v28  ;;  %v2621_v48 = vsel %vm2620_vm10, %v3975_v56, %v2617_v58  ;;  %3984 = vpow2.f32 %v3684_v29  ;;  %v5470_v21 = vperm.slane %v4206_v47, 6  ;;  %vm2590_vm14 = vmor %vm2588_vm13, %vm2589_vm12 }
 0x1d7   : > { %v2626_v40 = vsel %vm2623_vm11, %v2625_v20, %v2621_v48  ;;  %v2585_v0 = vsub.f32 1.0, %v2584_v1  ;;  %v3692_v53 = vmul.f32 -1.442695, %v5462_v37  ;;  %vm2593_vm15 = vcmp.eq.f32.partialorder %v2592_v9, 8.507059e+37  ;;  %v898_v1 = vpop.f32.mrf.mxu2 }
 0x1d8   : > { %v2813_v3 = vmul.f32 %v2626_v40, %v5303_v8  ;;  %v2830_v30 = vrot.slane %v2829_v26, 4  ;;  %v2595_v44 = vor.u32 1.1754944e-38, %v2594_v55  ;;  %v2607_v27 = vand.u32 2147483647, %v5446_v12 }
 0x1d9   : > { %v2586_v4 = vmul.f32 %v3979_v6, %v2585_v0  ;;  %v2609_v19 = vand.u32 2147483648, %v5446_v12  ;;  %3986 = vpow2.f32 %v3682_v61  ;;  %vm2603_vm0 = vweird.f32 %v5446_v12 }
 0x1da   : > { %v3981_v46 = vpop.eup %3980  ;;  %v2868_v5 = vadd.f32 %v5397_v57, %v2813_v3  ;;  %v925_v57 = vpop.f32.mrf.mxu3  ;;  %v2831_v47 = vadd.f32 %v2830_v30, %v2829_v26  ;;  %3988 = vpow2.f32 %v3692_v53  ;;  %vm2608_vm3 = vcmp.eq.f32.partialorder %v2607_v27, 8.507059e+37 }
 0x1db   : > { %v2599_v8 = vmul.f32 %v3981_v46, %v5446_v12  ;;  %v2587_v7 = vadd.f32 %v3979_v6, %v2586_v4  ;;  %v3983_v51 = vpop.eup %3982  ;;  %vm2604_vm1 = vweird.f32 %v3981_v46  ;;  %v5477_v10 = vadd.f32 %v925_v57, %v5470_v21 }
 0x1dc   : > { %v2869_v14 = vrot.slane %v2868_v5, 4  ;;  %v3985_v52 = vpop.eup %3984  ;;  %vm2605_vm2 = vmor %vm2603_vm0, %vm2604_vm1  ;;  %v2610_v23 = vor.u32 1.1754944e-38, %v2609_v19  ;;  %v5481_v62 = vadd.f32 1.0, %v3983_v51  ;;  %v2832_v50 = vrot.slane %v2831_v47, 2  ;;  %v872_v51 = vpop.f32.mrf.mxu1 }
 0x1dd   : > { %v2600_v33 = vsub.f32 1.0, %v2599_v8  ;;  %v2591_v13 = vsel %vm2590_vm14, %v3979_v6, %v2587_v7  ;;  %v5483_v25 = vadd.f32 1.0, %v3985_v52  ;;  %v3683_v38 = vmul.f32 -1.442695, %v5477_v10 }
 0x1de   : > { %v2870_v32 = vadd.f32 %v2869_v14, %v2868_v5  ;;  %v2596_v43 = vsel %vm2593_vm15, %v2595_v44, %v2591_v13  ;;  %3990 = vrcp.f32 %v5481_v62  ;;  %v2833_v20 = vadd.f32 %v2832_v50, %v2831_v47 }
 0x1df   : > { %v2601_v41 = vmul.f32 %v3981_v46, %v2600_v33  ;;  %v2811_v56 = vmul.f32 %v2596_v43, %v5310_v49  ;;  %v3987_v49 = vpop.eup %3986  ;;  %3992 = vrcp.f32 %v5483_v25  ;;  %v5505_v5 = vadd.f32 %v898_v1, %v5444_v31 }
 0x1e0   : > { %v2871_v24 = vrot.slane %v2870_v32, 2  ;;  %v3989_v16 = vpop.eup %3988  ;;  %v5493_v6 = vadd.f32 1.0, %v3987_v49  ;;  %3994 = vpow2.f32 %v3683_v38  ;;  %vm2986_vm4 = vcmask 1040384  }
 0x1e1   : > { %v2602_v2 = vadd.f32 %v3981_v46, %v2601_v41  ;;  %v2842_v35 = vadd.f32 %v5414_v60, %v2811_v56  ;;  %v5488_v60 = vadd.f32 %v956_v45, %v5425_v18  ;;  %v5495_v26 = vadd.f32 1.0, %v3989_v16  ;;  %v901_v16 = vpop.f32.mrf.mxu2 }
 0x1e2   : > { %v2872_v58 = vadd.f32 %v2871_v24, %v2870_v32  ;;  %3996 = vrcp.f32 %v5493_v6  ;;  %v927_v8 = vpop.f32.mrf.mxu3  ;;  %v3693_v19 = vmul.f32 -1.442695, %v5505_v5  ;;  %vm2988_vm5 = vcmask 1042434  }
 0x1e3   : > { %v2606_v59 = vsel %vm2605_vm2, %v3981_v46, %v2602_v2  ;;  %v2843_v42 = vrot.slane %v2842_v35, 4  ;;  %3998 = vrcp.f32 %v5495_v26  ;;  %vm2990_vm6 = vcmask 1041408  }
 0x1e4   : > { %v2611_v11 = vsel %vm2608_vm3, %v2610_v23, %v2606_v59  ;;  %v2873_v40 = vrot.slane %v2872_v58, 1  ;;  %v5499_v0 = vpop.eup %3990  ;;  %v5525_v24 = vadd.f32 %v927_v8, %v5470_v21  ;;  %v5528_v59 = vadd.f32 %v872_v51, %v5423_v36 }
 0x1e5   : > { %v2812_v12 = vmul.f32 %v2611_v11, %v5406_v39  ;;  %v2844_v28 = vadd.f32 %v2843_v42, %v2842_v35  ;;  %v3695_v39 = vmul.f32 -1.442695, %v5488_v60  ;;  %v5502_v55 = vpop.eup %3992  ;;  %v1474_v7 = vmul.f32 %v5499_v0, %v5481_v62  ;;  %v959_v42 = vpop.f32.mrf.mxu0 }
 0x1e6   : > { %v3995_v4 = vpop.eup %3994  ;;  %v2874_v30 = vadd.f32 %v2873_v40, %v2872_v58  ;;  %v1519_v33 = vmul.f32 %v5502_v55, %v5483_v25  ;;  %v1484_v49 = vand.u32 2147483648, %v5481_v62  ;;  %vm1478_vm7 = vweird.f32 %v5481_v62 }
 0x1e7   : > { %v2855_v15 = vadd.f32 %v5427_v63, %v2812_v12  ;;  %v2845_v29 = vrot.slane %v2844_v28, 2  ;;  %v2834_v63 = vrot.slane %v2833_v20, 1  ;;  %4000 = vpow2.f32 %v3695_v39 }
 0x1e8   : > { %v5511_v57 = vadd.f32 1.0, %v3995_v4  ;;  %v5513_v13 = vpop.eup %3996  ;;  %v2979_v41 = vrot.slane %v2874_v30, 5  ;;  %v1475_v56 = vsub.f32 1.0, %v1474_v7  ;;  %v1520_v2 = vsub.f32 1.0, %v1519_v33 }
 0x1e9   : > { %v2856_v54 = vrot.slane %v2855_v15, 4  ;;  %v2846_v48 = vadd.f32 %v2845_v29, %v2844_v28  ;;  %v2835_v53 = vadd.f32 %v2834_v63, %v2833_v20  ;;  %v5516_v52 = vpop.eup %3998  ;;  %v1489_v35 = vmul.f32 %v5513_v13, %v5493_v6 }
 0x1ea   : > { %4002 = vrcp.f32 %v5511_v57  ;;  %v1639_v50 = vmul.f32 %v5516_v52, %v5495_v26  ;;  %v1482_v38 = vand.u32 2147483647, %v5481_v62  ;;  %v3694_v12 = vmul.f32 -1.442695, %v5525_v24  ;;  %v930_v29 = vpop.f32.mrf.mxu3 }
 0x1eb   : > { %v2857_v3 = vadd.f32 %v2856_v54, %v2855_v15  ;;  %v2847_v9 = vrot.slane %v2846_v48, 1  ;;  %4004 = vpow2.f32 %v3693_v19  ;;  %v1476_v58 = vmul.f32 %v5499_v0, %v1475_v56 }
 0x1ec   : > { %v1521_v15 = vmul.f32 %v5502_v55, %v1520_v2  ;;  %v1527_v20 = vand.u32 2147483647, %v5483_v25  ;;  %v1490_v54 = vsub.f32 1.0, %v1489_v35  ;;  %v3703_v39 = vmul.f32 -1.442695, %v5528_v59 }
 0x1ed   : > { %v2858_v46 = vrot.slane %v2857_v3, 2  ;;  %v2848_v61 = vadd.f32 %v2847_v9, %v2846_v48  ;;  %v4001_v43 = vpop.eup %4000  ;;  %v5546_v48 = vadd.f32 %v959_v42, %v5425_v18  ;;  %v1485_v40 = vor.u32 1.1754944e-38, %v1484_v49 }
 0x1ee   : > { %v5522_v23 = vadd.f32 1.0, %v4001_v43  ;;  %v1640_v63 = vsub.f32 1.0, %v1639_v50  ;;  %v5552_v9 = vadd.f32 %v901_v16, %v5444_v31  ;;  %vm1479_vm8 = vweird.f32 %v5499_v0 }
 0x1ef   : > { %v2859_v14 = vadd.f32 %v2858_v46, %v2857_v3  ;;  %v2977_v44 = vrot.slane %v2848_v61, 7  ;;  %v1529_v3 = vand.u32 2147483648, %v5483_v25  ;;  %v874_v46 = vpop.f32.mrf.mxu1  ;;  %vm5555_vm9 = vcmp.eq.f32.partialorder %v1482_v38, 8.507059e+37  ;;  %vm5588_vm13 = vmor %vm1478_vm7, %vm1479_vm8 }
 0x1f0   : > { %4006 = vrcp.f32 %v5522_v23  ;;  %v5548_v1 = vpop.eup %4002  ;;  %vm1523_vm10 = vweird.f32 %v5483_v25  ;;  %v3706_v8 = vmul.f32 -1.442695, %v5546_v48  ;;  %v5562_v30 = vadd.f32 %v930_v29, %v5470_v21 }
 0x1f1   : > { %v2860_v27 = vrot.slane %v2859_v14, 1  ;;  %v2987_v32 = vsel %vm2986_vm4, %v2835_v53, %v2977_v44  ;;  %4008 = vpow2.f32 %v3694_v12  ;;  %v4005_v4 = vpop.eup %4004  ;;  %v1477_v7 = vadd.f32 %v5499_v0, %v1476_v58 }
 0x1f2   : > { %v1522_v53 = vadd.f32 %v5502_v55, %v1521_v15  ;;  %vm1524_vm11 = vweird.f32 %v5502_v55  ;;  %vm5569_vm12 = vcmp.eq.f32.partialorder %v1527_v20, 8.507059e+37  ;;  %v5573_v33 = vadd.f32 1.0, %v4005_v4 }
 0x1f3   : > { %v2861_v47 = vadd.f32 %v2860_v27, %v2859_v14  ;;  %v1491_v51 = vmul.f32 %v5513_v13, %v1490_v54  ;;  %4010 = vpow2.f32 %v3703_v39  ;;  %v3704_v27 = vmul.f32 -1.442695, %v5552_v9  ;;  %vm5603_vm14 = vmor %vm1523_vm10, %vm1524_vm11 }
 0x1f4   : > { %v5578_v19 = vadd.f32 %v874_v46, %v5423_v36  ;;  %v1504_v43 = vmul.f32 %v5548_v1, %v5511_v57  ;;  %4012 = vrcp.f32 %v5573_v33  ;;  %v1497_v2 = vand.u32 2147483647, %v5493_v6 }
 0x1f5   : > { %v2978_v45 = vrot.slane %v2861_v47, 6  ;;  %4014 = vpow2.f32 %v3706_v8  ;;  %v1481_v49 = vsel %vm5588_vm13, %v5499_v0, %v1477_v7  ;;  %vm1493_vm15 = vweird.f32 %v5493_v6 }
 0x1f6   : > { %v5564_v14 = vpop.eup %4006  ;;  %vm1494_vm1 = vweird.f32 %v5513_v13  ;;  %v1499_v50 = vand.u32 2147483648, %v5493_v6  ;;  %v1526_v42 = vsel %vm5603_vm14, %v5502_v55, %v1522_v53  ;;  %v1492_v0 = vadd.f32 %v5513_v13, %v1491_v51 }
 0x1f7   : > { %v2989_v11 = vsel %vm2988_vm5, %v2978_v45, %v2979_v41  ;;  %v1641_v41 = vmul.f32 %v5516_v52, %v1640_v63  ;;  %v4009_v47 = vpop.eup %4008  ;;  %v1684_v35 = vmul.f32 %v5564_v14, %v5522_v23  ;;  %v3705_v45 = vmul.f32 -1.442695, %v5562_v30  ;;  %vm5632_vm3 = vmor %vm1493_vm15, %vm1494_vm1 }
 0x1f8   : > { %v5539_v28 = vsel %vm2990_vm6, %v2987_v32, %v2989_v11  ;;  %v1530_v32 = vor.u32 1.1754944e-38, %v1529_v3  ;;  %4016 = vpow2.f32 %v3704_v27  ;;  %v3714_v11 = vmul.f32 -1.442695, %v5578_v19 }
 0x1f9   : > { %v1505_v25 = vsub.f32 1.0, %v1504_v43  ;;  %v1642_v38 = vadd.f32 %v5516_v52, %v1641_v41  ;;  %vm1644_vm0 = vweird.f32 %v5516_v52  ;;  %v5617_v12 = vadd.f32 1.0, %v4009_v47  ;;  %v4011_v16 = vpop.eup %4010 }
 0x1fa   : > { %vm5619_vm2 = vcmp.eq.f32.partialorder %v1497_v2, 8.507059e+37  ;;  %v1649_v15 = vand.u32 2147483648, %v5495_v26  ;;  %v1685_v55 = vsub.f32 1.0, %v1684_v35  ;;  %4018 = vpow2.f32 %v3705_v45  ;;  %v5624_v20 = vpop.eup %4012 }
 0x1fb   : > { %v1486_v29 = vsel %vm5555_vm9, %v1485_v40, %v1481_v49  ;;  %v1500_v39 = vor.u32 1.1754944e-38, %v1499_v50  ;;  %vm1643_vm5 = vweird.f32 %v5495_v26  ;;  %v1647_v3 = vand.u32 2147483647, %v5495_v26  ;;  %v4015_v63 = vpop.eup %4014 }
 0x1fc   : > { %v1531_v46 = vsel %vm5569_vm12, %v1530_v32, %v1526_v42  ;;  %v1496_v40 = vsel %vm5632_vm3, %v5513_v13, %v1492_v0  ;;  %v1512_v4 = vand.u32 2147483647, %v5511_v57  ;;  %vm5646_vm7 = vmor %vm1643_vm5, %vm1644_vm0  ;;  %4020 = vpow2.f32 %v3714_v11 }
 0x1fd   : > { %v1506_v61 = vmul.f32 %v5548_v1, %v1505_v25  ;;  %v1646_v26 = vsel %vm5646_vm7, %v5516_v52, %v1642_v38  ;;  %v1654_v8 = vmul.f32 %v5624_v20, %v5573_v33  ;;  %4022 = vrcp.f32 %v5617_v12 }
 0x1fe   : > { %v4017_v13 = vpop.eup %4016  ;;  %v2737_v7 = vmul.f32 %v1486_v29, %v5437_v34  ;;  %v1650_v53 = vor.u32 1.1754944e-38, %v1649_v15  ;;  %v1686_v44 = vmul.f32 %v5564_v14, %v1685_v55  ;;  %v5659_v51 = vadd.f32 1.0, %v4011_v16 }
 0x1ff   : > { %v5662_v27 = vmul.f32 %v1531_v46, %v5442_v17  ;;  %vm1508_vm8 = vweird.f32 %v5511_v57  ;;  %vm1648_vm9 = vcmp.eq.f32.partialorder %v1647_v3, 8.507059e+37  ;;  %v5665_v52 = vadd.f32 1.0, %v4015_v63 }
 0x200   : > { %v4019_v32 = vpop.eup %4018  ;;  %v1501_v43 = vsel %vm5619_vm2, %v1500_v39, %v1496_v40  ;;  %vm5669_vm10 = vcmp.eq.f32.partialorder %v1512_v4, 8.507059e+37  ;;  %v1514_v34 = vand.u32 2147483648, %v5511_v57  ;;  %v1651_v47 = vsel %vm1648_vm9, %v1650_v53, %v1646_v26  ;;  %v903_v40 = vpop.f32.mrf.mxu2 }
 0x201   : > { %v1507_v56 = vadd.f32 %v5548_v1, %v1506_v61  ;;  %vm1509_vm11 = vweird.f32 %v5548_v1  ;;  %v1655_v17 = vsub.f32 1.0, %v1654_v8  ;;  %v5676_v2 = vadd.f32 1.0, %v4017_v13 }
 0x202   : > { %v4021_v35 = vpop.eup %4020  ;;  %v1687_v45 = vadd.f32 %v5564_v14, %v1686_v44  ;;  %vm1689_vm12 = vweird.f32 %v5564_v14  ;;  %v1692_v49 = vand.u32 2147483647, %v5522_v23  ;;  %4024 = vrcp.f32 %v5659_v51  ;;  %vm5694_vm13 = vmor %vm1508_vm8, %vm1509_vm11 }
 0x203   : > { %v5682_v62 = vpop.eup %4022  ;;  %v2748_v50 = vmul.f32 %v1651_v47, %v5462_v37  ;;  %v1694_v42 = vand.u32 2147483648, %v5522_v23  ;;  %4026 = vrcp.f32 %v5665_v52  ;;  %v5687_v0 = vadd.f32 1.0, %v4019_v32 }
 0x204   : > { %v5690_v11 = vmul.f32 %v1501_v43, %v5458_v22  ;;  %vm1688_vm14 = vweird.f32 %v5522_v23  ;;  %v1662_v38 = vand.u32 2147483647, %v5573_v33  ;;  %4028 = vrcp.f32 %v5676_v2  ;;  %v961_v23 = vpop.f32.mrf.mxu0 }
 0x205   : > { %v1511_v37 = vsel %vm5694_vm13, %v5548_v1, %v1507_v56  ;;  %v1515_v16 = vor.u32 1.1754944e-38, %v1514_v34  ;;  %vm5706_vm15 = vmor %vm1688_vm14, %vm1689_vm12  ;;  %v1656_v57 = vmul.f32 %v5624_v20, %v1655_v17  ;;  %v5711_v58 = vadd.f32 1.0, %v4021_v35 }
 0x206   : > { %v1691_v15 = vsel %vm5706_vm15, %v5564_v14, %v1687_v45  ;;  %vm1693_vm1 = vcmp.eq.f32.partialorder %v1692_v49, 8.507059e+37  ;;  %v1664_v55 = vand.u32 2147483648, %v5573_v33  ;;  %v1669_v1 = vmul.f32 %v5682_v62, %v5617_v12  ;;  %v932_v45 = vpop.f32.mrf.mxu3 }
 0x207   : > { %v5719_v29 = vadd.f32 %v2748_v50, %v2737_v7  ;;  %v1695_v54 = vor.u32 1.1754944e-38, %v1694_v42  ;;  %v1679_v39 = vand.u32 2147483648, %v5617_v12  ;;  %4030 = vrcp.f32 %v5687_v0 }
 0x208   : > { %v5723_v3 = vpop.eup %4024  ;;  %v5727_v63 = vsel %vm5669_vm10, %v1515_v16, %v1511_v37  ;;  %vm1658_vm0 = vweird.f32 %v5573_v33  ;;  %vm5730_vm2 = vcmp.eq.f32.partialorder %v1662_v38, 8.507059e+37  ;;  %v5735_v46 = vadd.f32 %v961_v23, %v5425_v18  ;;  %v877_v23 = vpop.f32.mrf.mxu1 }
 0x209   : > { %v5737_v4 = vpop.eup %4026  ;;  %v1696_v6 = vsel %vm1693_vm1, %v1695_v54, %v1691_v15  ;;  %v1657_v61 = vadd.f32 %v5624_v20, %v1656_v57  ;;  %vm1659_vm3 = vweird.f32 %v5624_v20  ;;  %4032 = vrcp.f32 %v5711_v58 }
 0x20a   : > { %v5742_v26 = vpop.eup %4028  ;;  %v1665_v8 = vor.u32 1.1754944e-38, %v1664_v55  ;;  %v1670_v13 = vsub.f32 1.0, %v1669_v1  ;;  %v1814_v7 = vand.u32 2147483648, %v5659_v51  ;;  %v1859_v53 = vand.u32 2147483648, %v5665_v52  ;;  %vm5759_vm5 = vmor %vm1658_vm0, %vm1659_vm3 }
 0x20b   : > { %v1677_v44 = vand.u32 2147483647, %v5617_v12  ;;  %v5747_v32 = vor.u32 1.1754944e-38, %v1679_v39  ;;  %v1804_v43 = vmul.f32 %v5723_v3, %v5659_v51  ;;  %v5752_v41 = vadd.f32 %v903_v40, %v5444_v31 }
 0x20c   : > { %v5755_v34 = vmul.f32 %v1696_v6, %v5488_v60  ;;  %v1812_v56 = vand.u32 2147483647, %v5659_v51  ;;  %v1849_v17 = vmul.f32 %v5737_v4, %v5665_v52  ;;  %v1857_v35 = vand.u32 2147483647, %v5665_v52  ;;  %v964_v54 = vpop.f32.mrf.mxu0 }
 0x20d   : > { %v5767_v49 = vpop.eup %4030  ;;  %v1661_v60 = vsel %vm5759_vm5, %v5624_v20, %v1657_v61  ;;  %vm1673_vm7 = vweird.f32 %v5617_v12  ;;  %vm1674_vm8 = vweird.f32 %v5682_v62  ;;  %v1819_v33 = vmul.f32 %v5742_v26, %v5676_v2 }
 0x20e   : > { %v3717_v50 = vmul.f32 -1.442695, %v5735_v46  ;;  %v1671_v42 = vmul.f32 %v5682_v62, %v1670_v13  ;;  %v5778_v25 = vor.u32 1.1754944e-38, %v1814_v7  ;;  %v5780_v38 = vor.u32 1.1754944e-38, %v1859_v53  ;;  %v906_v53 = vpop.f32.mrf.mxu2  ;;  %vm5830_vm15 = vmor %vm1673_vm7, %vm1674_vm8 }
 0x20f   : > { %v1834_v37 = vmul.f32 %v5767_v49, %v5687_v0  ;;  %v5784_v16 = vpop.eup %4032  ;;  %v1805_v20 = vsub.f32 1.0, %v1804_v43  ;;  %v1827_v22 = vand.u32 2147483647, %v5676_v2  ;;  %v1829_v57 = vand.u32 2147483648, %v5676_v2 }
 0x210   : > { %4034 = vpow2.f32 %v3717_v50  ;;  %v1666_v15 = vsel %vm5730_vm2, %v1665_v8, %v1661_v60  ;;  %vm1808_vm9 = vweird.f32 %v5659_v51  ;;  %vm1809_vm10 = vweird.f32 %v5723_v3 }
 0x211   : > { %v1850_v55 = vsub.f32 1.0, %v1849_v17  ;;  %v1969_v1 = vmul.f32 %v5784_v16, %v5711_v58  ;;  %vm1853_vm11 = vweird.f32 %v5665_v52  ;;  %vm1854_vm12 = vweird.f32 %v5737_v4  ;;  %vm5864_vm7 = vmor %vm1808_vm9, %vm1809_vm10 }
 0x212   : > { %v1820_v39 = vsub.f32 1.0, %v1819_v33  ;;  %v3715_v40 = vmul.f32 -1.442695, %v5752_v41  ;;  %v5798_v6 = vadd.f32 %v932_v45, %v5470_v21  ;;  %v1672_v14 = vadd.f32 %v5682_v62, %v1671_v42 }
 0x213   : > { %vm5801_vm13 = vcmp.eq.f32.partialorder %v1677_v44, 8.507059e+37  ;;  %vm1823_vm14 = vweird.f32 %v5676_v2  ;;  %v1835_v8 = vsub.f32 1.0, %v1834_v37  ;;  %v1970_v13 = vsub.f32 1.0, %v1969_v1 }
 0x214   : > { %v5807_v7 = vadd.f32 %v877_v23, %v5423_v36  ;;  %v1806_v43 = vmul.f32 %v5723_v3, %v1805_v20  ;;  %4036 = vpow2.f32 %v3715_v40  ;;  %v3716_v47 = vmul.f32 -1.442695, %v5798_v6 }
 0x215   : > { %v5812_v17 = vadd.f32 %v964_v54, %v5425_v18  ;;  %v5815_v44 = vmul.f32 %v1666_v15, %v5505_v5  ;;  %v1851_v45 = vmul.f32 %v5737_v4, %v1850_v55  ;;  %v5818_v60 = vor.u32 1.1754944e-38, %v1829_v57  ;;  %v935_v54 = vpop.f32.mrf.mxu3 }
 0x216   : > { %v3725_v33 = vmul.f32 -1.442695, %v5807_v7  ;;  %v4035_v50 = vpop.eup %4034  ;;  %v1821_v42 = vmul.f32 %v5742_v26, %v1820_v39  ;;  %4038 = vpow2.f32 %v3716_v47  ;;  %v5824_v20 = vadd.f32 %v906_v53, %v5444_v31 }
 0x217   : > { %v3728_v37 = vmul.f32 -1.442695, %v5812_v17  ;;  %vm5834_vm1 = vcmp.eq.f32.partialorder %v1812_v56, 8.507059e+37  ;;  %v1836_v23 = vmul.f32 %v5767_v49, %v1835_v8  ;;  %v1842_v15 = vand.u32 2147483647, %v5687_v0 }
 0x218   : > { %v1971_v55 = vmul.f32 %v5784_v16, %v1970_v13  ;;  %v5841_v1 = vadd.f32 1.0, %v4035_v50  ;;  %v1676_v12 = vsel %vm5830_vm15, %v5682_v62, %v1672_v14  ;;  %v1807_v39 = vadd.f32 %v5723_v3, %v1806_v43  ;;  %vm5877_vm15 = vmor %vm1853_vm11, %vm1854_vm12 }
 0x219   : > { %vm5847_vm0 = vcmp.eq.f32.partialorder %v1857_v35, 8.507059e+37  ;;  %vm5851_vm2 = vcmp.eq.f32.partialorder %v1827_v22, 8.507059e+37  ;;  %4040 = vpow2.f32 %v3725_v33  ;;  %v3726_v8 = vmul.f32 -1.442695, %v5824_v20 }
 0x21a   : > { %v1852_v13 = vadd.f32 %v5737_v4, %v1851_v45  ;;  %vm1824_vm3 = vweird.f32 %v5742_v26  ;;  %vm1839_vm5 = vweird.f32 %v5767_v49  ;;  %4042 = vrcp.f32 %v5841_v1  ;;  %v4037_v62 = vpop.eup %4036 }
 0x21b   : > { %v1822_v22 = vadd.f32 %v5742_v26, %v1821_v42  ;;  %vm1974_vm8 = vweird.f32 %v5784_v16  ;;  %4044 = vpow2.f32 %v3728_v37  ;;  %v5871_v14 = vadd.f32 %v935_v54, %v5470_v21  ;;  %vm5892_vm9 = vmor %vm1823_vm14, %vm1824_vm3 }
 0x21c   : > { %v1837_v51 = vadd.f32 %v5767_v49, %v1836_v23  ;;  %v1972_v43 = vadd.f32 %v5784_v16, %v1971_v55  ;;  %v5883_v47 = vadd.f32 1.0, %v4037_v62  ;;  %4046 = vpow2.f32 %v3726_v8  ;;  %v4039_v45 = vpop.eup %4038  ;;  %v879_v62 = vpop.f32.mrf.mxu1 }
 0x21d   : > { %v1681_v33 = vsel %vm5801_vm13, %v5747_v32, %v1676_v12  ;;  %vm1838_vm10 = vweird.f32 %v5687_v0  ;;  %v1844_v50 = vand.u32 2147483648, %v5687_v0  ;;  %v1979_v42 = vand.u32 2147483648, %v5711_v58 }
 0x21e   : > { %v1811_v37 = vsel %vm5864_vm7, %v5723_v3, %v1807_v39  ;;  %vm5904_vm11 = vmor %vm1838_vm10, %vm1839_vm5  ;;  %vm1973_vm12 = vweird.f32 %v5711_v58  ;;  %v1977_v2 = vand.u32 2147483647, %v5711_v58  ;;  %4048 = vrcp.f32 %v5883_v47 }
 0x21f   : > { %v4041_v61 = vpop.eup %4040  ;;  %v1856_v0 = vsel %vm5877_vm15, %v5737_v4, %v1852_v13  ;;  %v1826_v3 = vsel %vm5892_vm9, %v5742_v26, %v1822_v22  ;;  %vm5919_vm13 = vmor %vm1973_vm12, %vm1974_vm8  ;;  %v5923_v23 = vadd.f32 1.0, %v4039_v45  ;;  %v3727_v58 = vmul.f32 -1.442695, %v5871_v14 }
 0x220   : > { %v5926_v55 = vpop.eup %4042  ;;  %v1841_v4 = vsel %vm5904_vm11, %v5767_v49, %v1837_v51  ;;  %vm1843_vm14 = vcmp.eq.f32.partialorder %v1842_v15, 8.507059e+37  ;;  %v1976_v26 = vsel %vm5919_vm13, %v5784_v16, %v1972_v43  ;;  %v5934_v54 = vadd.f32 1.0, %v4041_v61  ;;  %v966_v61 = vpop.f32.mrf.mxu0 }
 0x221   : > { %v4045_v12 = vpop.eup %4044  ;;  %v1816_v39 = vsel %vm5834_vm1, %v5778_v25, %v1811_v37  ;;  %v1845_v8 = vor.u32 1.1754944e-38, %v1844_v50  ;;  %v1980_v13 = vor.u32 1.1754944e-38, %v1979_v42  ;;  %4050 = vrcp.f32 %v5923_v23 }
 0x222   : > { %v4047_v35 = vpop.eup %4046  ;;  %v1861_v49 = vsel %vm5847_vm0, %v5780_v38, %v1856_v0  ;;  %v1831_v16 = vsel %vm5851_vm2, %v5818_v60, %v1826_v3  ;;  %vm1978_vm3 = vcmp.eq.f32.partialorder %v1977_v2, 8.507059e+37  ;;  %4052 = vrcp.f32 %v5934_v54  ;;  %v908_v0 = vpop.f32.mrf.mxu2 }
 0x223   : > { %v2739_v25 = vmul.f32 %v5727_v63, %v5477_v10  ;;  %v1846_v57 = vsel %vm1843_vm14, %v1845_v8, %v1841_v4  ;;  %v1981_v15 = vsel %vm1978_vm3, %v1980_v13, %v1976_v26  ;;  %4054 = vpow2.f32 %v3727_v58  ;;  %v937_v58 = vpop.f32.mrf.mxu3 }
 0x224   : > { %v5949_v22 = vpop.eup %4048  ;;  %v2014_v53 = vmul.f32 %v5926_v55, %v5841_v1  ;;  %v5953_v56 = vadd.f32 1.0, %v4045_v12  ;;  %v5955_v38 = vadd.f32 1.0, %v4047_v35  ;;  %v5958_v60 = vadd.f32 %v879_v62, %v5423_v36 }
 0x225   : > { %v2750_v40 = vmul.f32 %v1681_v33, %v5525_v24  ;;  %v2759_v51 = vmul.f32 %v1816_v39, %v5528_v59  ;;  %v2762_v10 = vmul.f32 %v1861_v49, %v5546_v48  ;;  %v2760_v63 = vmul.f32 %v1831_v16, %v5552_v9 }
 0x226   : > { %v2914_v43 = vadd.f32 %v5755_v34, %v5662_v27  ;;  %v2888_v45 = vadd.f32 %v5815_v44, %v5690_v11  ;;  %v1984_v52 = vmul.f32 %v5949_v22, %v5883_v47  ;;  %4056 = vrcp.f32 %v5953_v56 }
 0x227   : > { %v5971_v50 = vpop.eup %4050  ;;  %v2761_v24 = vmul.f32 %v1846_v57, %v5562_v30  ;;  %v2770_v59 = vmul.f32 %v1981_v15, %v5578_v19  ;;  %v2024_v48 = vand.u32 2147483648, %v5841_v1  ;;  %4058 = vrcp.f32 %v5955_v38 }
 0x228   : > { %v5977_v9 = vpop.eup %4052  ;;  %v2015_v27 = vsub.f32 1.0, %v2014_v53  ;;  %v3736_v11 = vmul.f32 -1.442695, %v5958_v60  ;;  %v2901_v44 = vadd.f32 %v2750_v40, %v2739_v25  ;;  %v2876_v33 = vadd.f32 %v5719_v29, %v2759_v51  ;;  %v969_v49 = vpop.f32.mrf.mxu0 }
 0x229   : > { %v4055_v34 = vpop.eup %4054  ;;  %v5981_v42 = vadd.f32 %v2914_v43, %v2762_v10  ;;  %v5983_v37 = vadd.f32 %v2888_v45, %v2760_v63  ;;  %v2022_v30 = vand.u32 2147483647, %v5841_v1  ;;  %v1985_v19 = vsub.f32 1.0, %v1984_v52 }
 0x22a   : > { %v1999_v32 = vmul.f32 %v5971_v50, %v5923_v23  ;;  %v2134_v2 = vmul.f32 %v5977_v9, %v5934_v54  ;;  %v5990_v3 = vadd.f32 %v2901_v44, %v2761_v24  ;;  %v5992_v5 = vadd.f32 %v2876_v33, %v2770_v59 }
 0x22b   : > { %vm2018_vm1 = vweird.f32 %v5841_v1  ;;  %v2025_v29 = vor.u32 1.1754944e-38, %v2024_v48  ;;  %v2016_v26 = vmul.f32 %v5926_v55, %v2015_v27  ;;  %v1992_v12 = vand.u32 2147483647, %v5883_v47 }
 0x22c   : > { %v5995_v4 = vpop.eup %4056  ;;  %v5999_v39 = vadd.f32 1.0, %v4055_v34  ;;  %4060 = vpow2.f32 %v3736_v11  ;;  %vm1988_vm0 = vweird.f32 %v5883_v47  ;;  %v1994_v13 = vand.u32 2147483648, %v5883_v47 }
 0x22d   : > { %v6001_v8 = vpop.eup %4058  ;;  %v6006_v62 = vadd.f32 %v966_v61, %v5425_v18  ;;  %v6009_v35 = vadd.f32 %v908_v0, %v5444_v31  ;;  %vm6011_vm2 = vcmp.eq.f32.partialorder %v2022_v30, 8.507059e+37  ;;  %v1986_v16 = vmul.f32 %v5949_v22, %v1985_v19 }
 0x22e   : > { %v2000_v25 = vsub.f32 1.0, %v1999_v32  ;;  %v2135_v57 = vsub.f32 1.0, %v2134_v2  ;;  %v6017_v15 = vadd.f32 %v937_v58, %v5470_v21  ;;  %vm2019_vm5 = vweird.f32 %v5926_v55 }
 0x22f   : > { %v2009_v53 = vand.u32 2147483648, %v5923_v23  ;;  %v2144_v40 = vand.u32 2147483648, %v5934_v54  ;;  %v2179_v51 = vmul.f32 %v5995_v4, %v5953_v56  ;;  %v2017_v10 = vadd.f32 %v5926_v55, %v2016_v26  ;;  %vm6044_vm10 = vmor %vm2018_vm1, %vm2019_vm5 }
 0x230   : > { %vm6025_vm7 = vcmp.eq.f32.partialorder %v1992_v12, 8.507059e+37  ;;  %v2007_v43 = vand.u32 2147483647, %v5923_v23  ;;  %v2149_v45 = vmul.f32 %v6001_v8, %v5955_v38  ;;  %4062 = vrcp.f32 %v5999_v39 }
 0x231   : > { %v1995_v52 = vor.u32 1.1754944e-38, %v1994_v13  ;;  %vm2003_vm8 = vweird.f32 %v5923_v23  ;;  %vm2138_vm15 = vweird.f32 %v5934_v54  ;;  %v2142_v24 = vand.u32 2147483647, %v5934_v54 }
 0x232   : > { %v4061_v59 = vpop.eup %4060  ;;  %v1987_v48 = vadd.f32 %v5949_v22, %v1986_v16  ;;  %vm1989_vm9 = vweird.f32 %v5949_v22  ;;  %v2001_v27 = vmul.f32 %v5971_v50, %v2000_v25  ;;  %v2136_v11 = vmul.f32 %v5977_v9, %v2135_v57 }
 0x233   : > { %v2010_v44 = vor.u32 1.1754944e-38, %v2009_v53  ;;  %v2145_v33 = vor.u32 1.1754944e-38, %v2144_v40  ;;  %v2180_v30 = vsub.f32 1.0, %v2179_v51  ;;  %v2189_v19 = vand.u32 2147483648, %v5953_v56  ;;  %vm6061_vm12 = vmor %vm1988_vm0, %vm1989_vm9  ;;  %v882_v40 = vpop.f32.mrf.mxu1 }
 0x234   : > { %v2021_v32 = vsel %vm6044_vm10, %v5926_v55, %v2017_v10  ;;  %vm6052_vm11 = vcmp.eq.f32.partialorder %v2007_v43, 8.507059e+37  ;;  %v2150_v61 = vsub.f32 1.0, %v2149_v45  ;;  %v6056_v0 = vadd.f32 1.0, %v4061_v59  ;;  %v911_v43 = vpop.f32.mrf.mxu2 }
 0x235   : > { %v3739_v1 = vmul.f32 -1.442695, %v6006_v62  ;;  %vm2004_vm13 = vweird.f32 %v5971_v50  ;;  %vm2139_vm14 = vweird.f32 %v5977_v9  ;;  %vm6067_vm3 = vcmp.eq.f32.partialorder %v2142_v24, 8.507059e+37 }
 0x236   : > { %vm2183_vm1 = vweird.f32 %v5953_v56  ;;  %v2187_v26 = vand.u32 2147483647, %v5953_v56  ;;  %v6073_v12 = vpop.eup %4062  ;;  %v1991_v47 = vsel %vm6061_vm12, %v5949_v22, %v1987_v48  ;;  %v2002_v13 = vadd.f32 %v5971_v50, %v2001_v27  ;;  %vm6089_vm5 = vmor %vm2003_vm8, %vm2004_vm13 }
 0x237   : > { %v2137_v16 = vadd.f32 %v5977_v9, %v2136_v11  ;;  %4064 = vrcp.f32 %v6056_v0  ;;  %v2026_v25 = vsel %vm6011_vm2, %v2025_v29, %v2021_v32  ;;  %v2181_v57 = vmul.f32 %v5995_v4, %v2180_v30  ;;  %vm6103_vm2 = vmor %vm2138_vm15, %vm2139_vm14 }
 0x238   : > { %v2190_v53 = vor.u32 1.1754944e-38, %v2189_v19  ;;  %vm2153_vm0 = vweird.f32 %v5955_v38  ;;  %v2151_v51 = vmul.f32 %v6001_v8, %v2150_v61  ;;  %v2157_v10 = vand.u32 2147483647, %v5955_v38 }
 0x239   : > { %v2164_v29 = vmul.f32 %v6073_v12, %v5999_v39  ;;  %4066 = vpow2.f32 %v3739_v1  ;;  %v1996_v45 = vsel %vm6025_vm7, %v1995_v52, %v1991_v47  ;;  %vm2184_vm8 = vweird.f32 %v5995_v4 }
 0x23a   : > { %v3737_v24 = vmul.f32 -1.442695, %v6009_v35  ;;  %v3738_v59 = vmul.f32 -1.442695, %v6017_v15  ;;  %v2006_v48 = vsel %vm6089_vm5, %v5971_v50, %v2002_v13  ;;  %v2141_v63 = vsel %vm6103_vm2, %v5977_v9, %v2137_v16  ;;  %vm6146_vm9 = vmor %vm2183_vm1, %vm2184_vm8 }
 0x23b   : > { %vm6116_vm7 = vcmp.eq.f32.partialorder %v2187_v26, 8.507059e+37  ;;  %vm2154_vm15 = vweird.f32 %v6001_v8  ;;  %v6122_v52 = vadd.f32 %v882_v40, %v5423_v36  ;;  %v2182_v27 = vadd.f32 %v5995_v4, %v2181_v57  ;;  %v940_v26 = vpop.f32.mrf.mxu3 }
 0x23c   : > { %4068 = vpow2.f32 %v3737_v24  ;;  %v6126_v11 = vadd.f32 %v969_v49, %v5425_v18  ;;  %v6129_v50 = vadd.f32 %v911_v43, %v5444_v31  ;;  %v2152_v9 = vadd.f32 %v6001_v8, %v2151_v51  ;;  %vm6161_vm10 = vmor %vm2153_vm0, %vm2154_vm15 }
 0x23d   : > { %v6131_v34 = vpop.eup %4064  ;;  %v2165_v30 = vsub.f32 1.0, %v2164_v29  ;;  %4070 = vpow2.f32 %v3738_v59  ;;  %v3747_v19 = vmul.f32 -1.442695, %v6122_v52  ;;  %v2773_v32 = vmul.f32 %v2026_v25, %v5735_v46 }
 0x23e   : > { %v2011_v61 = vsel %vm6052_vm11, %v2010_v44, %v2006_v48  ;;  %v2159_v1 = vand.u32 2147483648, %v5955_v38  ;;  %v3750_v58 = vmul.f32 -1.442695, %v6126_v11  ;;  %v2146_v13 = vsel %vm6067_vm3, %v2145_v33, %v2141_v63  ;;  %v884_v63 = vpop.f32.mrf.mxu1 }
 0x23f   : > { %v4067_v47 = vpop.eup %4066  ;;  %v2299_v46 = vmul.f32 %v6131_v34, %v6056_v0  ;;  %4072 = vpow2.f32 %v3747_v19  ;;  %v3748_v44 = vmul.f32 -1.442695, %v6129_v50  ;;  %v2771_v2 = vmul.f32 %v1996_v45, %v5752_v41 }
 0x240   : > { %v2186_v33 = vsel %vm6146_vm9, %v5995_v4, %v2182_v27  ;;  %vm6165_vm11 = vcmp.eq.f32.partialorder %v2157_v10, 8.507059e+37  ;;  %v6169_v25 = vadd.f32 1.0, %v4067_v47  ;;  %v2156_v41 = vsel %vm6161_vm10, %v6001_v8, %v2152_v9 }
 0x241   : > { %v2166_v4 = vmul.f32 %v6073_v12, %v2165_v30  ;;  %4074 = vpow2.f32 %v3750_v58  ;;  %v6176_v57 = vadd.f32 %v940_v26, %v5470_v21  ;;  %v2772_v40 = vmul.f32 %v2011_v61, %v5798_v6 }
 0x242   : > { %v4069_v38 = vpop.eup %4068  ;;  %v2781_v22 = vmul.f32 %v2146_v13, %v5807_v7  ;;  %v2160_v51 = vor.u32 1.1754944e-38, %v2159_v1  ;;  %4076 = vrcp.f32 %v6169_v25  ;;  %v2172_v29 = vand.u32 2147483647, %v5999_v39 }
 0x243   : > { %v4071_v10 = vpop.eup %4070  ;;  %v2300_v49 = vsub.f32 1.0, %v2299_v46  ;;  %v6182_v43 = vadd.f32 1.0, %v4069_v38  ;;  %4078 = vpow2.f32 %v3748_v44  ;;  %v2191_v8 = vsel %vm6116_vm7, %v2190_v53, %v2186_v33  ;;  %v971_v46 = vpop.f32.mrf.mxu0 }
 0x244   : > { %v2161_v45 = vsel %vm6165_vm11, %v2160_v51, %v2156_v41  ;;  %v2174_v6 = vand.u32 2147483648, %v5999_v39  ;;  %v6189_v23 = vadd.f32 1.0, %v4071_v10  ;;  %v2167_v24 = vadd.f32 %v6073_v12, %v2166_v4 }
 0x245   : > { %v4073_v7 = vpop.eup %4072  ;;  %vm2169_vm12 = vweird.f32 %v6073_v12  ;;  %4080 = vrcp.f32 %v6182_v43  ;;  %v3749_v59 = vmul.f32 -1.442695, %v6176_v57  ;;  %v2916_v48 = vadd.f32 %v5981_v42, %v2773_v32 }
 0x246   : > { %v2890_v53 = vadd.f32 %v5983_v37, %v2771_v2  ;;  %vm2168_vm13 = vweird.f32 %v5999_v39  ;;  %4082 = vrcp.f32 %v6189_v23  ;;  %v2903_v27 = vadd.f32 %v5990_v3, %v2772_v40 }
 0x247   : > { %v4075_v54 = vpop.eup %4074  ;;  %v6201_v9 = vadd.f32 %v5992_v5, %v2781_v22  ;;  %vm6203_vm14 = vcmp.eq.f32.partialorder %v2172_v29, 8.507059e+37  ;;  %v2301_v19 = vmul.f32 %v6131_v34, %v2300_v49  ;;  %v2784_v37 = vmul.f32 %v2191_v8, %v5812_v17  ;;  %vm6214_vm3 = vmor %vm2168_vm13, %vm2169_vm12 }
 0x248   : > { %v6208_v42 = vpop.eup %4076  ;;  %v2782_v39 = vmul.f32 %v2161_v45, %v5824_v20  ;;  %v2175_v3 = vor.u32 1.1754944e-38, %v2174_v6  ;;  %v6218_v5 = vadd.f32 1.0, %v4073_v7  ;;  %v2171_v1 = vsel %vm6214_vm3, %v6073_v12, %v2167_v24 }
 0x249   : > { %v4079_v61 = vpop.eup %4078  ;;  %v2344_v58 = vmul.f32 %v6208_v42, %v6169_v25  ;;  %4084 = vpow2.f32 %v3749_v59  ;;  %v6226_v17 = vadd.f32 %v884_v63, %v5423_v36  ;;  %vm2303_vm1 = vweird.f32 %v6056_v0  ;;  %v913_v36 = vpop.f32.mrf.mxu2 }
 0x24a   : > { %v2307_v20 = vand.u32 2147483647, %v6056_v0  ;;  %v2309_v26 = vand.u32 2147483648, %v6056_v0  ;;  %4086 = vrcp.f32 %v6218_v5  ;;  %v2302_v13 = vadd.f32 %v6131_v34, %v2301_v19 }
 0x24b   : > { %v6232_v47 = vpop.eup %4080  ;;  %vm2304_vm0 = vweird.f32 %v6131_v34  ;;  %v2345_v12 = vsub.f32 1.0, %v2344_v58  ;;  %v6236_v16 = vadd.f32 1.0, %v4075_v54  ;;  %v6240_v2 = vadd.f32 %v2916_v48, %v2784_v37 }
 0x24c   : > { %v6238_v44 = vpop.eup %4082  ;;  %v2176_v33 = vsel %vm6203_vm14, %v2175_v3, %v2171_v1  ;;  %v2314_v56 = vmul.f32 %v6232_v47, %v6182_v43  ;;  %v6246_v55 = vadd.f32 1.0, %v4079_v61  ;;  %v6248_v41 = vadd.f32 %v2890_v53, %v2782_v39  ;;  %vm6256_vm5 = vmor %vm2303_vm1, %vm2304_vm0 }
 0x24d   : > { %v2346_v4 = vmul.f32 %v6208_v42, %v2345_v12  ;;  %v2329_v38 = vmul.f32 %v6238_v44, %v6189_v23  ;;  %v3758_v40 = vmul.f32 -1.442695, %v6226_v17  ;;  %vm6260_vm2 = vcmp.eq.f32.partialorder %v2307_v20, 8.507059e+37 }
 0x24e   : > { %v2310_v10 = vor.u32 1.1754944e-38, %v2309_v26  ;;  %v6265_v29 = vadd.f32 %v971_v46, %v5425_v18  ;;  %v6268_v49 = vadd.f32 %v913_v36, %v5444_v31  ;;  %v2783_v45 = vmul.f32 %v2176_v33, %v5871_v14 }
 0x24f   : > { %v4085_v8 = vpop.eup %4084  ;;  %v2306_v0 = vsel %vm6256_vm5, %v6131_v34, %v2302_v13  ;;  %v2315_v6 = vsub.f32 1.0, %v2314_v56  ;;  %4088 = vrcp.f32 %v6236_v16  ;;  %v2352_v24 = vand.u32 2147483647, %v6169_v25 }
 0x250   : > { %v6275_v7 = vpop.eup %4086  ;;  %v2354_v18 = vand.u32 2147483648, %v6169_v25  ;;  %v2330_v59 = vsub.f32 1.0, %v2329_v38  ;;  %4090 = vrcp.f32 %v6246_v55  ;;  %v2347_v31 = vadd.f32 %v6208_v42, %v2346_v4  ;;  %v983_v38 = vpop.f32.mrf.mxu1 }
 0x251   : > { %vm2349_vm8 = vweird.f32 %v6208_v42  ;;  %v2464_v14 = vmul.f32 %v6275_v7, %v6218_v5  ;;  %4092 = vpow2.f32 %v3758_v40  ;;  %v2311_v34 = vsel %vm6260_vm2, %v2310_v10, %v2306_v0 }
 0x252   : > { %vm2348_vm7 = vweird.f32 %v6169_v25  ;;  %v2322_v48 = vand.u32 2147483647, %v6182_v43  ;;  %v2324_v53 = vand.u32 2147483648, %v6182_v43  ;;  %v6289_v63 = vadd.f32 %v2903_v27, %v2783_v45 }
 0x253   : > { %v2316_v54 = vmul.f32 %v6232_v47, %v2315_v6  ;;  %v2337_v30 = vand.u32 2147483647, %v6189_v23  ;;  %v6293_v19 = vadd.f32 1.0, %v4085_v8  ;;  %vm6295_vm15 = vmor %vm2348_vm7, %vm2349_vm8  ;;  %vm6299_vm9 = vcmp.eq.f32.partialorder %v2352_v24, 8.507059e+37  ;;  %v942_v6 = vpop.f32.mrf.mxu3  ;;  %v3034_v24 = vld [vmem:[%s8060_s5 + $0x78] sm:$0xff] }
 0x254   : > { %v2355_v25 = vor.u32 1.1754944e-38, %v2354_v18  ;;  %v2331_v32 = vmul.f32 %v6238_v44, %v2330_v59  ;;  %v2465_v3 = vsub.f32 1.0, %v2464_v14  ;;  %v2792_v61 = vmul.f32 %v2311_v34, %v5958_v60  ;;  %3220 = vmatpush.msrb.mxu0 %v3034_v24 }
 0x255   : > { %v6304_v27 = vpop.eup %4088  ;;  %v2351_v1 = vsel %vm6295_vm15, %v6208_v42, %v2347_v31  ;;  %vm2318_vm10 = vweird.f32 %v6182_v43  ;;  %v2339_v58 = vand.u32 2147483648, %v6189_v23  ;;  %vm2319_vm11 = vweird.f32 %v6232_v47 }
 0x256   : > { %v6312_v20 = vpop.eup %4090  ;;  %vm6315_vm12 = vcmp.eq.f32.partialorder %v2322_v48, 8.507059e+37  ;;  %v2325_v13 = vor.u32 1.1754944e-38, %v2324_v53  ;;  %v2472_v12 = vand.u32 2147483647, %v6218_v5  ;;  %v2317_v46 = vadd.f32 %v6232_v47, %v2316_v54  ;;  %vm6335_vm3 = vmor %vm2318_vm10, %vm2319_vm11  ;;  %v3033_v53 = vld [vmem:[%s8060_s5 + $0x70] sm:$0xff] }
 0x257   : > { %v4093_v60 = vpop.eup %4092  ;;  %vm2334_vm13 = vweird.f32 %v6238_v44  ;;  %vm6322_vm14 = vcmp.eq.f32.partialorder %v2337_v30, 8.507059e+37  ;;  %4094 = vrcp.f32 %v6293_v19  ;;  %v2356_v36 = vsel %vm6299_vm9, %v2355_v25, %v2351_v1  ;;  %v3049_v54 = vld [vmem:[%s8060_s5 + $0xf0] sm:$0xff]  ;;  %3221 = vmatpush.msrb.mxu0 %v3033_v53 }
 0x258   : > { %v2332_v33 = vadd.f32 %v6238_v44, %v2331_v32  ;;  %v2466_v56 = vmul.f32 %v6275_v7, %v2465_v3  ;;  %v2509_v4 = vmul.f32 %v6304_v27, %v6236_v16  ;;  %v2340_v40 = vor.u32 1.1754944e-38, %v2339_v58  ;;  %v3065_v25 = vld [vmem:[%s8060_s5 + $0x170] sm:$0xff]  ;;  %v593_v58 = vld [vmem:[%s8059_s4 + $0x8] sm:$0x7] }
 0x259   : > { %v2474_v22 = vand.u32 2147483648, %v6218_v5  ;;  %v2519_v51 = vand.u32 2147483648, %v6236_v16  ;;  %v2479_v10 = vmul.f32 %v6312_v20, %v6246_v55  ;;  %v6344_v8 = vadd.f32 %v6201_v9, %v2792_v61  ;;  %v3050_v9 = vld [vmem:[%s8060_s5 + $0xf8] sm:$0xff]  ;;  %v3081_v32 = vld [vmem:[%s8060_s5 + $0x1f0] sm:$0xff] }
 0x25a   : > { %vm2333_vm1 = vweird.f32 %v6189_v23  ;;  %vm6347_vm0 = vcmp.eq.f32.partialorder %v2472_v12, 8.507059e+37  ;;  %v6351_v43 = vadd.f32 1.0, %v4093_v60  ;;  %v3761_v0 = vmul.f32 -1.442695, %v6265_v29  ;;  %v3066_v23 = vld [vmem:[%s8060_s5 + $0x178] sm:$0xff]  ;;  %3240 = vmatpush.msrb.mxu1 %v3050_v9 }
 0x25b   : > { %v2795_v18 = vmul.f32 %v2356_v36, %v6006_v62  ;;  %v2321_v59 = vsel %vm6335_vm3, %v6232_v47, %v2317_v46  ;;  %vm6369_vm5 = vmor %vm2333_vm1, %vm2334_vm13  ;;  %vm2469_vm2 = vweird.f32 %v6275_v7  ;;  %v2517_v14 = vand.u32 2147483647, %v6236_v16  ;;  %v3082_v62 = vld [vmem:[%s8060_s5 + $0x1f8] sm:$0xff]  ;;  %3260 = vmatpush.msrb.mxu2 %v3066_v23 }
 0x25c   : > { %v2336_v47 = vsel %vm6369_vm5, %v6238_v44, %v2332_v33  ;;  %v2467_v34 = vadd.f32 %v6275_v7, %v2466_v56  ;;  %v2510_v48 = vsub.f32 1.0, %v2509_v4  ;;  %4096 = vrcp.f32 %v6351_v43  ;;  %3280 = vmatpush.msrb.mxu3 %v3082_v62  ;;  %3241 = vmatpush.msrb.mxu1 %v3049_v54 }
 0x25d   : > { %v6389_v30 = vpop.eup %4094  ;;  %vm2468_vm8 = vweird.f32 %v6218_v5  ;;  %v2475_v44 = vor.u32 1.1754944e-38, %v2474_v22  ;;  %v2480_v37 = vsub.f32 1.0, %v2479_v10  ;;  %v2487_v39 = vand.u32 2147483647, %v6246_v55  ;;  %3261 = vmatpush.msrb.mxu2 %v3065_v25 }
 0x25e   : > { %v2326_v3 = vsel %vm6315_vm12, %v2325_v13, %v2321_v59  ;;  %vm2513_vm7 = vweird.f32 %v6236_v16  ;;  %v6402_v61 = vor.u32 1.1754944e-38, %v2519_v51  ;;  %4098 = vpow2.f32 %v3761_v0  ;;  %3281 = vmatpush.msrb.mxu3 %v3081_v32  ;;  %vm6417_vm15 = vmor %vm2468_vm8, %vm2469_vm2  ;;  %v1012_v0 = vpop.f32.mrf.mxu2  ;;  %v1041_v59 = vpop.f32.mrf.mxu3  ;;  %v3080_v13 = vld [vmem:[%s8060_s5 + $0x1e8] sm:$0xff]  ;;  %v3061_v16 = vld [vmem:[%s8060_s5 + $0x150] sm:$0xff] }
 0x25f   : > { %v3759_v1 = vmul.f32 -1.442695, %v6268_v49  ;;  %v6409_v12 = vadd.f32 %v6240_v2, %v2795_v18  ;;  %v2341_v26 = vsel %vm6322_vm14, %v2340_v40, %v2336_v47  ;;  %vm2483_vm9 = vweird.f32 %v6246_v55 }
 0x260   : > { %v2489_v60 = vand.u32 2147483648, %v6246_v55  ;;  %v2502_v46 = vand.u32 2147483647, %v6293_v19  ;;  %v2471_v2 = vsel %vm6417_vm15, %v6275_v7, %v2467_v34  ;;  %v2511_v42 = vmul.f32 %v6304_v27, %v2510_v48  ;;  %3282 = vmatpush.msrb.mxu3 %v3080_v13 }
 0x261   : > { %v2494_v36 = vmul.f32 %v6389_v30, %v6293_v19  ;;  %4100 = vpow2.f32 %v3759_v1  ;;  %v6431_v5 = vmul.f32 %v2326_v3, %v6009_v35  ;;  %v2481_v33 = vmul.f32 %v6312_v20, %v2480_v37 }
 0x262   : > { %v6435_v56 = vadd.f32 %v942_v6, %v5470_v21  ;;  %v6437_v4 = vperm.slane %v593_v58, 0  ;;  %v6439_v40 = vpop.eup %4096  ;;  %v6442_v7 = vmul.f32 %v2341_v26, %v6017_v15  ;;  %vm2514_vm10 = vweird.f32 %v6304_v27  ;;  %v3064_v26 = vld [vmem:[%s8060_s5 + $0x168] sm:$0xff] }
 0x263   : > { %vm6445_vm11 = vcmp.eq.f32.partialorder %v2517_v14, 8.507059e+37  ;;  %vm2484_vm12 = vweird.f32 %v6312_v20  ;;  %v6450_v35 = vperm.slane %v593_v58, 1  ;;  %v2476_v21 = vsel %vm6347_vm0, %v2475_v44, %v2471_v2  ;;  %vm6481_vm3 = vmor %vm2513_vm7, %vm2514_vm10  ;;  %3262 = vmatpush.msrb.mxu2 %v3064_v26  ;;  %v3029_v44 = vld [vmem:[%s8060_s5 + $0x50] sm:$0xff]  ;;  %v3060_v26 = vld [vmem:[%s8060_s5 + $0x148] sm:$0xff] }
 0x264   : > { %vm6454_vm13 = vcmp.eq.f32.partialorder %v2487_v39, 8.507059e+37  ;;  %v2490_v10 = vor.u32 1.1754944e-38, %v2489_v60  ;;  %v2629_v15 = vmul.f32 %v6439_v40, %v6351_v43  ;;  %v6460_v6 = vperm.slane %v593_v58, 2  ;;  %v4099_v24 = vpop.eup %4098  ;;  %vm6499_vm0 = vmor %vm2483_vm9, %vm2484_vm12 }
 0x265   : > { %v2512_v9 = vadd.f32 %v6304_v27, %v2511_v42  ;;  %v2495_v23 = vsub.f32 1.0, %v2494_v36  ;;  %v3760_v18 = vmul.f32 -1.442695, %v6435_v56  ;;  %v6465_v45 = vadd.f32 %v983_v38, %v6437_v4  ;;  %v3031_v38 = vld [vmem:[%s8060_s5 + $0x60] sm:$0xff] }
 0x266   : > { %v2482_v31 = vadd.f32 %v6312_v20, %v2481_v33  ;;  %v2630_v14 = vsub.f32 1.0, %v2629_v15  ;;  %v2637_v62 = vand.u32 2147483647, %v6351_v43  ;;  %v6469_v47 = vadd.f32 1.0, %v4099_v24  ;;  %v3079_v24 = vld [vmem:[%s8060_s5 + $0x1e0] sm:$0xff] }
 0x267   : > { %v4101_v34 = vpop.eup %4100  ;;  %vm2498_vm14 = vweird.f32 %v6293_v19  ;;  %v2639_v48 = vand.u32 2147483648, %v6351_v43  ;;  %4102 = vpow2.f32 %v3760_v18  ;;  %v3685_v53 = vmul.f32 -1.442695, %v6465_v45  ;;  %3283 = vmatpush.msrb.mxu3 %v3079_v24 }
 0x268   : > { %v6475_v54 = vadd.f32 %v1012_v0, %v6450_v35  ;;  %v2631_v37 = vmul.f32 %v6439_v40, %v2630_v14  ;;  %vm2634_vm1 = vweird.f32 %v6439_v40  ;;  %4104 = vrcp.f32 %v6469_v47  ;;  %v3063_v0 = vld [vmem:[%s8060_s5 + $0x160] sm:$0xff]  ;;  %v3078_v14 = vld [vmem:[%s8060_s5 + $0x1d8] sm:$0xff] }
 0x269   : > { %v6489_v39 = vadd.f32 %v1041_v59, %v6460_v6  ;;  %v2803_v25 = vmul.f32 %v2476_v21, %v6122_v52  ;;  %v2516_v32 = vsel %vm6481_vm3, %v6304_v27, %v2512_v9  ;;  %v2496_v3 = vmul.f32 %v6389_v30, %v2495_v23  ;;  %v3032_v52 = vld [vmem:[%s8060_s5 + $0x68] sm:$0xff]  ;;  %v3047_v21 = vld [vmem:[%s8060_s5 + $0xe0] sm:$0xff]  ;;  %v985_v59 = vpop.f32.mrf.mxu1  ;;  %3263 = vmatpush.msrb.mxu2 %v3063_v0 }
 0x26a   : > { %v6504_v1 = vadd.f32 1.0, %v4101_v34  ;;  %v3048_v27 = vld [vmem:[%s8060_s5 + $0xe8] sm:$0xff]  ;;  %v2486_v55 = vsel %vm6499_vm0, %v6312_v20, %v2482_v31  ;;  %v2632_v58 = vadd.f32 %v6439_v40, %v2631_v37  ;;  %vm2633_vm5 = vweird.f32 %v6351_v43  ;;  %3222 = vmatpush.msrb.mxu0 %v3032_v52  ;;  %v3030_v31 = vld [vmem:[%s8060_s5 + $0x58] sm:$0xff]  ;;  %3284 = vmatpush.msrb.mxu3 %v3078_v14  ;;  %v3059_v23 = vld [vmem:[%s8060_s5 + $0x140] sm:$0xff] }
 0x26b   : > { %4106 = vpow2.f32 %v3685_v53  ;;  %3242 = vmatpush.msrb.mxu1 %v3048_v27  ;;  %v2504_v60 = vand.u32 2147483648, %v6293_v19  ;;  %vm6526_vm2 = vmor %vm2633_vm5, %vm2634_vm1  ;;  %v2640_v43 = vor.u32 1.1754944e-38, %v2639_v48  ;;  %v3686_v2 = vmul.f32 -1.442695, %v6475_v54  ;;  %v3042_v14 = vld [vmem:[%s8060_s5 + $0xb8] sm:$0xff] }
 0x26c   : > { %4108 = vrcp.f32 %v6504_v1  ;;  %v2521_v42 = vsel %vm6445_vm11, %v6402_v61, %v2516_v32  ;;  %v2636_v36 = vsel %vm6526_vm2, %v6439_v40, %v2632_v58  ;;  %vm2638_vm8 = vcmp.eq.f32.partialorder %v2637_v62, 8.507059e+37  ;;  %3223 = vmatpush.msrb.mxu0 %v3031_v38  ;;  %v3045_v32 = vld [vmem:[%s8060_s5 + $0xd0] sm:$0xff]  ;;  %v3044_v58 = vld [vmem:[%s8060_s5 + $0xc8] sm:$0xff] }
 0x26d   : > { %v3687_v33 = vmul.f32 -1.442695, %v6489_v39  ;;  %v4103_v15 = vpop.eup %4102  ;;  %v2491_v22 = vsel %vm6454_vm13, %v2490_v10, %v2486_v55  ;;  %v2497_v61 = vadd.f32 %v6389_v30, %v2496_v3  ;;  %vm2499_vm7 = vweird.f32 %v6389_v30  ;;  %3243 = vmatpush.msrb.mxu1 %v3047_v21  ;;  %v3077_v3 = vld [vmem:[%s8060_s5 + $0x1d0] sm:$0xff]  ;;  %v3028_v55 = vld [vmem:[%s8060_s5 + $0x48] sm:$0xff] }
 0x26e   : > { %v2641_v40 = vsel %vm2638_vm8, %v2640_v43, %v2636_v36  ;;  %v6555_v9 = vpop.eup %4104  ;;  %v2892_v51 = vadd.f32 %v6248_v41, %v6431_v5  ;;  %v2880_v10 = vadd.f32 %v6344_v8, %v2803_v25  ;;  %vm6562_vm15 = vcmp.eq.f32.partialorder %v2502_v46, 8.507059e+37  ;;  %v3046_v41 = vld [vmem:[%s8060_s5 + $0xd8] sm:$0xff]  ;;  %3224 = vmatpush.msrb.mxu0 %v3030_v31  ;;  %vm6589_vm9 = vmor %vm2498_vm14, %vm2499_vm7  ;;  %3285 = vmatpush.msrb.mxu3 %v3077_v3  ;;  %v3075_v31 = vld [vmem:[%s8060_s5 + $0x1c0] sm:$0xff] }
 0x26f   : > { %v2814_v18 = vmul.f32 %v2641_v40, %v6226_v17  ;;  %v3062_v8 = vld [vmem:[%s8060_s5 + $0x158] sm:$0xff]  ;;  %v2806_v46 = vmul.f32 %v2521_v42, %v6126_v11  ;;  %v2674_v17 = vmul.f32 %v6555_v9, %v6469_v47  ;;  %v6579_v5 = vadd.f32 1.0, %v4103_v15  ;;  %3244 = vmatpush.msrb.mxu1 %v3046_v41 }
 0x270   : > { %4110 = vpow2.f32 %v3686_v2  ;;  %v2804_v34 = vmul.f32 %v2491_v22, %v6129_v50  ;;  %v2505_v48 = vor.u32 1.1754944e-38, %v2504_v60  ;;  %3264 = vmatpush.msrb.mxu2 %v3062_v8  ;;  %v2501_v50 = vsel %vm6589_vm9, %v6389_v30, %v2497_v61  ;;  %3225 = vmatpush.msrb.mxu0 %v3029_v44  ;;  %v3076_v2 = vld [vmem:[%s8060_s5 + $0x1c8] sm:$0xff]  ;;  %v3074_v44 = vld [vmem:[%s8060_s5 + $0x1b8] sm:$0xff] }
 0x271   : > { %v4107_v62 = vpop.eup %4106  ;;  %v2881_v53 = vadd.f32 %v2880_v10, %v2814_v18  ;;  %4112 = vpow2.f32 %v3687_v33  ;;  %v2675_v19 = vsub.f32 1.0, %v2674_v17  ;;  %v6603_v25 = vadd.f32 %v985_v59, %v6437_v4  ;;  %3245 = vmatpush.msrb.mxu1 %v3045_v32  ;;  %3286 = vmatpush.msrb.mxu3 %v3076_v2  ;;  %v3043_v10 = vld [vmem:[%s8060_s5 + $0xc0] sm:$0xff]  ;;  %v3041_v32 = vld [vmem:[%s8060_s5 + $0xb0] sm:$0xff] }
 0x272   : > { %v6596_v37 = vpop.eup %4108  ;;  %4114 = vrcp.f32 %v6579_v5  ;;  %vm2679_vm10 = vweird.f32 %v6555_v9  ;;  %v2684_v52 = vand.u32 2147483648, %v6469_v47  ;;  %3265 = vmatpush.msrb.mxu2 %v3061_v16  ;;  %v2919_v13 = vadd.f32 %v6409_v12, %v2806_v46  ;;  %3226 = vmatpush.msrb.mxu0 %v3028_v55 }
 0x273   : > { %v2882_v30 = vrot.slane %v2881_v53, 4  ;;  %v2644_v27 = vmul.f32 %v6596_v37, %v6504_v1  ;;  %v2676_v60 = vmul.f32 %v6555_v9, %v2675_v19  ;;  %v2682_v20 = vand.u32 2147483647, %v6469_v47  ;;  %3246 = vmatpush.msrb.mxu1 %v3044_v58  ;;  %3287 = vmatpush.msrb.mxu3 %v3075_v31 }
 0x274   : > { %v6630_v43 = vadd.f32 1.0, %v4107_v62  ;;  %v6635_v42 = vadd.f32 %v2892_v51, %v2804_v34  ;;  %v6639_v36 = vsel %vm6562_vm15, %v2505_v48, %v2501_v50  ;;  %vm2678_vm11 = vweird.f32 %v6469_v47  ;;  %3266 = vmatpush.msrb.mxu2 %v3060_v26  ;;  %v3027_v51 = vld [vmem:[%s8060_s5 + $0x40] sm:$0xff]  ;;  %v3058_v62 = vld [vmem:[%s8060_s5 + $0x138] sm:$0xff]  ;;  %v1014_v26 = vpop.f32.mrf.mxu2 }
 0x275   : > { %v2645_v12 = vsub.f32 1.0, %v2644_v27  ;;  %v6642_v38 = vadd.f32 %v2882_v30, %v2881_v53  ;;  %v2677_v21 = vadd.f32 %v6555_v9, %v2676_v60  ;;  %vm6647_vm12 = vmor %vm2678_vm11, %vm2679_vm10  ;;  %v2654_v22 = vand.u32 2147483648, %v6504_v1  ;;  %3227 = vmatpush.msrb.mxu0 %v3027_v51  ;;  %3247 = vmatpush.msrb.mxu1 %v3043_v10  ;;  %v3073_v27 = vld [vmem:[%s8060_s5 + $0x1b0] sm:$0xff] }
 0x276   : > { %v4111_v33 = vpop.eup %4110  ;;  %v3696_v61 = vmul.f32 -1.442695, %v6603_v25  ;;  %v2685_v40 = vor.u32 1.1754944e-38, %v2684_v52  ;;  %vm2649_vm13 = vweird.f32 %v6596_v37  ;;  %v2652_v24 = vand.u32 2147483647, %v6504_v1  ;;  %3267 = vmatpush.msrb.mxu2 %v3059_v23  ;;  %3288 = vmatpush.msrb.mxu3 %v3074_v44  ;;  %v3057_v52 = vld [vmem:[%s8060_s5 + $0x130] sm:$0xff]  ;;  %v6752_v23 = vpop.f32.mrf.mxu1 }
 0x277   : > { %v4113_v47 = vpop.eup %4112  ;;  %v2646_v0 = vmul.f32 %v6596_v37, %v2645_v12  ;;  %v2681_v59 = vsel %vm6647_vm12, %v6555_v9, %v2677_v21  ;;  %vm2683_vm14 = vcmp.eq.f32.partialorder %v2682_v20, 8.507059e+37  ;;  %vm2648_vm3 = vweird.f32 %v6504_v1  ;;  %v3026_v9 = vld [vmem:[%s8060_s5 + $0x38] sm:$0xff]  ;;  %3248 = vmatpush.msrb.mxu1 %v3042_v14  ;;  %v3025_v1 = vld [vmem:[%s8060_s5 + $0x30] sm:$0xff]  ;;  %v3040_v14 = vld [vmem:[%s8060_s5 + $0xa8] sm:$0xff] }
 0x278   : > { %v6665_v18 = vpop.eup %4114  ;;  %4116 = vrcp.f32 %v6630_v43  ;;  %v2686_v41 = vsel %vm2683_vm14, %v2685_v40, %v2681_v59  ;;  %v6678_v17 = vadd.f32 1.0, %v4111_v33  ;;  %v2884_v34 = vrot.slane %v6642_v38, 2  ;;  %vm6695_vm1 = vmor %vm2648_vm3, %vm2649_vm13  ;;  %3228 = vmatpush.msrb.mxu0 %v3026_v9  ;;  %3268 = vmatpush.msrb.mxu2 %v3058_v62  ;;  %v3056_v62 = vld [vmem:[%s8060_s5 + $0x128] sm:$0xff] }
 0x279   : > { %v2647_v8 = vadd.f32 %v6596_v37, %v2646_v0  ;;  %v2659_v46 = vmul.f32 %v6665_v18, %v6579_v5  ;;  %v2817_v11 = vmul.f32 %v2686_v41, %v6265_v29  ;;  %v2655_v53 = vor.u32 1.1754944e-38, %v2654_v22  ;;  %3249 = vmatpush.msrb.mxu1 %v3041_v32  ;;  %3289 = vmatpush.msrb.mxu3 %v3073_v27  ;;  %v3072_v44 = vld [vmem:[%s8060_s5 + $0x1a8] sm:$0xff] }
 0x27a   : > { %4118 = vpow2.f32 %v3696_v61  ;;  %vm2653_vm0 = vcmp.eq.f32.partialorder %v2652_v24, 8.507059e+37  ;;  %v6705_v19 = vadd.f32 1.0, %v4113_v47  ;;  %v2667_v30 = vand.u32 2147483647, %v6579_v5  ;;  %3229 = vmatpush.msrb.mxu0 %v3025_v1  ;;  %3269 = vmatpush.msrb.mxu2 %v3057_v52 }
 0x27b   : > { %v2651_v29 = vsel %vm6695_vm1, %v6596_v37, %v2647_v8  ;;  %v2660_v50 = vsub.f32 1.0, %v2659_v46  ;;  %v2920_v16 = vadd.f32 %v2919_v13, %v2817_v11  ;;  %v2669_v37 = vand.u32 2147483648, %v6579_v5  ;;  %v1043_v13 = vpop.f32.mrf.mxu3  ;;  %3250 = vmatpush.msrb.mxu1 %v3040_v14  ;;  %3290 = vmatpush.msrb.mxu3 %v3072_v44 }
 0x27c   : > { %v2656_v3 = vsel %vm2653_vm0, %v2655_v53, %v2651_v29  ;;  %vm2664_vm5 = vweird.f32 %v6665_v18  ;;  %4120 = vrcp.f32 %v6678_v17  ;;  %v2905_v20 = vadd.f32 %v6289_v63, %v6442_v7  ;;  %3270 = vmatpush.msrb.mxu2 %v3056_v62 }
 0x27d   : > { %v2815_v55 = vmul.f32 %v2656_v3, %v6268_v49  ;;  %v2661_v58 = vmul.f32 %v6665_v18, %v2660_v50  ;;  %v2805_v2 = vmul.f32 %v6639_v36, %v6176_v57  ;;  %v2885_v49 = vadd.f32 %v2884_v34, %v6642_v38  ;;  %v3023_v3 = vld [vmem:[%s8060_s5 + $0x20] sm:$0xff] }
 0x27e   : > { %v6725_v60 = vpop.eup %4116  ;;  %v2921_v12 = vrot.slane %v2920_v16, 4  ;;  %vm2663_vm2 = vweird.f32 %v6579_v5  ;;  %4122 = vrcp.f32 %v6705_v19  ;;  %v2670_v63 = vor.u32 1.1754944e-38, %v2669_v37  ;;  %v3055_v37 = vld [vmem:[%s8060_s5 + $0x120] sm:$0xff] }
 0x27f   : > { %v2894_v33 = vadd.f32 %v6635_v42, %v2815_v55  ;;  %v2662_v21 = vadd.f32 %v6665_v18, %v2661_v58  ;;  %vm2665_vm8 = vmor %vm2663_vm2, %vm2664_vm5  ;;  %v6739_v57 = vadd.f32 %v1014_v26, %v6450_v35  ;;  %v6742_v7 = vadd.f32 %v1043_v13, %v6460_v6  ;;  %v1017_v26 = vpop.f32.mrf.mxu2  ;;  %v3071_v13 = vld [vmem:[%s8060_s5 + $0x1a0] sm:$0xff]  ;;  %3271 = vmatpush.msrb.mxu2 %v3055_v37 }
 0x280   : > { %v4119_v15 = vpop.eup %4118  ;;  %v2922_v22 = vadd.f32 %v2921_v12, %v2920_v16  ;;  %vm2668_vm7 = vcmp.eq.f32.partialorder %v2667_v30, 8.507059e+37  ;;  %v1534_v5 = vmul.f32 %v6725_v60, %v6630_v43  ;;  %v2906_v38 = vadd.f32 %v2905_v20, %v2805_v2  ;;  %v3039_v30 = vld [vmem:[%s8060_s5 + $0xa0] sm:$0xff]  ;;  %3291 = vmatpush.msrb.mxu3 %v3071_v13 }
 0x281   : > { %v2895_v36 = vrot.slane %v2894_v33, 4  ;;  %v2666_v42 = vsel %vm2665_vm8, %v6665_v18, %v2662_v21  ;;  %v2886_v61 = vrot.slane %v2885_v49, 1  ;;  %v6750_v10 = vadd.f32 1.0, %v4119_v15  ;;  %3251 = vmatpush.msrb.mxu1 %v3039_v30  ;;  %v3038_v21 = vld [vmem:[%s8060_s5 + $0x98] sm:$0xff] }
 0x282   : > { %v2671_v47 = vsel %vm2668_vm7, %v2670_v63, %v2666_v42  ;;  %v6747_v40 = vpop.eup %4120  ;;  %v2923_v0 = vrot.slane %v2922_v22, 2  ;;  %v1544_v59 = vand.u32 2147483648, %v6630_v43  ;;  %v3697_v18 = vmul.f32 -1.442695, %v6739_v57  ;;  %v3054_v15 = vld [vmem:[%s8060_s5 + $0x118] sm:$0xff] }
 0x283   : > { %v2896_v24 = vadd.f32 %v2895_v36, %v2894_v33  ;;  %v2816_v51 = vmul.f32 %v2671_v47, %v6435_v56  ;;  %v6757_v31 = vmul.f32 -1.442695, %v6742_v7  ;;  %v1535_v9 = vsub.f32 1.0, %v1534_v5  ;;  %v3024_v56 = vld [vmem:[%s8060_s5 + $0x28] sm:$0xff]  ;;  %v1046_v12 = vpop.f32.mrf.mxu3  ;;  %v3022_v33 = vld [vmem:[%s8060_s5 + $0x18] sm:$0xff]  ;;  %3252 = vmatpush.msrb.mxu1 %v3038_v21  ;;  %3272 = vmatpush.msrb.mxu2 %v3054_v15 }
 0x284   : > { %v6759_v41 = vpop.eup %4122  ;;  %v6770_v34 = vadd.f32 %v2886_v61, %v2885_v49  ;;  %v1542_v11 = vand.u32 2147483647, %v6630_v43  ;;  %v6775_v48 = vmul.f32 %v6747_v40, %v6678_v17  ;;  %v1559_v53 = vand.u32 2147483648, %v6678_v17  ;;  %3230 = vmatpush.msrb.mxu0 %v3024_v56  ;;  %v3070_v5 = vld [vmem:[%s8060_s5 + $0x198] sm:$0xff] }
 0x285   : > { %v2897_v8 = vrot.slane %v2896_v24, 2  ;;  %v2907_v46 = vadd.f32 %v2906_v38, %v2816_v51  ;;  %v6781_v29 = vadd.f32 %v2923_v0, %v2922_v22  ;;  %4124 = vrcp.f32 %v6750_v10  ;;  %3292 = vmatpush.msrb.mxu3 %v3070_v5  ;;  %v3021_v0 = vld [vmem:[%s8060_s5 + $0x10] sm:$0xff] }
 0x286   : > { %vm2992_vm15 = vcmask 1044484   ;;  %vm1538_vm9 = vweird.f32 %v6630_v43  ;;  %vm1539_vm10 = vweird.f32 %v6725_v60  ;;  %v6786_v32 = vor.u32 1.1754944e-38, %v1544_v59  ;;  %3231 = vmatpush.msrb.mxu0 %v3023_v3  ;;  %v3053_v51 = vld [vmem:[%s8060_s5 + $0x110] sm:$0xff]  ;;  %v3128_v43 = vld [vmem:[%s8060_s5 + $0x368] sm:$0xff] }
 0x287   : > { %v2898_v50 = vadd.f32 %v2897_v8, %v2896_v24  ;;  %v2908_v1 = vrot.slane %v2907_v46, 4  ;;  %v6790_v16 = vmul.f32 %v6759_v41, %v6705_v19  ;;  %v1536_v55 = vmul.f32 %v6725_v60, %v1535_v9  ;;  %v3037_v24 = vld [vmem:[%s8060_s5 + $0x90] sm:$0xff]  ;;  %3273 = vmatpush.msrb.mxu2 %v3053_v51  ;;  %vm6867_vm5 = vmor %vm1538_vm9, %vm1539_vm10  ;;  %v3019_v51 = vld [vmem:[%s8060_s5] sm:$0xff] }
 0x288   : > { %v1557_v58 = vand.u32 2147483647, %v6678_v17  ;;  %v2980_v20 = vrot.slane %v6770_v34, 4  ;;  %vm2994_vm11 = vcmask 1046534   ;;  %v1550_v2 = vsub.f32 1.0, %v6775_v48  ;;  %3232 = vmatpush.msrb.mxu0 %v3022_v33  ;;  %3253 = vmatpush.msrb.mxu1 %v3037_v24  ;;  %v3069_v9 = vld [vmem:[%s8060_s5 + $0x190] sm:$0xff] }
 0x289   : > { %v2899_v52 = vrot.slane %v2898_v50, 1  ;;  %v2909_v27 = vadd.f32 %v2908_v1, %v2907_v46  ;;  %vm1553_vm12 = vweird.f32 %v6678_v17  ;;  %v6809_v49 = vor.u32 1.1754944e-38, %v1559_v53  ;;  %v990_v46 = vpop.f32.mrf.mxu1  ;;  %3293 = vmatpush.msrb.mxu3 %v3069_v9  ;;  %v3096_v17 = vld [vmem:[%s8060_s5 + $0x268] sm:$0xff] }
 0x28a   : > { %v2925_v22 = vrot.slane %v6781_v29, 1  ;;  %vm2996_vm13 = vcmask 1045508   ;;  %vm6821_vm14 = vcmp.eq.f32.partialorder %v1542_v11, 8.507059e+37  ;;  %vm1568_vm3 = vweird.f32 %v6705_v19  ;;  %3233 = vmatpush.msrb.mxu0 %v3021_v0  ;;  %v1019_v0 = vpop.f32.mrf.mxu2 }
 0x28b   : > { %v2900_v63 = vadd.f32 %v2899_v52, %v2898_v50  ;;  %v2910_v36 = vrot.slane %v2909_v27, 2  ;;  %vm2998_vm1 = vcmask 1043456   ;;  %v1565_v38 = vsub.f32 1.0, %v6790_v16  ;;  %v6846_v59 = vpop.eup %4124  ;;  %v1048_v24 = vpop.f32.mrf.mxu3 }
 0x28c   : > { %4126 = vpow2.f32 %v3697_v18  ;;  %v6832_v61 = vadd.f32 %v6752_v23, %v6437_v4  ;;  %v6835_v47 = vadd.f32 %v1017_v26, %v6450_v35  ;;  %v1537_v18 = vadd.f32 %v6725_v60, %v1536_v55 }
 0x28d   : > { %v2911_v23 = vadd.f32 %v2910_v36, %v2909_v27  ;;  %4128 = vpow2.f32 %v6757_v31  ;;  %v6851_v8 = vadd.f32 %v1046_v12, %v6460_v6  ;;  %v1551_v56 = vmul.f32 %v6747_v40, %v1550_v2  ;;  %v3068_v36 = vld [vmem:[%s8060_s5 + $0x188] sm:$0xff] }
 0x28e   : > { %vm1554_vm0 = vweird.f32 %v6747_v40  ;;  %v1699_v14 = vmul.f32 %v6846_v59, %v6750_v10  ;;  %v3707_v62 = vmul.f32 -1.442695, %v6832_v61  ;;  %v2926_v31 = vadd.f32 %v2925_v22, %v6781_v29  ;;  %v3036_v22 = vld [vmem:[%s8060_s5 + $0x88] sm:$0xff]  ;;  %3294 = vmatpush.msrb.mxu3 %v3068_v36 }
 0x28f   : > { %v2981_v11 = vrot.slane %v2900_v63, 3  ;;  %v2912_v48 = vrot.slane %v2911_v23, 1  ;;  %v3708_v53 = vmul.f32 -1.442695, %v6835_v47  ;;  %v1566_v50 = vmul.f32 %v6759_v41, %v1565_v38  ;;  %vm6895_vm7 = vmor %vm1553_vm12, %vm1554_vm0  ;;  %v3052_v63 = vld [vmem:[%s8060_s5 + $0x108] sm:$0xff]  ;;  %3254 = vmatpush.msrb.mxu1 %v3036_v22 }
 0x290   : > { %v1700_v1 = vsub.f32 1.0, %v1699_v14  ;;  %4130 = vpow2.f32 %v3707_v62  ;;  %v3709_v16 = vmul.f32 -1.442695, %v6851_v8  ;;  %v1541_v29 = vsel %vm6867_vm5, %v6725_v60, %v1537_v18  ;;  %3274 = vmatpush.msrb.mxu2 %v3052_v63  ;;  %v3051_v18 = vld [vmem:[%s8060_s5 + $0x100] sm:$0xff]  ;;  %v3144_v22 = vld [vmem:[%s8060_s5 + $0x3e8] sm:$0xff] }
 0x291   : > { %v2913_v3 = vadd.f32 %v2912_v48, %v2911_v23  ;;  %vm1569_vm2 = vweird.f32 %v6759_v41  ;;  %4132 = vpow2.f32 %v3708_v53  ;;  %vm6879_vm8 = vcmp.eq.f32.partialorder %v1557_v58, 8.507059e+37  ;;  %v3035_v23 = vld [vmem:[%s8060_s5 + $0x80] sm:$0xff]  ;;  %v993_v62 = vpop.f32.mrf.mxu1 }
 0x292   : > { %v4127_v30 = vpop.eup %4126  ;;  %v1572_v37 = vand.u32 2147483647, %v6705_v19  ;;  %v1701_v52 = vmul.f32 %v6846_v59, %v1700_v1  ;;  %4134 = vpow2.f32 %v3709_v16  ;;  %v6886_v27 = vadd.f32 %v990_v46, %v6437_v4  ;;  %3255 = vmatpush.msrb.mxu1 %v3035_v23  ;;  %3275 = vmatpush.msrb.mxu2 %v3051_v18  ;;  %v3130_v1 = vld [vmem:[%s8060_s5 + $0x378] sm:$0xff]  ;;  %v3111_v23 = vld [vmem:[%s8060_s5 + $0x2e0] sm:$0xff] }
 0x293   : > { %v4129_v55 = vpop.eup %4128  ;;  %v2983_v60 = vrot.slane %v2926_v31, 1  ;;  %v2993_v26 = vsel %vm2992_vm15, %v2980_v20, %v2981_v11  ;;  %v2982_v13 = vrot.slane %v2913_v3, 2  ;;  %v6899_v2 = vadd.f32 1.0, %v4127_v30  ;;  %vm6916_vm15 = vmor %vm1568_vm3, %vm1569_vm2  ;;  %v3067_v31 = vld [vmem:[%s8060_s5 + $0x180] sm:$0xff]  ;;  %v3098_v11 = vld [vmem:[%s8060_s5 + $0x278] sm:$0xff] }
 0x294   : > { %v6904_v12 = vsel %vm6821_vm14, %v6786_v32, %v1541_v29  ;;  %v6907_v34 = vadd.f32 %v6747_v40, %v1551_v56  ;;  %v6910_v20 = vadd.f32 %v6759_v41, %v1566_v50  ;;  %v6920_v33 = vadd.f32 1.0, %v4129_v55  ;;  %v3020_v32 = vld [vmem:[%s8060_s5 + $0x8] sm:$0xff]  ;;  %v3146_v16 = vld [vmem:[%s8060_s5 + $0x3f8] sm:$0xff]  ;;  %3295 = vmatpush.msrb.mxu3 %v3067_v31  ;;  %3340 = vmatpush.msra.mxu2 %v3130_v1  ;;  %v3127_v18 = vld [vmem:[%s8060_s5 + $0x360] sm:$0xff] }
 0x295   : > { %v2995_v21 = vsel %vm2994_vm11, %v2982_v13, %v2983_v60  ;;  %v1574_v15 = vand.u32 2147483648, %v6705_v19  ;;  %vm1704_vm9 = vweird.f32 %v6846_v59  ;;  %4136 = vrcp.f32 %v6899_v2  ;;  %3234 = vmatpush.msrb.mxu0 %v3020_v32  ;;  %v3145_v13 = vld [vmem:[%s8060_s5 + $0x3f0] sm:$0xff]  ;;  %v3112_v32 = vld [vmem:[%s8060_s5 + $0x2e8] sm:$0xff]  ;;  %v3126_v1 = vld [vmem:[%s8060_s5 + $0x358] sm:$0xff] }
 0x296   : > { %v4131_v42 = vpop.eup %4130  ;;  %v2997_v19 = vsel %vm2996_vm13, %v2993_v26, %v2995_v21  ;;  %v6940_v5 = vadd.f32 %v6846_v59, %v1701_v52  ;;  %4138 = vrcp.f32 %v6920_v33  ;;  %v3718_v38 = vmul.f32 -1.442695, %v6886_v27  ;;  %v3129_v26 = vld [vmem:[%s8060_s5 + $0x370] sm:$0xff]  ;;  %3360 = vmatpush.msra.mxu3 %v3146_v16 }
 0x297   : > { %v4133_v46 = vpop.eup %4132  ;;  %v2999_v9 = vsel %vm2998_vm1, %v5539_v28, %v2997_v19  ;;  %vm6955_vm10 = vcmp.eq.f32.partialorder %v1572_v37, 8.507059e+37  ;;  %vm1703_vm11 = vweird.f32 %v6750_v10  ;;  %v1709_v14 = vand.u32 2147483648, %v6750_v10  ;;  %3235 = vmatpush.msrb.mxu0 %v3019_v51  ;;  %v3114_v28 = vld [vmem:[%s8060_s5 + $0x2f8] sm:$0xff]  ;;  %v3113_v37 = vld [vmem:[%s8060_s5 + $0x2f0] sm:$0xff]  ;;  %3341 = vmatpush.msra.mxu2 %v3129_v26 }
 0x298   : > { %v4135_v48 = vpop.eup %4134  ;;  %v1556_v53 = vsel %vm6895_vm7, %v6747_v40, %v6907_v34  ;;  %v1571_v44 = vsel %vm6916_vm15, %v6759_v41, %v6910_v20  ;;  %v1707_v50 = vand.u32 2147483647, %v6750_v10  ;;  %vm6989_vm12 = vmor %vm1703_vm11, %vm1704_vm9  ;;  %v6993_v41 = vadd.f32 1.0, %v4131_v42  ;;  %v3097_v10 = vld [vmem:[%s8060_s5 + $0x270] sm:$0xff]  ;;  %3006 = vst [vmem:[#allocation2] sm:$0xff] %v2999_v9  ;;  %3320 = vmatpush.msra.mxu1 %v3114_v28  ;;  %3361 = vmatpush.msra.mxu3 %v3145_v13 }
 0x299   : > { %v6995_v3 = vadd.f32 1.0, %v4133_v46  ;;  %v6998_v29 = vadd.f32 %v1019_v0, %v6450_v35  ;;  %v7001_v30 = vadd.f32 %v1048_v24, %v6460_v6  ;;  %3300 = vmatpush.msra.mxu0 %v3098_v11  ;;  %v1575_v52 = vor.u32 1.1754944e-38, %v1574_v15  ;;  %3342 = vmatpush.msra.mxu2 %v3128_v43 }
 0x29a   : > { %v1706_v55 = vsel %vm6989_vm12, %v6846_v59, %v6940_v5  ;;  %4140 = vpow2.f32 %v3718_v38  ;;  %v7014_v60 = vadd.f32 %v993_v62, %v6437_v4  ;;  %v1561_v59 = vsel %vm6879_vm8, %v6809_v49, %v1556_v53  ;;  %3321 = vmatpush.msra.mxu1 %v3113_v37  ;;  %3362 = vmatpush.msra.mxu3 %v3144_v22  ;;  %v3143_v62 = vld [vmem:[%s8060_s5 + $0x3e0] sm:$0xff]  ;;  %v1022_v37 = vpop.f32.mrf.mxu2  ;;  %v3125_v22 = vld [vmem:[%s8060_s5 + $0x350] sm:$0xff] }
 0x29b   : > { %v7022_v58 = vpop.eup %4136  ;;  %v1710_v34 = vor.u32 1.1754944e-38, %v1709_v14  ;;  %4142 = vrcp.f32 %v6993_v41  ;;  %v7028_v20 = vadd.f32 1.0, %v4135_v48  ;;  %3301 = vmatpush.msra.mxu0 %v3097_v10  ;;  %v1576_v21 = vsel %vm6955_vm10, %v1575_v52, %v1571_v44  ;;  %3343 = vmatpush.msra.mxu2 %v3127_v18  ;;  %v3094_v44 = vld [vmem:[%s8060_s5 + $0x258] sm:$0xff] }
 0x29c   : > { %v7039_v49 = vpop.eup %4138  ;;  %vm1708_vm13 = vcmp.eq.f32.partialorder %v1707_v50, 8.507059e+37  ;;  %v1714_v15 = vmul.f32 %v7022_v58, %v6899_v2  ;;  %4144 = vrcp.f32 %v6995_v3  ;;  %v2741_v63 = vmul.f32 %v6904_v12, %v6465_v45  ;;  %3322 = vmatpush.msra.mxu1 %v3112_v32  ;;  %3363 = vmatpush.msra.mxu3 %v3143_v62  ;;  %v3110_v50 = vld [vmem:[%s8060_s5 + $0x2d8] sm:$0xff] }
 0x29d   : > { %v1711_v36 = vsel %vm1708_vm13, %v1710_v34, %v1706_v55  ;;  %v1729_v42 = vmul.f32 %v7039_v49, %v6920_v33  ;;  %v3719_v19 = vmul.f32 -1.442695, %v6998_v29  ;;  %3302 = vmatpush.msra.mxu0 %v3096_v17  ;;  %v7055_v5 = vmul.f32 %v1561_v59, %v6475_v54  ;;  %v3095_v54 = vld [vmem:[%s8060_s5 + $0x260] sm:$0xff]  ;;  %v3142_v52 = vld [vmem:[%s8060_s5 + $0x3d8] sm:$0xff]  ;;  %3344 = vmatpush.msra.mxu2 %v3126_v1  ;;  %v3093_v34 = vld [vmem:[%s8060_s5 + $0x250] sm:$0xff] }
 0x29e   : > { %v1715_v38 = vsub.f32 1.0, %v1714_v15  ;;  %v7058_v0 = vmul.f32 -1.442695, %v7001_v30  ;;  %v7061_v24 = vmul.f32 -1.442695, %v7014_v60  ;;  %v7064_v45 = vmul.f32 %v1576_v21, %v6489_v39  ;;  %3323 = vmatpush.msra.mxu1 %v3111_v23  ;;  %3364 = vmatpush.msra.mxu3 %v3142_v52 }
 0x29f   : > { %v1722_v12 = vand.u32 2147483647, %v6899_v2  ;;  %v1730_v51 = vsub.f32 1.0, %v1729_v42  ;;  %4146 = vrcp.f32 %v7028_v20  ;;  %v2752_v46 = vmul.f32 %v1711_v36, %v6603_v25  ;;  %3303 = vmatpush.msra.mxu0 %v3095_v54  ;;  %3345 = vmatpush.msra.mxu2 %v3125_v22  ;;  %v3124_v54 = vld [vmem:[%s8060_s5 + $0x348] sm:$0xff] }
 0x2a0   : > { %v4141_v39 = vpop.eup %4140  ;;  %v1716_v9 = vmul.f32 %v7022_v58, %v1715_v38  ;;  %v1724_v56 = vand.u32 2147483648, %v6899_v2  ;;  %v1737_v14 = vand.u32 2147483647, %v6920_v33  ;;  %vm1719_vm14 = vweird.f32 %v7022_v58  ;;  %3324 = vmatpush.msra.mxu1 %v3110_v50 }
 0x2a1   : > { %v7084_v31 = vpop.eup %4142  ;;  %v1731_v11 = vmul.f32 %v7039_v49, %v1730_v51  ;;  %v7088_v28 = vadd.f32 1.0, %v4141_v39  ;;  %4148 = vpow2.f32 %v3719_v19  ;;  %vm1718_vm3 = vweird.f32 %v6899_v2  ;;  %3304 = vmatpush.msra.mxu0 %v3094_v44  ;;  %v3109_v2 = vld [vmem:[%s8060_s5 + $0x2d0] sm:$0xff]  ;;  %v3108_v51 = vld [vmem:[%s8060_s5 + $0x2c8] sm:$0xff]  ;;  %3346 = vmatpush.msra.mxu2 %v3124_v54 }
 0x2a2   : > { %v7090_v25 = vpop.eup %4144  ;;  %vm1734_vm1 = vweird.f32 %v7039_v49  ;;  %v1739_v48 = vand.u32 2147483648, %v6920_v33  ;;  %v1864_v53 = vmul.f32 %v7084_v31, %v6993_v41  ;;  %v1717_v16 = vadd.f32 %v7022_v58, %v1716_v9  ;;  %vm7118_vm0 = vmor %vm1718_vm3, %vm1719_vm14  ;;  %3325 = vmatpush.msra.mxu1 %v3109_v2  ;;  %v3140_v9 = vld [vmem:[%s8060_s5 + $0x3c8] sm:$0xff] }
 0x2a3   : > { %v1732_v40 = vadd.f32 %v7039_v49, %v1731_v11  ;;  %v1879_v10 = vmul.f32 %v7090_v25, %v6995_v3  ;;  %4150 = vrcp.f32 %v7088_v28  ;;  %vm7122_vm5 = vcmp.eq.f32.partialorder %v1722_v12, 8.507059e+37  ;;  %3305 = vmatpush.msra.mxu0 %v3093_v34  ;;  %v3092_v12 = vld [vmem:[%s8060_s5 + $0x248] sm:$0xff]  ;;  %v3090_v11 = vld [vmem:[%s8060_s5 + $0x238] sm:$0xff] }
 0x2a4   : > { %vm1733_vm2 = vweird.f32 %v6920_v33  ;;  %v1865_v13 = vsub.f32 1.0, %v1864_v53  ;;  %v1874_v59 = vand.u32 2147483648, %v6993_v41  ;;  %v7136_v32 = vadd.f32 %v2752_v46, %v2741_v63  ;;  %v3141_v63 = vld [vmem:[%s8060_s5 + $0x3d0] sm:$0xff]  ;;  %3326 = vmatpush.msra.mxu1 %v3108_v51 }
 0x2a5   : > { %v7134_v17 = vpop.eup %4146  ;;  %v1725_v43 = vor.u32 1.1754944e-38, %v1724_v56  ;;  %vm7140_vm8 = vmor %vm1733_vm2, %vm1734_vm1  ;;  %vm7144_vm7 = vcmp.eq.f32.partialorder %v1737_v14, 8.507059e+37  ;;  %v1872_v15 = vand.u32 2147483647, %v6993_v41  ;;  %v1740_v36 = vor.u32 1.1754944e-38, %v1739_v48  ;;  %3365 = vmatpush.msra.mxu3 %v3141_v63  ;;  %3306 = vmatpush.msra.mxu0 %v3092_v12  ;;  %v3091_v63 = vld [vmem:[%s8060_s5 + $0x240] sm:$0xff] }
 0x2a6   : > { %v1880_v42 = vsub.f32 1.0, %v1879_v10  ;;  %v1894_v19 = vmul.f32 %v7134_v17, %v7028_v20  ;;  %v7158_v38 = vadd.f32 %v1022_v37, %v6450_v35  ;;  %v1721_v18 = vsel %vm7118_vm0, %v7022_v58, %v1717_v16  ;;  %v3139_v12 = vld [vmem:[%s8060_s5 + $0x3c0] sm:$0xff]  ;;  %v3137_v33 = vld [vmem:[%s8060_s5 + $0x3b0] sm:$0xff] }
 0x2a7   : > { %v4149_v23 = vpop.eup %4148  ;;  %v1736_v39 = vsel %vm7140_vm8, %v7039_v49, %v1732_v40  ;;  %v1866_v46 = vmul.f32 %v7084_v31, %v1865_v13  ;;  %vm1868_vm15 = vweird.f32 %v6993_v41  ;;  %v7180_v56 = vor.u32 1.1754944e-38, %v1874_v59  ;;  %3366 = vmatpush.msra.mxu3 %v3140_v9  ;;  %v1051_v40 = vpop.f32.mrf.mxu3  ;;  %3307 = vmatpush.msra.mxu0 %v3091_v63 }
 0x2a8   : > { %vm1883_vm9 = vweird.f32 %v6995_v3  ;;  %v1887_v58 = vand.u32 2147483647, %v6995_v3  ;;  %v1889_v14 = vand.u32 2147483648, %v6995_v3  ;;  %v1895_v62 = vsub.f32 1.0, %v1894_v19  ;;  %v1024_v9 = vpop.f32.mrf.mxu2 }
 0x2a9   : > { %v7185_v49 = vpop.eup %4150  ;;  %vm7187_vm10 = vcmp.eq.f32.partialorder %v1872_v15, 8.507059e+37  ;;  %vm1898_vm11 = vweird.f32 %v7028_v20  ;;  %v1902_v48 = vand.u32 2147483647, %v7028_v20  ;;  %v7193_v53 = vadd.f32 1.0, %v4149_v23  ;;  %3367 = vmatpush.msra.mxu3 %v3139_v12  ;;  %3308 = vmatpush.msra.mxu0 %v3090_v11  ;;  %v3119_v11 = vld [vmem:[%s8060_s5 + $0x320] sm:$0xff] }
 0x2aa   : > { %4152 = vpow2.f32 %v7058_v0  ;;  %v1726_v44 = vsel %vm7122_vm5, %v1725_v43, %v1721_v18  ;;  %v1741_v50 = vsel %vm7144_vm7, %v1740_v36, %v1736_v39  ;;  %v1881_v1 = vmul.f32 %v7090_v25, %v1880_v42  ;;  %v995_v0 = vpop.f32.mrf.mxu1  ;;  %v3107_v36 = vld [vmem:[%s8060_s5 + $0x2c0] sm:$0xff] }
 0x2ab   : > { %v2029_v16 = vmul.f32 %v7185_v49, %v7088_v28  ;;  %v1867_v10 = vadd.f32 %v7084_v31, %v1866_v46  ;;  %vm1869_vm12 = vweird.f32 %v7084_v31  ;;  %v1896_v37 = vmul.f32 %v7134_v17, %v1895_v62  ;;  %v3123_v42 = vld [vmem:[%s8060_s5 + $0x340] sm:$0xff]  ;;  %3327 = vmatpush.msra.mxu1 %v3107_v36  ;;  %v3120_v36 = vld [vmem:[%s8060_s5 + $0x328] sm:$0xff] }
 0x2ac   : > { %4154 = vrcp.f32 %v7193_v53  ;;  %vm7207_vm13 = vcmp.eq.f32.partialorder %v1887_v58, 8.507059e+37  ;;  %v1890_v55 = vor.u32 1.1754944e-38, %v1889_v14  ;;  %v1904_v26 = vand.u32 2147483648, %v7028_v20  ;;  %vm7219_vm14 = vmor %vm1868_vm15, %vm1869_vm12  ;;  %3347 = vmatpush.msra.mxu2 %v3123_v42  ;;  %v3136_v42 = vld [vmem:[%s8060_s5 + $0x3a8] sm:$0xff] }
 0x2ad   : > { %v2030_v13 = vsub.f32 1.0, %v2029_v16  ;;  %v2037_v59 = vand.u32 2147483647, %v7088_v28  ;;  %v2753_v34 = vmul.f32 %v1726_v44, %v6739_v57  ;;  %v2754_v2 = vmul.f32 %v1741_v50, %v6742_v7  ;;  %v3122_v16 = vld [vmem:[%s8060_s5 + $0x338] sm:$0xff] }
 0x2ae   : > { %v2039_v43 = vand.u32 2147483648, %v7088_v28  ;;  %4156 = vpow2.f32 %v7061_v24  ;;  %v1882_v21 = vadd.f32 %v7090_v25, %v1881_v1  ;;  %vm1884_vm3 = vweird.f32 %v7090_v25  ;;  %3348 = vmatpush.msra.mxu2 %v3122_v16 }
 0x2af   : > { %vm7225_vm1 = vcmp.eq.f32.partialorder %v1902_v48, 8.507059e+37  ;;  %v3730_v57 = vmul.f32 -1.442695, %v7158_v38  ;;  %v1871_v24 = vsel %vm7219_vm14, %v7084_v31, %v1867_v10  ;;  %v1897_v41 = vadd.f32 %v7134_v17, %v1896_v37  ;;  %vm7263_vm2 = vmor %vm1883_vm9, %vm1884_vm3  ;;  %v3106_v48 = vld [vmem:[%s8060_s5 + $0x2b8] sm:$0xff]  ;;  %v1053_v1 = vpop.f32.mrf.mxu3 }
 0x2b0   : > { %v4153_v7 = vpop.eup %4152  ;;  %vm1899_vm0 = vweird.f32 %v7134_v17  ;;  %v2031_v22 = vmul.f32 %v7185_v49, %v2030_v13  ;;  %v1905_v19 = vor.u32 1.1754944e-38, %v1904_v26  ;;  %vm2033_vm5 = vweird.f32 %v7088_v28  ;;  %3328 = vmatpush.msra.mxu1 %v3106_v48 }
 0x2b1   : > { %v7246_v31 = vadd.f32 1.0, %v4153_v7  ;;  %4158 = vpow2.f32 %v3730_v57  ;;  %v7254_v54 = vadd.f32 %v2753_v34, %v7055_v5  ;;  %v7257_v23 = vadd.f32 %v2754_v2, %v7064_v45  ;;  %vm7286_vm7 = vmor %vm1898_vm11, %vm1899_vm0  ;;  %v3105_v2 = vld [vmem:[%s8060_s5 + $0x2b0] sm:$0xff] }
 0x2b2   : > { %v7251_v51 = vpop.eup %4154  ;;  %vm7267_vm8 = vcmp.eq.f32.partialorder %v2037_v59, 8.507059e+37  ;;  %v7271_v46 = vor.u32 1.1754944e-38, %v2039_v43  ;;  %v7274_v5 = vadd.f32 %v1051_v40, %v6460_v6  ;;  %v1876_v45 = vsel %vm7187_vm10, %v7180_v56, %v1871_v24  ;;  %v3138_v40 = vld [vmem:[%s8060_s5 + $0x3b8] sm:$0xff]  ;;  %v998_v59 = vpop.f32.mrf.mxu1  ;;  %v3121_v43 = vld [vmem:[%s8060_s5 + $0x330] sm:$0xff]  ;;  %3329 = vmatpush.msra.mxu1 %v3105_v2  ;;  %v3088_v24 = vld [vmem:[%s8060_s5 + $0x228] sm:$0xff] }
 0x2b3   : > { %v1886_v3 = vsel %vm7263_vm2, %v7090_v25, %v1882_v21  ;;  %vm2034_vm15 = vweird.f32 %v7185_v49  ;;  %v2044_v14 = vmul.f32 %v7251_v51, %v7193_v53  ;;  %v1901_v56 = vsel %vm7286_vm7, %v7134_v17, %v1897_v41  ;;  %3368 = vmatpush.msra.mxu3 %v3138_v40  ;;  %3349 = vmatpush.msra.mxu2 %v3121_v43  ;;  %v3104_v41 = vld [vmem:[%s8060_s5 + $0x2a8] sm:$0xff] }
 0x2b4   : > { %v4157_v62 = vpop.eup %4156  ;;  %v2032_v25 = vadd.f32 %v7185_v49, %v2031_v22  ;;  %4160 = vrcp.f32 %v7246_v31  ;;  %v7299_v20 = vadd.f32 %v995_v0, %v6437_v4  ;;  %vm2048_vm9 = vweird.f32 %v7193_v53  ;;  %vm7326_vm10 = vmor %vm2033_vm5, %vm2034_vm15  ;;  %3330 = vmatpush.msra.mxu1 %v3104_v41 }
 0x2b5   : > { %v2045_v44 = vsub.f32 1.0, %v2044_v14  ;;  %v7308_v50 = vadd.f32 1.0, %v4157_v62  ;;  %v7311_v17 = vadd.f32 %v1024_v9, %v6450_v35  ;;  %v2763_v10 = vmul.f32 %v1876_v45, %v6832_v61  ;;  %v3089_v61 = vld [vmem:[%s8060_s5 + $0x230] sm:$0xff]  ;;  %3369 = vmatpush.msra.mxu3 %v3137_v33  ;;  %3350 = vmatpush.msra.mxu2 %v3120_v36  ;;  %v1027_v33 = vpop.f32.mrf.mxu2 }
 0x2b6   : > { %v1891_v37 = vsel %vm7207_vm13, %v1890_v55, %v1886_v3  ;;  %v2052_v26 = vand.u32 2147483647, %v7193_v53  ;;  %v3731_v13 = vmul.f32 -1.442695, %v7274_v5  ;;  %v1906_v55 = vsel %vm7225_vm1, %v1905_v19, %v1901_v56  ;;  %3309 = vmatpush.msra.mxu0 %v3089_v61  ;;  %v3087_v56 = vld [vmem:[%s8060_s5 + $0x220] sm:$0xff] }
 0x2b7   : > { %v4159_v52 = vpop.eup %4158  ;;  %v2046_v28 = vmul.f32 %v7251_v51, %v2045_v44  ;;  %v2054_v34 = vand.u32 2147483648, %v7193_v53  ;;  %4162 = vrcp.f32 %v7308_v50  ;;  %v2036_v21 = vsel %vm7326_vm10, %v7185_v49, %v2032_v25  ;;  %3370 = vmatpush.msra.mxu3 %v3136_v42  ;;  %v3103_v25 = vld [vmem:[%s8060_s5 + $0x2a0] sm:$0xff]  ;;  %3351 = vmatpush.msra.mxu2 %v3119_v11  ;;  %v3086_v11 = vld [vmem:[%s8060_s5 + $0x218] sm:$0xff] }
 0x2b8   : > { %v7352_v15 = vadd.f32 1.0, %v4159_v52  ;;  %v3740_v57 = vmul.f32 -1.442695, %v7299_v20  ;;  %v7356_v7 = vadd.f32 %v1053_v1, %v6460_v6  ;;  %v2764_v22 = vmul.f32 %v1891_v37, %v6835_v47  ;;  %3310 = vmatpush.msra.mxu0 %v3088_v24  ;;  %3331 = vmatpush.msra.mxu1 %v3103_v25 }
 0x2b9   : > { %4164 = vpow2.f32 %v3731_v13  ;;  %v3741_v49 = vmul.f32 -1.442695, %v7311_v17  ;;  %v7367_v63 = vadd.f32 %v998_v59, %v6437_v4  ;;  %v7378_v47 = vadd.f32 %v7136_v32, %v2763_v10 }
 0x2ba   : > { %v7375_v19 = vpop.eup %4160  ;;  %v2765_v12 = vmul.f32 %v1906_v55, %v6851_v8  ;;  %vm2049_vm11 = vweird.f32 %v7251_v51  ;;  %4166 = vrcp.f32 %v7352_v15  ;;  %v2041_v18 = vsel %vm7267_vm8, %v7271_v46, %v2036_v21  ;;  %3311 = vmatpush.msra.mxu0 %v3087_v56 }
 0x2bb   : > { %v2047_v9 = vadd.f32 %v7251_v51, %v2046_v28  ;;  %v2059_v45 = vmul.f32 %v7375_v19, %v7246_v31  ;;  %v2067_v32 = vand.u32 2147483647, %v7246_v31  ;;  %vm7390_vm12 = vcmp.eq.f32.partialorder %v2052_v26, 8.507059e+37  ;;  %vm7418_vm13 = vmor %vm2048_vm9, %vm2049_vm11 }
 0x2bc   : > { %v2055_v3 = vor.u32 1.1754944e-38, %v2054_v34  ;;  %4168 = vpow2.f32 %v3740_v57  ;;  %v3742_v58 = vmul.f32 -1.442695, %v7356_v7  ;;  %v7398_v39 = vadd.f32 %v7254_v54, %v2764_v22  ;;  %3312 = vmatpush.msra.mxu0 %v3086_v11 }
 0x2bd   : > { %v7395_v14 = vpop.eup %4162  ;;  %v2060_v46 = vsub.f32 1.0, %v2059_v45  ;;  %4170 = vpow2.f32 %v3741_v49  ;;  %v3751_v62 = vmul.f32 -1.442695, %v7367_v63  ;;  %v7411_v48 = vadd.f32 %v7257_v23, %v2765_v12  ;;  %v3135_v23 = vld [vmem:[%s8060_s5 + $0x3a0] sm:$0xff]  ;;  %v1056_v45 = vpop.f32.mrf.mxu3 }
 0x2be   : > { %v2774_v54 = vmul.f32 %v2041_v18, %v6886_v27  ;;  %vm2063_vm14 = vweird.f32 %v7246_v31  ;;  %v2194_v1 = vmul.f32 %v7395_v14, %v7308_v50  ;;  %v2051_v53 = vsel %vm7418_vm13, %v7251_v51, %v2047_v9  ;;  %3371 = vmatpush.msra.mxu3 %v3135_v23 }
 0x2bf   : > { %v4165_v27 = vpop.eup %4164  ;;  %v2061_v16 = vmul.f32 %v7375_v19, %v2060_v46  ;;  %vm7432_vm3 = vcmp.eq.f32.partialorder %v2067_v32, 8.507059e+37  ;;  %v2069_v10 = vand.u32 2147483648, %v7246_v31  ;;  %vm2198_vm1 = vweird.f32 %v7308_v50 }
 0x2c0   : > { %v7437_v37 = vpop.eup %4166  ;;  %v2195_v0 = vsub.f32 1.0, %v2194_v1  ;;  %v7440_v26 = vadd.f32 1.0, %v4165_v27  ;;  %4172 = vpow2.f32 %v3742_v58  ;;  %vm2064_vm0 = vweird.f32 %v7375_v19 }
 0x2c1   : > { %v2062_v51 = vadd.f32 %v7375_v19, %v2061_v16  ;;  %v2209_v13 = vmul.f32 %v7437_v37, %v7352_v15  ;;  %4174 = vpow2.f32 %v3751_v62  ;;  %v2056_v61 = vsel %vm7390_vm12, %v2055_v3, %v2051_v53  ;;  %vm7457_vm2 = vmor %vm2063_vm14, %vm2064_vm0  ;;  %v1000_v53 = vpop.f32.mrf.mxu1  ;;  %v3134_v16 = vld [vmem:[%s8060_s5 + $0x398] sm:$0xff] }
 0x2c2   : > { %v4169_v59 = vpop.eup %4168  ;;  %v2196_v52 = vmul.f32 %v7395_v14, %v2195_v0  ;;  %v2202_v55 = vand.u32 2147483647, %v7308_v50  ;;  %4176 = vrcp.f32 %v7440_v26  ;;  %vm2199_vm5 = vweird.f32 %v7395_v14  ;;  %3372 = vmatpush.msra.mxu3 %v3134_v16 }
 0x2c3   : > { %v4171_v28 = vpop.eup %4170  ;;  %v2204_v34 = vand.u32 2147483648, %v7308_v50  ;;  %v2210_v2 = vsub.f32 1.0, %v2209_v13  ;;  %v7453_v43 = vadd.f32 1.0, %v4169_v59  ;;  %v2217_v24 = vand.u32 2147483647, %v7352_v15  ;;  %vm7479_vm8 = vmor %vm2198_vm1, %vm2199_vm5  ;;  %v3085_v59 = vld [vmem:[%s8060_s5 + $0x210] sm:$0xff] }
 0x2c4   : > { %v2197_v57 = vadd.f32 %v7395_v14, %v2196_v52  ;;  %v2219_v41 = vand.u32 2147483648, %v7352_v15  ;;  %v7464_v22 = vadd.f32 1.0, %v4171_v28  ;;  %v2775_v49 = vmul.f32 %v2056_v61, %v6998_v29  ;;  %v3101_v61 = vld [vmem:[%s8060_s5 + $0x290] sm:$0xff]  ;;  %3313 = vmatpush.msra.mxu0 %v3085_v59  ;;  %v3083_v29 = vld [vmem:[%s8060_s5 + $0x200] sm:$0xff] }
 0x2c5   : > { %v2066_v36 = vsel %vm7457_vm2, %v7375_v19, %v2062_v51  ;;  %v2211_v31 = vmul.f32 %v7437_v37, %v2210_v2  ;;  %4178 = vrcp.f32 %v7453_v43  ;;  %v7473_v12 = vadd.f32 %v7378_v47, %v2774_v54  ;;  %v3133_v28 = vld [vmem:[%s8060_s5 + $0x390] sm:$0xff] }
 0x2c6   : > { %v4173_v42 = vpop.eup %4172  ;;  %v2070_v18 = vor.u32 1.1754944e-38, %v2069_v10  ;;  %vm7483_vm7 = vcmp.eq.f32.partialorder %v2202_v55, 8.507059e+37  ;;  %v7488_v19 = vadd.f32 %v1027_v33, %v6450_v35  ;;  %v2201_v47 = vsel %vm7479_vm8, %v7395_v14, %v2197_v57  ;;  %3373 = vmatpush.msra.mxu3 %v3133_v28  ;;  %v1058_v28 = vpop.f32.mrf.mxu3 }
 0x2c7   : > { %v4175_v32 = vpop.eup %4174  ;;  %v2212_v8 = vadd.f32 %v7437_v37, %v2211_v31  ;;  %vm2214_vm15 = vweird.f32 %v7437_v37  ;;  %4180 = vrcp.f32 %v7464_v22  ;;  %v2205_v58 = vor.u32 1.1754944e-38, %v2204_v34  ;;  %v3116_v31 = vld [vmem:[%s8060_s5 + $0x308] sm:$0xff] }
 0x2c8   : > { %v7496_v50 = vpop.eup %4176  ;;  %v2071_v3 = vsel %vm7432_vm3, %v2070_v18, %v2066_v36  ;;  %vm2213_vm9 = vweird.f32 %v7352_v15  ;;  %v2234_v46 = vand.u32 2147483648, %v7440_v26  ;;  %v7503_v62 = vadd.f32 %v7398_v39, %v2775_v49  ;;  %v3102_v15 = vld [vmem:[%s8060_s5 + $0x298] sm:$0xff] }
 0x2c9   : > { %vm7505_vm10 = vcmp.eq.f32.partialorder %v2217_v24, 8.507059e+37  ;;  %v2220_v56 = vor.u32 1.1754944e-38, %v2219_v41  ;;  %v7510_v25 = vadd.f32 %v1056_v45, %v6460_v6  ;;  %v3118_v39 = vld [vmem:[%s8060_s5 + $0x318] sm:$0xff]  ;;  %v2206_v54 = vsel %vm7483_vm7, %v2205_v58, %v2201_v47  ;;  %vm7525_vm11 = vmor %vm2213_vm9, %vm2214_vm15  ;;  %3332 = vmatpush.msra.mxu1 %v3102_v15  ;;  %v3084_v24 = vld [vmem:[%s8060_s5 + $0x208] sm:$0xff] }
 0x2ca   : > { %v7531_v1 = vmul.f32 %v7496_v50, %v7440_v26  ;;  %v7533_v23 = vadd.f32 1.0, %v4173_v42  ;;  %v3752_v27 = vmul.f32 -1.442695, %v7488_v19  ;;  %v2776_v10 = vmul.f32 %v2071_v3, %v7001_v30  ;;  %3352 = vmatpush.msra.mxu2 %v3118_v39  ;;  %v3117_v30 = vld [vmem:[%s8060_s5 + $0x310] sm:$0xff]  ;;  %v3100_v41 = vld [vmem:[%s8060_s5 + $0x288] sm:$0xff]  ;;  %3314 = vmatpush.msra.mxu0 %v3084_v24  ;;  %v3099_v45 = vld [vmem:[%s8060_s5 + $0x280] sm:$0xff] }
 0x2cb   : > { %v7539_v40 = vpop.eup %4178  ;;  %v2216_v0 = vsel %vm7525_vm11, %v7437_v37, %v2212_v8  ;;  %v2232_v51 = vand.u32 2147483647, %v7440_v26  ;;  %v7546_v13 = vadd.f32 1.0, %v4175_v32  ;;  %v7557_v52 = vor.u32 1.1754944e-38, %v2234_v46  ;;  %3333 = vmatpush.msra.mxu1 %v3101_v61  ;;  %v3132_v42 = vld [vmem:[%s8060_s5 + $0x388] sm:$0xff]  ;;  %v3115_v8 = vld [vmem:[%s8060_s5 + $0x300] sm:$0xff] }
 0x2cc   : > { %v2359_v37 = vmul.f32 %v7539_v40, %v7453_v43  ;;  %v2369_v55 = vand.u32 2147483648, %v7453_v43  ;;  %4182 = vrcp.f32 %v7533_v23  ;;  %v2785_v2 = vmul.f32 %v2206_v54, %v7014_v60  ;;  %3353 = vmatpush.msra.mxu2 %v3117_v30  ;;  %3374 = vmatpush.msra.mxu3 %v3132_v42  ;;  %v3131_v3 = vld [vmem:[%s8060_s5 + $0x380] sm:$0xff]  ;;  %v1029_v54 = vpop.f32.mrf.mxu2 }
 0x2cd   : > { %v7566_v34 = vpop.eup %4180  ;;  %v2367_v33 = vand.u32 2147483647, %v7453_v43  ;;  %v2382_v21 = vand.u32 2147483647, %v7464_v22  ;;  %v7572_v57 = vadd.f32 %v1000_v53, %v6437_v4  ;;  %v2221_v60 = vsel %vm7505_vm10, %v2220_v56, %v2216_v0  ;;  %3334 = vmatpush.msra.mxu1 %v3100_v41  ;;  %3315 = vmatpush.msra.mxu0 %v3083_v29 }
 0x2ce   : > { %v2225_v49 = vsub.f32 1.0, %v7531_v1  ;;  %v2360_v36 = vsub.f32 1.0, %v2359_v37  ;;  %v2374_v4 = vmul.f32 %v7566_v34, %v7464_v22  ;;  %v7592_v18 = vadd.f32 %v7411_v48, %v2776_v10  ;;  %3354 = vmatpush.msra.mxu2 %v3116_v31  ;;  %3375 = vmatpush.msra.mxu3 %v3131_v3 }
 0x2cf   : > { %vm2363_vm12 = vweird.f32 %v7453_v43  ;;  %v2384_v9 = vand.u32 2147483648, %v7464_v22  ;;  %4184 = vrcp.f32 %v7546_v13  ;;  %vm2228_vm13 = vweird.f32 %v7440_v26  ;;  %3335 = vmatpush.msra.mxu1 %v3099_v45 }
 0x2d0   : > { %v2361_v48 = vmul.f32 %v7539_v40, %v2360_v36  ;;  %v2370_v32 = vor.u32 1.1754944e-38, %v2369_v55  ;;  %v2375_v47 = vsub.f32 1.0, %v2374_v4  ;;  %vm2378_vm14 = vweird.f32 %v7464_v22  ;;  %3355 = vmatpush.msra.mxu2 %v3115_v8 }
 0x2d1   : > { %v2786_v58 = vmul.f32 %v2221_v60, %v7158_v38  ;;  %vm2229_vm3 = vweird.f32 %v7496_v50  ;;  %4186 = vpow2.f32 %v3752_v27  ;;  %v3753_v46 = vmul.f32 -1.442695, %v7510_v25 }
 0x2d2   : > { %v7615_v14 = vpop.eup %4182  ;;  %v7618_v56 = vadd.f32 %v7473_v12, %v2785_v2  ;;  %v2226_v11 = vmul.f32 %v7496_v50, %v2225_v49  ;;  %vm7621_vm1 = vcmp.eq.f32.partialorder %v2367_v33, 8.507059e+37  ;;  %v2376_v38 = vmul.f32 %v7566_v34, %v2375_v47  ;;  %vm7688_vm11 = vmor %vm2228_vm13, %vm2229_vm3 }
 0x2d3   : > { %vm7626_vm0 = vcmp.eq.f32.partialorder %v2382_v21, 8.507059e+37  ;;  %vm2364_vm5 = vweird.f32 %v7539_v40  ;;  %vm2379_vm2 = vweird.f32 %v7566_v34  ;;  %v2385_v44 = vor.u32 1.1754944e-38, %v2384_v9 }
 0x2d4   : > { %v2389_v12 = vmul.f32 %v7615_v14, %v7533_v23  ;;  %v2362_v1 = vadd.f32 %v7539_v40, %v2361_v48  ;;  %v2377_v27 = vadd.f32 %v7566_v34, %v2376_v38  ;;  %4188 = vpow2.f32 %v3753_v46  ;;  %vm7657_vm15 = vmor %vm2363_vm12, %vm2364_vm5 }
 0x2d5   : > { %v3762_v53 = vmul.f32 -1.442695, %v7572_v57  ;;  %v7637_v16 = vpop.eup %4184  ;;  %v7640_v10 = vadd.f32 %v7503_v62, %v2786_v58  ;;  %vm7644_vm8 = vcmp.eq.f32.partialorder %v2232_v51, 8.507059e+37  ;;  %vm2393_vm7 = vweird.f32 %v7533_v23  ;;  %vm7669_vm9 = vmor %vm2378_vm14, %vm2379_vm2 }
 0x2d6   : > { %v2390_v59 = vsub.f32 1.0, %v2389_v12  ;;  %v7650_v61 = vadd.f32 %v1029_v54, %v6450_v35  ;;  %v2227_v30 = vadd.f32 %v7496_v50, %v2226_v11  ;;  %v2397_v51 = vand.u32 2147483647, %v7533_v23  ;;  %v3015_v35 = vld [vmem:[#allocation2] sm:$0xff] }
 0x2d7   : > { %v2399_v37 = vand.u32 2147483648, %v7533_v23  ;;  %v2524_v55 = vmul.f32 %v7637_v16, %v7546_v13  ;;  %v4187_v2 = vpop.eup %4186  ;;  %vm2394_vm10 = vweird.f32 %v7615_v14  ;;  %4190 = vpow2.f32 %v3762_v53 }
 0x2d8   : > { %v2391_v33 = vmul.f32 %v7615_v14, %v2390_v59  ;;  %v3763_v21 = vmul.f32 -1.442695, %v7650_v61  ;;  %v2366_v24 = vsel %vm7657_vm15, %v7539_v40, %v2362_v1  ;;  %v2381_v41 = vsel %vm7669_vm9, %v7566_v34, %v2377_v27  ;;  %vm7718_vm14 = vmor %vm2393_vm7, %vm2394_vm10 }
 0x2d9   : > { %v2525_v22 = vsub.f32 1.0, %v2524_v55  ;;  %v7682_v60 = vadd.f32 1.0, %v4187_v2  ;;  %v7694_v40 = vadd.f32 %v1058_v28, %v6460_v6  ;;  %v7696_v4 = vmul.f32 0.015625, %v3015_v35 }
 0x2da   : > { %v2392_v36 = vadd.f32 %v7615_v14, %v2391_v33  ;;  %4192 = vpow2.f32 %v3763_v21  ;;  %v4189_v34 = vpop.eup %4188  ;;  %v2231_v31 = vsel %vm7688_vm11, %v7496_v50, %v2227_v30  ;;  %vm7701_vm12 = vcmp.eq.f32.partialorder %v2397_v51, 8.507059e+37 }
 0x2db   : > { %v2526_v26 = vmul.f32 %v7637_v16, %v2525_v22  ;;  %4194 = vrcp.f32 %v7682_v60  ;;  %v2371_v9 = vsel %vm7621_vm1, %v2370_v32, %v2366_v24  ;;  %v2386_v6 = vsel %vm7626_vm0, %v2385_v44, %v2381_v41 }
 0x2dc   : > { %vm2529_vm13 = vweird.f32 %v7637_v16  ;;  %v7712_v29 = vadd.f32 1.0, %v4189_v34  ;;  %v2534_v48 = vand.u32 2147483648, %v7546_v13  ;;  %v3764_v32 = vmul.f32 -1.442695, %v7694_v40  ;;  %v3175_v34 = vld [vmem:[%s8060_s5 + $0x4e0] sm:$0xff] }
 0x2dd   : > { %v2527_v45 = vadd.f32 %v7637_v16, %v2526_v26  ;;  %v3198_v47 = vperm.slane %v7696_v4, 0  ;;  %v4191_v8 = vpop.eup %4190  ;;  %v2396_v3 = vsel %vm7718_vm14, %v7615_v14, %v2392_v36  ;;  %vm2528_vm3 = vweird.f32 %v7546_v13 }
 0x2de   : > { %v2532_v23 = vand.u32 2147483647, %v7546_v13  ;;  %4196 = vrcp.f32 %v7712_v29  ;;  %v2236_v58 = vsel %vm7644_vm8, %v7557_v52, %v2231_v31  ;;  %v2796_v46 = vmul.f32 %v2371_v9, %v7299_v20  ;;  %vm7739_vm1 = vmor %vm2528_vm3, %vm2529_vm13 }
 0x2df   : > { %v2797_v11 = vmul.f32 %v2386_v6, %v7311_v17  ;;  %v2400_v15 = vor.u32 1.1754944e-38, %v2399_v37  ;;  %3236 = vmatmul.f32.vlgmr.msrb.gmra.mxu0 %v3198_v47  ;;  %v2531_v13 = vsel %vm7739_vm1, %v7637_v16, %v2527_v45  ;;  %v2547_v39 = vand.u32 2147483647, %v7682_v60 }
 0x2e0   : > { %v4193_v14 = vpop.eup %4192  ;;  %v7747_v52 = vadd.f32 1.0, %v4191_v8  ;;  %4198 = vpow2.f32 %v3764_v32  ;;  %v2535_v54 = vor.u32 1.1754944e-38, %v2534_v48  ;;  %v2549_v44 = vand.u32 2147483648, %v7682_v60 }
 0x2e1   : > { %v4195_v20 = vpop.eup %4194  ;;  %v2401_v17 = vsel %vm7701_vm12, %v2400_v15, %v2396_v3  ;;  %v7752_v12 = vadd.f32 1.0, %v4193_v14  ;;  %v7755_v1 = vmul.f32 %v2236_v58, %v7274_v5  ;;  %vm2533_vm0 = vcmp.eq.f32.partialorder %v2532_v23, 8.507059e+37 }
 0x2e2   : > { %v2539_v27 = vmul.f32 %v4195_v20, %v7682_v60  ;;  %4200 = vrcp.f32 %v7747_v52  ;;  %v2931_v53 = vadd.f32 %v7618_v56, %v2796_v46  ;;  %v7761_v16 = vadd.f32 %v7640_v10, %v2797_v11 }
 0x2e3   : > { %v2536_v0 = vsel %vm2533_vm0, %v2535_v54, %v2531_v13  ;;  %4202 = vrcp.f32 %v7752_v12  ;;  %v7767_v30 = vmul.f32 %v2401_v17, %v7356_v7  ;;  %vm2543_vm5 = vweird.f32 %v7682_v60  ;;  %v3162_v54 = vld [vmem:[%s8060_s5 + $0x478] sm:$0xff] }
 0x2e4   : > { %v7764_v59 = vpop.eup %4196  ;;  %v2540_v5 = vsub.f32 1.0, %v2539_v27  ;;  %vm7770_vm2 = vcmp.eq.f32.partialorder %v2547_v39, 8.507059e+37  ;;  %v2550_v51 = vor.u32 1.1754944e-38, %v2549_v44  ;;  %v2562_v10 = vand.u32 2147483647, %v7712_v29  ;;  %v3178_v44 = vld [vmem:[%s8060_s5 + $0x4f8] sm:$0xff]  ;;  %3380 = vmatpush.msrb.mxu0 %v3162_v54 }
 0x2e5   : > { %v2554_v56 = vmul.f32 %v7764_v59, %v7712_v29  ;;  %v2564_v37 = vand.u32 2147483648, %v7712_v29  ;;  %v2807_v28 = vmul.f32 %v2536_v0, %v7367_v63  ;;  %vm2544_vm8 = vweird.f32 %v4195_v20  ;;  %v3194_v27 = vld [vmem:[%s8060_s5 + $0x578] sm:$0xff] }
 0x2e6   : > { %v4199_v55 = vpop.eup %4198  ;;  %v2541_v7 = vmul.f32 %v4195_v20, %v2540_v5  ;;  %v309_v35 = vlaneseq  ;;  %v3199_v33 = vperm.slane %v7696_v4, 1  ;;  %v3200_v21 = vperm.slane %v7696_v4, 2  ;;  %vm7795_vm15 = vmor %vm2543_vm5, %vm2544_vm8  ;;  %v3154_v54 = vld [vmem:[%s8060_s5 + $0x438] sm:$0xff] }
 0x2e7   : > { %v2555_v2 = vsub.f32 1.0, %v2554_v56  ;;  %v7779_v43 = vadd.f32 1.0, %v4199_v55  ;;  %v3201_v49 = vperm.slane %v7696_v4, 3  ;;  %v3202_v63 = vperm.slane %v7696_v4, 4 }
 0x2e8   : > { %v7783_v24 = vpop.eup %4200  ;;  %v2542_v41 = vadd.f32 %v4195_v20, %v2541_v7  ;;  %vm7785_vm7 = vcmp.lt.s32.totalorder %v309_v35, 384  ;;  %vm2558_vm9 = vweird.f32 %v7712_v29  ;;  %v4231_v26 = vmov 0.0   ;;  %3256 = vmatmul.f32.vlgmr.msrb.gmra.mxu1 %v3199_v33  ;;  %3276 = vmatmul.f32.vlgmr.msrb.gmra.mxu2 %v3200_v21  ;;  %v3160_v7 = vld [vmem:[%s8060_s5 + $0x468] sm:$0xff] }
 0x2e9   : > { %v7791_v36 = vpop.eup %4202  ;;  %v2556_v31 = vmul.f32 %v7764_v59, %v2555_v2  ;;  %v2689_v42 = vmul.f32 %v7783_v24, %v7747_v52  ;;  %313 = vst.msk [vmem:[#allocation2 + $0x8] sm:$0x7] %vm7785_vm7, %v4231_v26  ;;  %4204 = vrcp.f32 %v7779_v43  ;;  %vm7808_vm10 = vcmp.eq.f32.partialorder %v2562_v10, 8.507059e+37  ;;  %3296 = vmatmul.f32.vlgmr.msrb.gmra.mxu3 %v3201_v49  ;;  %3316 = vmatmul.f32.vlgmr.msra.gmra.mxu0 %v3202_v63  ;;  %v3193_v10 = vld [vmem:[%s8060_s5 + $0x570] sm:$0xff]  ;;  %v3176_v35 = vld [vmem:[%s8060_s5 + $0x4e8] sm:$0xff] }
 0x2ea   : > { %v2546_v60 = vsel %vm7795_vm15, %v4195_v20, %v2542_v41  ;;  %v2565_v6 = vor.u32 1.1754944e-38, %v2564_v37  ;;  %v2699_v50 = vand.u32 2147483648, %v7747_v52  ;;  %v2704_v45 = vmul.f32 %v7791_v36, %v7752_v12  ;;  %3400 = vmatpush.msrb.mxu1 %v3178_v44  ;;  %3420 = vmatpush.msrb.mxu2 %v3194_v27  ;;  %v3192_v41 = vld [vmem:[%s8060_s5 + $0x568] sm:$0xff]  ;;  %v3170_v44 = vld [vmem:[%s8060_s5 + $0x4b8] sm:$0xff] }
 0x2eb   : > { %v7815_v48 = vadd.f32 %v2931_v53, %v2807_v28  ;;  %vm2559_vm11 = vweird.f32 %v7764_v59  ;;  %v2690_v32 = vsub.f32 1.0, %v2689_v42  ;;  %vm2693_vm12 = vweird.f32 %v7747_v52 }
 0x2ec   : > { %v2551_v47 = vsel %vm7770_vm2, %v2550_v51, %v2546_v60  ;;  %v2557_v8 = vadd.f32 %v7764_v59, %v2556_v31  ;;  %v2697_v3 = vand.u32 2147483647, %v7747_v52  ;;  %v2705_v23 = vsub.f32 1.0, %v2704_v45  ;;  %vm7829_vm14 = vmor %vm2558_vm9, %vm2559_vm11  ;;  %v3177_v52 = vld [vmem:[%s8060_s5 + $0x4f0] sm:$0xff]  ;;  %3421 = vmatpush.msrb.mxu2 %v3193_v10 }
 0x2ed   : > { %v2691_v58 = vmul.f32 %v7783_v24, %v2690_v32  ;;  %vm2694_vm13 = vweird.f32 %v7783_v24  ;;  %v2712_v46 = vand.u32 2147483647, %v7752_v12  ;;  %v2714_v11 = vand.u32 2147483648, %v7752_v12  ;;  %3401 = vmatpush.msrb.mxu1 %v3177_v52  ;;  %v3173_v32 = vld [vmem:[%s8060_s5 + $0x4d0] sm:$0xff] }
 0x2ee   : > { %v2700_v38 = vor.u32 1.1754944e-38, %v2699_v50  ;;  %v2706_v14 = vmul.f32 %v7791_v36, %v2705_v23  ;;  %vm2708_vm3 = vweird.f32 %v7752_v12  ;;  %vm2709_vm1 = vweird.f32 %v7791_v36  ;;  %vm7858_vm0 = vmor %vm2693_vm12, %vm2694_vm13  ;;  %3422 = vmatpush.msrb.mxu2 %v3192_v41  ;;  %v3182_v41 = vld [vmem:[%s8060_s5 + $0x518] sm:$0xff] }
 0x2ef   : > { %v7836_v13 = vpop.eup %4204  ;;  %v2808_v39 = vmul.f32 %v2551_v47, %v7488_v19  ;;  %v2692_v20 = vadd.f32 %v7783_v24, %v2691_v58  ;;  %v3203_v17 = vperm.slane %v7696_v4, 5  ;;  %v3204_v29 = vperm.slane %v7696_v4, 6  ;;  %vm7879_vm2 = vmor %vm2708_vm3, %vm2709_vm1  ;;  %3402 = vmatpush.msrb.mxu1 %v3176_v35  ;;  %v3183_v35 = vld [vmem:[%s8060_s5 + $0x520] sm:$0xff] }
 0x2f0   : > { %v2561_v19 = vsel %vm7829_vm14, %v7764_v59, %v2557_v8  ;;  %v2707_v0 = vadd.f32 %v7791_v36, %v2706_v14  ;;  %v2719_v5 = vmul.f32 %v7836_v13, %v7779_v43  ;;  %v3205_v62 = vperm.slane %v7696_v4, 7  ;;  %v3161_v59 = vld [vmem:[%s8060_s5 + $0x470] sm:$0xff]  ;;  %v3152_v4 = vld [vmem:[%s8060_s5 + $0x428] sm:$0xff] }
 0x2f1   : > { %v2696_v51 = vsel %vm7858_vm0, %v7783_v24, %v2692_v20  ;;  %vm2698_vm5 = vcmp.eq.f32.partialorder %v2697_v3, 8.507059e+37  ;;  %vm2713_vm8 = vcmp.eq.f32.partialorder %v2712_v46, 8.507059e+37  ;;  %v2715_v56 = vor.u32 1.1754944e-38, %v2714_v11  ;;  %3336 = vmatmul.f32.vlgmr.msra.gmra.mxu1 %v3203_v17  ;;  %3356 = vmatmul.f32.vlgmr.msra.gmra.mxu2 %v3204_v29  ;;  %v3156_v46 = vld [vmem:[%s8060_s5 + $0x448] sm:$0xff]  ;;  %v3187_v20 = vld [vmem:[%s8060_s5 + $0x540] sm:$0xff] }
 0x2f2   : > { %v2701_v37 = vsel %vm2698_vm5, %v2700_v38, %v2696_v51  ;;  %v2711_v55 = vsel %vm7879_vm2, %v7791_v36, %v2707_v0  ;;  %v2720_v28 = vsub.f32 1.0, %v2719_v5  ;;  %v2727_v12 = vand.u32 2147483647, %v7779_v43  ;;  %3376 = vmatmul.f32.vlgmr.msra.gmra.mxu3 %v3205_v62  ;;  %3381 = vmatpush.msrb.mxu0 %v3161_v59  ;;  %v3172_v11 = vld [vmem:[%s8060_s5 + $0x4c8] sm:$0xff]  ;;  %v3153_v5 = vld [vmem:[%s8060_s5 + $0x430] sm:$0xff] }
 0x2f3   : > { %v2566_v2 = vsel %vm7808_vm10, %v2565_v6, %v2561_v19  ;;  %v2818_v33 = vmul.f32 %v2701_v37, %v7572_v57  ;;  %v2716_v21 = vsel %vm2713_vm8, %v2715_v56, %v2711_v55  ;;  %v2729_v24 = vand.u32 2147483648, %v7779_v43  ;;  %v3159_v57 = vld [vmem:[%s8060_s5 + $0x460] sm:$0xff]  ;;  %3403 = vmatpush.msrb.mxu1 %v3175_v34  ;;  %v3188_v38 = vld [vmem:[%s8060_s5 + $0x548] sm:$0xff]  ;;  %v3186_v19 = vld [vmem:[%s8060_s5 + $0x538] sm:$0xff] }
 0x2f4   : > { %v2945_v49 = vadd.f32 %v7761_v16, %v2808_v39  ;;  %v2819_v63 = vmul.f32 %v2716_v21, %v7650_v61  ;;  %v2721_v36 = vmul.f32 %v7836_v13, %v2720_v28  ;;  %vm2724_vm15 = vweird.f32 %v7836_v13  ;;  %3382 = vmatpush.msrb.mxu0 %v3160_v7  ;;  %v3191_v61 = vld [vmem:[%s8060_s5 + $0x560] sm:$0xff]  ;;  %v3169_v62 = vld [vmem:[%s8060_s5 + $0x4b0] sm:$0xff]  ;;  %v3168_v56 = vld [vmem:[%s8060_s5 + $0x4a8] sm:$0xff] }
 0x2f5   : > { %v2956_v31 = vadd.f32 %v7592_v18, %v7755_v1  ;;  %v2933_v16 = vadd.f32 %v7815_v48, %v2818_v33  ;;  %v2809_v42 = vmul.f32 %v2566_v2, %v7510_v25  ;;  %vm2723_vm9 = vweird.f32 %v7779_v43  ;;  %v3158_v18 = vld [vmem:[%s8060_s5 + $0x458] sm:$0xff]  ;;  %3423 = vmatpush.msrb.mxu2 %v3191_v61  ;;  %v3157_v48 = vld [vmem:[%s8060_s5 + $0x450] sm:$0xff]  ;;  %v3171_v39 = vld [vmem:[%s8060_s5 + $0x4c0] sm:$0xff] }
 0x2f6   : > { %v2946_v26 = vadd.f32 %v2945_v49, %v2819_v63  ;;  %v2722_v60 = vadd.f32 %v7836_v13, %v2721_v36  ;;  %v3174_v1 = vld [vmem:[%s8060_s5 + $0x4d8] sm:$0xff]  ;;  %vm2725_vm10 = vmor %vm2723_vm9, %vm2724_vm15  ;;  %v2730_v6 = vor.u32 1.1754944e-38, %v2729_v24  ;;  %3383 = vmatpush.msrb.mxu0 %v3159_v57  ;;  %vm2728_vm11 = vcmp.eq.f32.partialorder %v2727_v12, 8.507059e+37  ;;  %v3185_v59 = vld [vmem:[%s8060_s5 + $0x530] sm:$0xff] }
 0x2f7   : > { %v2934_v9 = vrot.slane %v2933_v16, 4  ;;  %v3190_v25 = vld [vmem:[%s8060_s5 + $0x558] sm:$0xff]  ;;  %v2957_v43 = vadd.f32 %v2956_v31, %v7767_v30  ;;  %3404 = vmatpush.msrb.mxu1 %v3174_v1  ;;  %v3189_v30 = vld [vmem:[%s8060_s5 + $0x550] sm:$0xff]  ;;  %v3184_v37 = vld [vmem:[%s8060_s5 + $0x528] sm:$0xff] }
 0x2f8   : > { %v2947_v50 = vrot.slane %v2946_v26, 4  ;;  %v2726_v45 = vsel %vm2725_vm10, %v7836_v13, %v2722_v60  ;;  %3384 = vmatpush.msrb.mxu0 %v3158_v18  ;;  %3424 = vmatpush.msrb.mxu2 %v3190_v25  ;;  %v3151_v28 = vld [vmem:[%s8060_s5 + $0x420] sm:$0xff]  ;;  %v3150_v33 = vld [vmem:[%s8060_s5 + $0x418] sm:$0xff]  ;;  %v3149_v63 = vld [vmem:[%s8060_s5 + $0x410] sm:$0xff] }
 0x2f9   : > { %v2935_v47 = vadd.f32 %v2934_v9, %v2933_v16  ;;  %v2731_v8 = vsel %vm2728_vm11, %v2730_v6, %v2726_v45  ;;  %v2958_v3 = vadd.f32 %v2957_v43, %v2809_v42  ;;  %3405 = vmatpush.msrb.mxu1 %v3173_v32  ;;  %v3167_v12 = vld [vmem:[%s8060_s5 + $0x4a0] sm:$0xff]  ;;  %v3166_v21 = vld [vmem:[%s8060_s5 + $0x498] sm:$0xff]  ;;  %v3165_v36 = vld [vmem:[%s8060_s5 + $0x490] sm:$0xff] }
 0x2fa   : > { %v2948_v23 = vadd.f32 %v2947_v50, %v2946_v26  ;;  %v2820_v58 = vmul.f32 %v2731_v8, %v7694_v40  ;;  %3385 = vmatpush.msrb.mxu0 %v3157_v48  ;;  %3425 = vmatpush.msrb.mxu2 %v3189_v30  ;;  %v3155_v40 = vld [vmem:[%s8060_s5 + $0x440] sm:$0xff]  ;;  %v3181_v34 = vld [vmem:[%s8060_s5 + $0x510] sm:$0xff]  ;;  %v2822_v31 = vld [vmem:[#allocation2 + $0x8] sm:$0x7] }
 0x2fb   : > { %v2936_v15 = vrot.slane %v2935_v47, 2  ;;  %3406 = vmatpush.msrb.mxu1 %v3172_v11  ;;  %v3148_v61 = vld [vmem:[%s8060_s5 + $0x408] sm:$0xff]  ;;  %v3147_v18 = vld [vmem:[%s8060_s5 + $0x400] sm:$0xff] }
 0x2fc   : > { %v2949_v14 = vrot.slane %v2948_v23, 2  ;;  %v2959_v13 = vadd.f32 %v2958_v3, %v2820_v58  ;;  %3386 = vmatpush.msrb.mxu0 %v3156_v46  ;;  %3426 = vmatpush.msrb.mxu2 %v3188_v38  ;;  %v3164_v42 = vld [vmem:[%s8060_s5 + $0x488] sm:$0xff]  ;;  %v3163_v1 = vld [vmem:[%s8060_s5 + $0x480] sm:$0xff] }
 0x2fd   : > { %v2937_v27 = vadd.f32 %v2936_v15, %v2935_v47  ;;  %3407 = vmatpush.msrb.mxu1 %v3171_v39  ;;  %v3180_v26 = vld [vmem:[%s8060_s5 + $0x508] sm:$0xff]  ;;  %v3179_v6 = vld [vmem:[%s8060_s5 + $0x500] sm:$0xff] }
 0x2fe   : > { %v2950_v17 = vadd.f32 %v2949_v14, %v2948_v23  ;;  %v2960_v29 = vrot.slane %v2959_v13, 4  ;;  %3387 = vmatpush.msrb.mxu0 %v3155_v40  ;;  %3427 = vmatpush.msrb.mxu2 %v3187_v20  ;;  %v3195_v32 = vld [vmem:[%s8061_s6] sm:$0x1] }
 0x2ff   : > { %3408 = vmatpush.msrb.mxu1 %v3170_v44  ;;  %v2938_v10 = vrot.slane %v2937_v27, 1 }
 0x300   : > { %v2951_v53 = vrot.slane %v2950_v17, 1  ;;  %v2961_v0 = vadd.f32 %v2960_v29, %v2959_v13  ;;  %3388 = vmatpush.msrb.mxu0 %v3154_v54  ;;  %3428 = vmatpush.msrb.mxu2 %v3186_v19 }
 0x301   : > { %3409 = vmatpush.msrb.mxu1 %v3169_v62  ;;  %v2939_v24 = vadd.f32 %v2938_v10, %v2937_v27 }
 0x302   : > { %v2952_v52 = vadd.f32 %v2951_v53, %v2950_v17  ;;  %v2962_v51 = vrot.slane %v2961_v0, 2  ;;  %3389 = vmatpush.msrb.mxu0 %v3153_v5  ;;  %3429 = vmatpush.msrb.mxu2 %v3185_v59 }
 0x303   : > { %3410 = vmatpush.msrb.mxu1 %v3168_v56 }
 0x304   : > { %v2963_v55 = vadd.f32 %v2962_v51, %v2961_v0  ;;  %v2984_v7 = vrot.slane %v2952_v52, 7  ;;  %3390 = vmatpush.msrb.mxu0 %v3152_v4  ;;  %3430 = vmatpush.msrb.mxu2 %v3184_v37 }
 0x305   : > { %3411 = vmatpush.msrb.mxu1 %v3167_v12 }
 0x306   : > { %v2964_v2 = vrot.slane %v2963_v55, 1  ;;  %3391 = vmatpush.msrb.mxu0 %v3151_v28  ;;  %3431 = vmatpush.msrb.mxu2 %v3183_v35  ;;  %v3000_v57 = vsel %vm2986_vm4, %v2939_v24, %v2984_v7 }
 0x307   : > { %3412 = vmatpush.msrb.mxu1 %v3166_v21 }
 0x308   : > { %v2965_v49 = vadd.f32 %v2964_v2, %v2963_v55  ;;  %3392 = vmatpush.msrb.mxu0 %v3150_v33  ;;  %3432 = vmatpush.msrb.mxu2 %v3182_v41 }
 0x309   : > { %3413 = vmatpush.msrb.mxu1 %v3165_v36 }
 0x30a   : > { %v2985_v16 = vrot.slane %v2965_v49, 6  ;;  %3393 = vmatpush.msrb.mxu0 %v3149_v63  ;;  %3433 = vmatpush.msrb.mxu2 %v3181_v34 }
 0x30b   : > { %3414 = vmatpush.msrb.mxu1 %v3164_v42 }
 0x30c   : > { %v3001_v60 = vsel %vm2990_vm6, %v3000_v57, %v2985_v16  ;;  %3394 = vmatpush.msrb.mxu0 %v3148_v61  ;;  %3434 = vmatpush.msrb.mxu2 %v3180_v26 }
 0x30d   : > { %v3005_v9 = vadd.f32 %v3001_v60, %v2822_v31  ;;  %3415 = vmatpush.msrb.mxu1 %v3163_v1 }
 0x30e   : > { %3395 = vmatpush.msrb.mxu0 %v3147_v18  ;;  %3435 = vmatpush.msrb.mxu2 %v3179_v6 }
 0x30f   : > { %3011 = vst.msk [vmem:[#allocation2 + $0x8] sm:$0x7] %vm7785_vm7, %v3005_v9 }
 0x316   : > { %v3016_v25 = vld [vmem:[#allocation2 + $0x8] sm:$0x7] }
 0x317   : > { %v3018_v43 = vmul.f32 0.015625, %v3016_v25 }
 0x319   : > { %v3206_v50 = vperm.slane %v3018_v43, 0  ;;  %v3207_v45 = vperm.slane %v3018_v43, 1  ;;  %v3208_v48 = vperm.slane %v3018_v43, 2 }
 0x31b   : > { %3396 = vmatmul.f32.vlgmr.msrb.gmra.mxu0 %v3206_v50  ;;  %3416 = vmatmul.f32.vlgmr.msrb.gmra.mxu1 %v3207_v45 }
 0x31c   : > { %3436 = vmatmul.f32.vlgmr.msrb.gmra.mxu2 %v3208_v48 }
 0x35c   : > { %v3237_v47 = vpop.f32.mrf.mxu0 }
 0x35d   : > { %v3238_v8 = vadd.f32 %v3237_v47, %v3195_v32 }
 0x365   : > { %v3257_v30 = vpop.f32.mrf.mxu1 }
 0x366   : > { %v3258_v3 = vadd.f32 %v3257_v30, %v3238_v8  ;;  %v3317_v11 = vpop.f32.mrf.mxu0 }
 0x36b   : > { %v3277_v22 = vpop.f32.mrf.mxu2 }
 0x36c   : > { %v3278_v23 = vadd.f32 %v3277_v22, %v3258_v3  ;;  %v3297_v58 = vpop.f32.mrf.mxu3 }
 0x36e   : > { %v3298_v46 = vadd.f32 %v3297_v58, %v3278_v23  ;;  %v3337_v38 = vpop.f32.mrf.mxu1 }
 0x370   : > { %v3318_v15 = vadd.f32 %v3317_v11, %v3298_v46 }
 0x372   : > { %v3338_v14 = vadd.f32 %v3337_v38, %v3318_v15 }
 0x374   : > { %v3357_v13 = vpop.f32.mrf.mxu2 }
 0x375   : > { %v3358_v40 = vadd.f32 %v3357_v13, %v3338_v14  ;;  %v3377_v39 = vpop.f32.mrf.mxu3 }
 0x377   : > { %v3378_v20 = vadd.f32 %v3377_v39, %v3358_v40 }
 0x398   : > { %v3397_v17 = vpop.f32.mrf.mxu0  ;;  %v3417_v54 = vpop.f32.mrf.mxu1 }
 0x399   : > { %v3398_v29 = vadd.f32 %v3397_v17, %v3378_v20 }
 0x39b   : > { %v3418_v44 = vadd.f32 %v3417_v54, %v3398_v29 }
 0x39f   : > { %v3437_v27 = vpop.f32.mrf.mxu2 }
 0x3a0   : > { %v3438_v19 = vadd.f32 %v3437_v27, %v3418_v44 }
 0x3a2   : > { %3440 = vst [vmem:[%s302_s9] sm:$0x1] %v3438_v19 }
 0x3a3 PF: > { %s17_s26 = sadd.s32 1, %s4229_s26   ;;  %s8331_s24 = smov %s4225_s25 }
 0x3a4   : > { %p14_p5 = scmp.ge.s32.totalorder %s17_s26, 4   ;;  %s8332_s25 = smov %s8334_s27 }
 0x3a6   :  { %16 = sbr.rel (!%p14_p5) target bundleno = 2 (0x2), region = 86 }

</bundles_post_ra>
